<compile_context>
chip_gen: v5e
topology: v5e:2x2
jax: 0.10.0
libtpu: 0.0.40
codegen_flags: <defaults>
</compile_context>

<pallas_src>
import jax
import jax.numpy as jnp
from jax import lax
from jax.experimental import pallas as pl
from jax.experimental.pallas import tpu as pltpu


def _sigmoid(z):
    # 1/(1+exp(-z)) == 0.5*tanh(0.5*z)+0.5  -> single EUP transcendental, no divide.
    return 0.5 * jnp.tanh(0.5 * z) + 0.5


def _bilstm_layer_kernel(x_ref, m_ref, wihf_ref, wihb_ref, bf_ref, bb_ref, whh_ref,
                         out_ref, xpf_scr, xpb_scr, *out_scrs):
    """One full bidirectional LSTM layer, single gridless invocation.

    x_ref:    [T, B, Din]   layer input (time-major)
    m_ref:    [T, B, 1]     validity mask (1.0 = valid, 0.0 = padding)
    wihf_ref: [Din, 4H]     fwd input->gate weights, gate columns [i|f|g|o]
    wihb_ref: [Din, 4H]     bwd input->gate weights
    bf_ref:   [1, 4H]       fwd combined bias (b_ih + b_hh)
    bb_ref:   [1, 4H]       bwd combined bias
    whh_ref:  [2H, 8H]      block-diagonal hidden->gate weights:
                              rows [:H]  x cols [:4H] = fwd W_hh
                              rows [H:]  x cols [4H:] = bwd W_hh
    out_ref:  [T, B, 2H]    layer output ([fwd | bwd] on the lane axis)
    xpf_scr:  [T, B, 4H]    hoisted fwd input projection
    xpb_scr:  [T, B, 4H]    hoisted bwd input projection
    out_scrs: ()            if H % 128 == 0 (direct lane-aligned stores), else
              ([T,B,H], [T,B,H]) fwd/bwd output scratches (+ final concat).
    """
    T, B, Din = x_ref.shape
    H4 = wihf_ref.shape[1]
    H = H4 // 4
    direct_out = len(out_scrs) == 0
    if not direct_out:
        outf_scr, outb_scr = out_scrs

    # ---- Hoisted input projections: two wide MXU matmuls over all timesteps,
    #      written once into direction-major scratches (no 8-way relayout). ----
    x2d = x_ref[...].reshape(T * B, Din)
    xpf_scr[...] = (jnp.dot(x2d, wihf_ref[...], preferred_element_type=jnp.float32)
                    + bf_ref[...]).reshape(T, B, H4)
    xpb_scr[...] = (jnp.dot(x2d, wihb_ref[...], preferred_element_type=jnp.float32)
                    + bb_ref[...]).reshape(T, B, H4)

    whh_blk = whh_ref[...]                       # [2H, 8H] block-diagonal

    def step(t, carry):
        h_f, c_f, h_b, c_b = carry
        tb = T - 1 - t

        # ---- single hidden->gate matmul for BOTH directions ----
        h_cat = jnp.concatenate([h_f, h_b], axis=-1)                    # [B, 2H]
        hh = jnp.dot(h_cat, whh_blk, preferred_element_type=jnp.float32)  # [B, 8H]

        gf = xpf_scr[t] + hh[:, :H4]                                    # fwd gates
        gb = xpb_scr[tb] + hh[:, H4:]                                   # bwd gates

        # ----- forward direction -----
        m_full = jnp.broadcast_to(m_ref[t], (B, H))     # hoisted; reused 3x below
        keep_f = 1.0 - m_full
        i_g = _sigmoid(gf[:, 0 * H:1 * H])
        f_g = _sigmoid(gf[:, 1 * H:2 * H])
        g_g = jnp.tanh(gf[:, 2 * H:3 * H])
        o_g = _sigmoid(gf[:, 3 * H:4 * H])
        c_new = f_g * c_f + i_g * g_g
        h_new = o_g * jnp.tanh(c_new)
        c_f = m_full * c_new + keep_f * c_f
        h_f = m_full * h_new + keep_f * h_f
        o_val = m_full * h_new
        if direct_out:
            out_ref[t, :, :H] = o_val
        else:
            outf_scr[t] = o_val

        # ----- backward direction (walks from the other end in the same loop) -----
        mb_full = jnp.broadcast_to(m_ref[tb], (B, H))
        keep_b = 1.0 - mb_full
        ib_g = _sigmoid(gb[:, 0 * H:1 * H])
        fb_g = _sigmoid(gb[:, 1 * H:2 * H])
        gb_g = jnp.tanh(gb[:, 2 * H:3 * H])
        ob_g = _sigmoid(gb[:, 3 * H:4 * H])
        cb_new = fb_g * c_b + ib_g * gb_g
        hb_new = ob_g * jnp.tanh(cb_new)
        c_b = mb_full * cb_new + keep_b * c_b
        h_b = mb_full * hb_new + keep_b * h_b
        ob_val = mb_full * hb_new
        if direct_out:
            out_ref[tb, :, H:] = ob_val
        else:
            outb_scr[tb] = ob_val

        return h_f, c_f, h_b, c_b

    zeros = jnp.zeros((B, H), jnp.float32)
    unroll = T if T <= 16 else 8                 # cap unroll for large T
    _ = lax.fori_loop(0, T, step, (zeros, zeros, zeros, zeros), unroll=unroll)

    if not direct_out:
        # Single lane-interleaving pass + one output slab store.
        out_ref[...] = jnp.concatenate([outf_scr[...], outb_scr[...]], axis=-1)


def bilstm_layer(x_tbd, mask_tb1, wih_f, wih_b, b_f, b_b, whh_blk):
    """x_tbd: [T, B, Din] -> [T, B, 2H]. Single VMEM-resident, gridless pallas_call."""
    T, B, Din = x_tbd.shape
    H = whh_blk.shape[0] // 2
    direct_out = (H % 128 == 0)

    scratch = [
        pltpu.VMEM((T, B, 4 * H), jnp.float32),     # fwd hoisted projection
        pltpu.VMEM((T, B, 4 * H), jnp.float32),     # bwd hoisted projection
    ]
    if not direct_out:
        scratch += [
            pltpu.VMEM((T, B, H), jnp.float32),     # fwd outputs
            pltpu.VMEM((T, B, H), jnp.float32),     # bwd outputs
        ]

    # VMEM budget (f32 bytes): inputs + weights + output + scratches.
    need = 4 * (T * B * (Din + 1 + 8 * H + 2 * H + (0 if direct_out else 2 * H))
                + 2 * Din * 4 * H + 2 * 4 * H + 2 * H * 8 * H)
    vmem_limit = int(min(64 << 20, max(16 << 20, 2 * need + (2 << 20))))

    vmem = lambda: pl.BlockSpec(memory_space=pltpu.MemorySpace.VMEM)
    return pl.pallas_call(
        _bilstm_layer_kernel,
        out_shape=jax.ShapeDtypeStruct((T, B, 2 * H), jnp.float32),
        in_specs=[vmem() for _ in range(7)],
        out_specs=vmem(),
        scratch_shapes=scratch,
        compiler_params=pltpu.CompilerParams(vmem_limit_bytes=vmem_limit),
    )(x_tbd, mask_tb1, wih_f, wih_b, b_f, b_b, whh_blk)


def init_params(key, input_dim, hidden_dim):
    """Deterministic LSTM params (2 layers x 2 directions), packed for the kernel."""
    H = hidden_dim // 2
    bound = 1.0 / (H ** 0.5)
    params = {}
    for layer in range(2):
        d_in = input_dim if layer == 0 else hidden_dim
        key, *ks = jax.random.split(key, 9)
        u = lambda kk, shape: jax.random.uniform(kk, shape, jnp.float32, -bound, bound)
        w_ih_f = u(ks[0], (d_in, 4 * H))
        w_hh_f = u(ks[1], (H, 4 * H))
        b_f = (u(ks[2], (4 * H,)) + u(ks[3], (4 * H,)))[None, :]    # b_ih + b_hh
        w_ih_b = u(ks[4], (d_in, 4 * H))
        w_hh_b = u(ks[5], (H, 4 * H))
        b_b = (u(ks[6], (4 * H,)) + u(ks[7], (4 * H,)))[None, :]

        # Block-diagonal hidden->gate matrix: one per-step matmul for both dirs.
        whh_blk = jnp.zeros((2 * H, 8 * H), jnp.float32)
        whh_blk = whh_blk.at[:H, :4 * H].set(w_hh_f)
        whh_blk = whh_blk.at[H:, 4 * H:].set(w_hh_b)

        params[f"layer{layer}"] = {
            "wih_f": w_ih_f, "wih_b": w_ih_b,        # [d_in, 4H] each
            "b_f": b_f, "b_b": b_b,                  # [1, 4H] each
            "whh_f": w_hh_f, "whh_b": w_hh_b,        # [H, 4H] (reference only)
            "whh_blk": whh_blk,                      # [2H, 8H] (kernel)
        }
    return params


def feature_encoder_forward(params, sequences, mask, max_len=None):
    """sequences: [B, T, D], mask: [B, T] -> feats: [B, max_len (or T), hidden_dim]."""
    B, T, _ = sequences.shape
    x = jnp.transpose(sequences, (1, 0, 2)).astype(jnp.float32)        # [T, B, D]
    m = jnp.transpose(mask.astype(jnp.float32), (1, 0))[:, :, None]    # [T, B, 1]

    # Pad the batch to a multiple of 8 sublanes; padded rows have mask = 0 (and
    # finite zero inputs), so they never influence real rows and are sliced off.
    B_pad = ((B + 7) // 8) * 8
    if B_pad != B:
        x = jnp.pad(x, ((0, 0), (0, B_pad - B), (0, 0)))
        m = jnp.pad(m, ((0, 0), (0, B_pad - B), (0, 0)))

    inp = x
    for layer in range(2):
        lp = params[f"layer{layer}"]
        inp = bilstm_layer(inp, m, lp["wih_f"], lp["wih_b"],
                           lp["b_f"], lp["b_b"], lp["whh_blk"])

    feats = jnp.transpose(inp, (1, 0, 2))[:B]                          # [B, T, hidden]
    if max_len is not None:   # pad_packed_sequence truncation (static, no host sync)
        feats = feats[:, :max_len, :]
    return feats


# ---------------- pure-JAX reference (for correctness check) ----------------
def _ref_bilstm_layer(x, m, wih_f, wih_b, b_f, b_b, whh_f, whh_b):
    T, B, _ = x.shape
    H = whh_f.shape[0]

    def run(direction):
        wih = wih_f if direction == 0 else wih_b
        b = b_f if direction == 0 else b_b
        whh = whh_f if direction == 0 else whh_b
        h = jnp.zeros((B, H), jnp.float32)
        c = jnp.zeros((B, H), jnp.float32)
        out = [None] * T
        ts = range(T) if direction == 0 else range(T - 1, -1, -1)
        for t in ts:
            gates = x[t] @ wih + b + h @ whh
            i_g = jax.nn.sigmoid(gates[:, 0 * H:1 * H])
            f_g = jax.nn.sigmoid(gates[:, 1 * H:2 * H])
            g_g = jnp.tanh(gates[:, 2 * H:3 * H])
            o_g = jax.nn.sigmoid(gates[:, 3 * H:4 * H])
            c_new = f_g * c + i_g * g_g
            h_new = o_g * jnp.tanh(c_new)
            valid = m[t] > 0.5
            c = jnp.where(valid, c_new, c)
            h = jnp.where(valid, h_new, h)
            out[t] = jnp.where(valid, h_new, 0.0)
        return jnp.stack(out, 0)

    return jnp.concatenate([run(0), run(1)], axis=-1)


def _ref_forward(params, sequences, mask, max_len):
    x = jnp.transpose(sequences, (1, 0, 2)).astype(jnp.float32)
    m = jnp.transpose(mask.astype(jnp.float32), (1, 0))[:, :, None]
    inp = x
    for layer in range(2):
        lp = params[f"layer{layer}"]
        inp = _ref_bilstm_layer(inp, m, lp["wih_f"], lp["wih_b"],
                                lp["b_f"], lp["b_b"], lp["whh_f"], lp["whh_b"])
    feats = jnp.transpose(inp, (1, 0, 2))
    return feats[:, :max_len, :]


if __name__ == "__main__":
    B, T, input_dim, hidden_dim = 2, 8, 16, 32

    key = jax.random.PRNGKey(0)
    kp, kx = jax.random.split(key)
    params = init_params(kp, input_dim, hidden_dim)
    sequences = jax.random.normal(kx, (B, T, input_dim), jnp.float32)
    # lengths = [8, 5]; contiguous 1s then 0s (as pack_padded_sequence assumes)
    lengths = [8, 5]
    mask = (jnp.arange(T)[None, :] < jnp.array(lengths)[:, None]).astype(jnp.float32)
    max_len = max(lengths)   # static truncation, matching pad_packed_sequence

    fwd = jax.jit(feature_encoder_forward, static_argnames=("max_len",))
    feats = jax.block_until_ready(fwd(params, sequences, mask, max_len=max_len))

    ref = jax.block_until_ready(_ref_forward(params, sequences, mask, max_len))
    assert feats.shape == (B, max_len, hidden_dim), feats.shape
    err = float(jnp.max(jnp.abs(feats - ref)))
    assert err < 5e-5, f"max abs err {err}"
    print("KERNEL_OK")
</pallas_src>

<mosaic_0001>
module attributes {stable_mosaic.version = 11 : i64} {
  func.func @_bilstm_layer_kernel(%arg0: memref<8x8x32xf32, #tpu.memory_space<vmem>>, %arg1: memref<8x8x1xf32, #tpu.memory_space<vmem>>, %arg2: memref<32x64xf32, #tpu.memory_space<vmem>>, %arg3: memref<32x64xf32, #tpu.memory_space<vmem>>, %arg4: memref<1x64xf32, #tpu.memory_space<vmem>>, %arg5: memref<1x64xf32, #tpu.memory_space<vmem>>, %arg6: memref<32x128xf32, #tpu.memory_space<vmem>>, %arg7: memref<8x8x32xf32, #tpu.memory_space<vmem>>, %arg8: memref<8x8x64xf32, #tpu.memory_space<vmem>>, %arg9: memref<8x8x64xf32, #tpu.memory_space<vmem>>, %arg10: memref<8x8x16xf32, #tpu.memory_space<vmem>>, %arg11: memref<8x8x16xf32, #tpu.memory_space<vmem>>) attributes {dimension_semantics = [], scalar_prefetch = 0 : i64, scratch_operands = 4 : i64, tpu.core_type = #tpu.core_type<tc>} {
    %c0 = arith.constant 0 : index
    %c0_0 = arith.constant 0 : index
    %c0_1 = arith.constant 0 : index
    %0 = vector.load %arg0[%c0, %c0_0, %c0_1] : memref<8x8x32xf32, #tpu.memory_space<vmem>>, vector<8x8x32xf32>
    %1 = vector.shape_cast %0 : vector<8x8x32xf32> to vector<64x32xf32>
    %c0_2 = arith.constant 0 : index
    %c0_3 = arith.constant 0 : index
    %2 = vector.load %arg2[%c0_2, %c0_3] : memref<32x64xf32, #tpu.memory_space<vmem>>, vector<32x64xf32>
    %cst = arith.constant dense<0.000000e+00> : vector<64x64xf32>
    %3 = tpu.matmul %1, %2, %cst {dimension_numbers = #tpu.dot_dimension_numbers<[1], [0], [0], [1], [0, 0, 1, 1], [], []>} : vector<64x32xf32>, vector<32x64xf32>, vector<64x64xf32> -> vector<64x64xf32>
    %c0_4 = arith.constant 0 : index
    %c0_5 = arith.constant 0 : index
    %4 = vector.load %arg4[%c0_4, %c0_5] : memref<1x64xf32, #tpu.memory_space<vmem>>, vector<1x64xf32>
    %5 = vector.broadcast %4 : vector<1x64xf32> to vector<64x64xf32>
    %6 = arith.addf %3, %5 : vector<64x64xf32>
    %7 = vector.shape_cast %6 : vector<64x64xf32> to vector<8x8x64xf32>
    %c0_6 = arith.constant 0 : index
    %c0_7 = arith.constant 0 : index
    %c0_8 = arith.constant 0 : index
    %8 = vector.load %arg8[%c0_6, %c0_7, %c0_8] : memref<8x8x64xf32, #tpu.memory_space<vmem>>, vector<8x8x64xf32>
    tpu.vector_store %arg8[%c0_6, %c0_7, %c0_8], %7 {strides = array<i32>} : memref<8x8x64xf32, #tpu.memory_space<vmem>>, vector<8x8x64xf32>,
    %c0_9 = arith.constant 0 : index
    %c0_10 = arith.constant 0 : index
    %9 = vector.load %arg3[%c0_9, %c0_10] : memref<32x64xf32, #tpu.memory_space<vmem>>, vector<32x64xf32>
    %cst_11 = arith.constant dense<0.000000e+00> : vector<64x64xf32>
    %10 = tpu.matmul %1, %9, %cst_11 {dimension_numbers = #tpu.dot_dimension_numbers<[1], [0], [0], [1], [0, 0, 1, 1], [], []>} : vector<64x32xf32>, vector<32x64xf32>, vector<64x64xf32> -> vector<64x64xf32>
    %c0_12 = arith.constant 0 : index
    %c0_13 = arith.constant 0 : index
    %11 = vector.load %arg5[%c0_12, %c0_13] : memref<1x64xf32, #tpu.memory_space<vmem>>, vector<1x64xf32>
    %12 = vector.broadcast %11 : vector<1x64xf32> to vector<64x64xf32>
    %13 = arith.addf %10, %12 : vector<64x64xf32>
    %14 = vector.shape_cast %13 : vector<64x64xf32> to vector<8x8x64xf32>
    %c0_14 = arith.constant 0 : index
    %c0_15 = arith.constant 0 : index
    %c0_16 = arith.constant 0 : index
    %15 = vector.load %arg9[%c0_14, %c0_15, %c0_16] : memref<8x8x64xf32, #tpu.memory_space<vmem>>, vector<8x8x64xf32>
    tpu.vector_store %arg9[%c0_14, %c0_15, %c0_16], %14 {strides = array<i32>} : memref<8x8x64xf32, #tpu.memory_space<vmem>>, vector<8x8x64xf32>,
    %c0_17 = arith.constant 0 : index
    %c0_18 = arith.constant 0 : index
    %16 = vector.load %arg6[%c0_17, %c0_18] : memref<32x128xf32, #tpu.memory_space<vmem>>, vector<32x128xf32>
    %cst_19 = arith.constant 0.000000e+00 : f32
    %17 = vector.broadcast %cst_19 : f32 to vector<8x16xf32>
    %c0_i32 = arith.constant 0 : i32
    %c7_i32 = arith.constant 7 : i32
    %18 = arith.subi %c7_i32, %c0_i32 : i32
    %19 = tpu.concatenate %17, %17 in 1 : vector<8x16xf32>, vector<8x16xf32> -> vector<8x32xf32>
    %cst_20 = arith.constant dense<0.000000e+00> : vector<8x128xf32>
    %20 = tpu.matmul %19, %16, %cst_20 {dimension_numbers = #tpu.dot_dimension_numbers<[1], [0], [0], [1], [0, 0, 1, 1], [], []>} : vector<8x32xf32>, vector<32x128xf32>, vector<8x128xf32> -> vector<8x128xf32>
    %21 = arith.index_cast %c0_i32 : i32 to index
    %c0_21 = arith.constant 0 : index
    %c0_22 = arith.constant 0 : index
    %22 = vector.load %arg8[%21, %c0_21, %c0_22] : memref<8x8x64xf32, #tpu.memory_space<vmem>>, vector<1x8x64xf32>
    %23 = vector.shape_cast %22 : vector<1x8x64xf32> to vector<8x64xf32>
    %24 = vector.extract_strided_slice %20 {offsets = [0, 0], sizes = [8, 64], strides = [1, 1]} : vector<8x128xf32> to vector<8x64xf32>
    %25 = arith.addf %23, %24 : vector<8x64xf32>
    %26 = arith.index_cast %18 : i32 to index
    %c0_23 = arith.constant 0 : index
    %c0_24 = arith.constant 0 : index
    %27 = vector.load %arg9[%26, %c0_23, %c0_24] : memref<8x8x64xf32, #tpu.memory_space<vmem>>, vector<1x8x64xf32>
    %28 = vector.shape_cast %27 : vector<1x8x64xf32> to vector<8x64xf32>
    %29 = vector.extract_strided_slice %20 {offsets = [0, 64], sizes = [8, 64], strides = [1, 1]} : vector<8x128xf32> to vector<8x64xf32>
    %30 = arith.addf %28, %29 : vector<8x64xf32>
    %31 = arith.index_cast %c0_i32 : i32 to index
    %c0_25 = arith.constant 0 : index
    %c0_26 = arith.constant 0 : index
    %32 = vector.load %arg1[%31, %c0_25, %c0_26] : memref<8x8x1xf32, #tpu.memory_space<vmem>>, vector<1x8x1xf32>
    %33 = vector.shape_cast %32 : vector<1x8x1xf32> to vector<8x1xf32>
    %34 = vector.shape_cast %33 : vector<8x1xf32> to vector<8x1xf32>
    %35 = vector.broadcast %34 : vector<8x1xf32> to vector<8x16xf32>
    %cst_27 = arith.constant 1.000000e+00 : f32
    %36 = vector.broadcast %cst_27 : f32 to vector<8x16xf32>
    %37 = arith.subf %36, %35 : vector<8x16xf32>
    %38 = vector.extract_strided_slice %25 {offsets = [0, 0], sizes = [8, 16], strides = [1, 1]} : vector<8x64xf32> to vector<8x16xf32>
    %cst_28 = arith.constant 5.000000e-01 : f32
    %39 = vector.broadcast %cst_28 : f32 to vector<8x16xf32>
    %40 = arith.mulf %39, %38 : vector<8x16xf32>
    %41 = math.tanh %40 : vector<8x16xf32>
    %cst_29 = arith.constant 5.000000e-01 : f32
    %42 = vector.broadcast %cst_29 : f32 to vector<8x16xf32>
    %43 = arith.mulf %42, %41 : vector<8x16xf32>
    %cst_30 = arith.constant 5.000000e-01 : f32
    %44 = vector.broadcast %cst_30 : f32 to vector<8x16xf32>
    %45 = arith.addf %43, %44 : vector<8x16xf32>
    %46 = vector.extract_strided_slice %25 {offsets = [0, 16], sizes = [8, 16], strides = [1, 1]} : vector<8x64xf32> to vector<8x16xf32>
    %cst_31 = arith.constant 5.000000e-01 : f32
    %47 = vector.broadcast %cst_31 : f32 to vector<8x16xf32>
    %48 = arith.mulf %47, %46 : vector<8x16xf32>
    %49 = math.tanh %48 : vector<8x16xf32>
    %cst_32 = arith.constant 5.000000e-01 : f32
    %50 = vector.broadcast %cst_32 : f32 to vector<8x16xf32>
    %51 = arith.mulf %50, %49 : vector<8x16xf32>
    %cst_33 = arith.constant 5.000000e-01 : f32
    %52 = vector.broadcast %cst_33 : f32 to vector<8x16xf32>
    %53 = arith.addf %51, %52 : vector<8x16xf32>
    %54 = vector.extract_strided_slice %25 {offsets = [0, 32], sizes = [8, 16], strides = [1, 1]} : vector<8x64xf32> to vector<8x16xf32>
    %55 = math.tanh %54 : vector<8x16xf32>
    %56 = vector.extract_strided_slice %25 {offsets = [0, 48], sizes = [8, 16], strides = [1, 1]} : vector<8x64xf32> to vector<8x16xf32>
    %cst_34 = arith.constant 5.000000e-01 : f32
    %57 = vector.broadcast %cst_34 : f32 to vector<8x16xf32>
    %58 = arith.mulf %57, %56 : vector<8x16xf32>
    %59 = math.tanh %58 : vector<8x16xf32>
    %cst_35 = arith.constant 5.000000e-01 : f32
    %60 = vector.broadcast %cst_35 : f32 to vector<8x16xf32>
    %61 = arith.mulf %60, %59 : vector<8x16xf32>
    %cst_36 = arith.constant 5.000000e-01 : f32
    %62 = vector.broadcast %cst_36 : f32 to vector<8x16xf32>
    %63 = arith.addf %61, %62 : vector<8x16xf32>
    %64 = arith.mulf %53, %17 : vector<8x16xf32>
    %65 = arith.mulf %45, %55 : vector<8x16xf32>
    %66 = arith.addf %64, %65 : vector<8x16xf32>
    %67 = math.tanh %66 : vector<8x16xf32>
    %68 = arith.mulf %63, %67 : vector<8x16xf32>
    %69 = arith.mulf %35, %66 : vector<8x16xf32>
    %70 = arith.mulf %37, %17 : vector<8x16xf32>
    %71 = arith.addf %69, %70 : vector<8x16xf32>
    %72 = arith.mulf %35, %68 : vector<8x16xf32>
    %73 = arith.mulf %37, %17 : vector<8x16xf32>
    %74 = arith.addf %72, %73 : vector<8x16xf32>
    %75 = arith.mulf %35, %68 : vector<8x16xf32>
    %76 = arith.index_cast %c0_i32 : i32 to index
    %c0_37 = arith.constant 0 : index
    %c0_38 = arith.constant 0 : index
    %77 = vector.load %arg10[%76, %c0_37, %c0_38] : memref<8x8x16xf32, #tpu.memory_space<vmem>>, vector<1x8x16xf32>
    %78 = vector.shape_cast %77 : vector<1x8x16xf32> to vector<8x16xf32>
    %79 = vector.shape_cast %75 : vector<8x16xf32> to vector<1x8x16xf32>
    tpu.vector_store %arg10[%76, %c0_37, %c0_38], %79 {strides = array<i32>} : memref<8x8x16xf32, #tpu.memory_space<vmem>>, vector<1x8x16xf32>,
    %80 = arith.index_cast %18 : i32 to index
    %c0_39 = arith.constant 0 : index
    %c0_40 = arith.constant 0 : index
    %81 = vector.load %arg1[%80, %c0_39, %c0_40] : memref<8x8x1xf32, #tpu.memory_space<vmem>>, vector<1x8x1xf32>
    %82 = vector.shape_cast %81 : vector<1x8x1xf32> to vector<8x1xf32>
    %83 = vector.shape_cast %82 : vector<8x1xf32> to vector<8x1xf32>
    %84 = vector.broadcast %83 : vector<8x1xf32> to vector<8x16xf32>
    %cst_41 = arith.constant 1.000000e+00 : f32
    %85 = vector.broadcast %cst_41 : f32 to vector<8x16xf32>
    %86 = arith.subf %85, %84 : vector<8x16xf32>
    %87 = vector.extract_strided_slice %30 {offsets = [0, 0], sizes = [8, 16], strides = [1, 1]} : vector<8x64xf32> to vector<8x16xf32>
    %cst_42 = arith.constant 5.000000e-01 : f32
    %88 = vector.broadcast %cst_42 : f32 to vector<8x16xf32>
    %89 = arith.mulf %88, %87 : vector<8x16xf32>
    %90 = math.tanh %89 : vector<8x16xf32>
    %cst_43 = arith.constant 5.000000e-01 : f32
    %91 = vector.broadcast %cst_43 : f32 to vector<8x16xf32>
    %92 = arith.mulf %91, %90 : vector<8x16xf32>
    %cst_44 = arith.constant 5.000000e-01 : f32
    %93 = vector.broadcast %cst_44 : f32 to vector<8x16xf32>
    %94 = arith.addf %92, %93 : vector<8x16xf32>
    %95 = vector.extract_strided_slice %30 {offsets = [0, 16], sizes = [8, 16], strides = [1, 1]} : vector<8x64xf32> to vector<8x16xf32>
    %cst_45 = arith.constant 5.000000e-01 : f32
    %96 = vector.broadcast %cst_45 : f32 to vector<8x16xf32>
    %97 = arith.mulf %96, %95 : vector<8x16xf32>
    %98 = math.tanh %97 : vector<8x16xf32>
    %cst_46 = arith.constant 5.000000e-01 : f32
    %99 = vector.broadcast %cst_46 : f32 to vector<8x16xf32>
    %100 = arith.mulf %99, %98 : vector<8x16xf32>
    %cst_47 = arith.constant 5.000000e-01 : f32
    %101 = vector.broadcast %cst_47 : f32 to vector<8x16xf32>
    %102 = arith.addf %100, %101 : vector<8x16xf32>
    %103 = vector.extract_strided_slice %30 {offsets = [0, 32], sizes = [8, 16], strides = [1, 1]} : vector<8x64xf32> to vector<8x16xf32>
    %104 = math.tanh %103 : vector<8x16xf32>
    %105 = vector.extract_strided_slice %30 {offsets = [0, 48], sizes = [8, 16], strides = [1, 1]} : vector<8x64xf32> to vector<8x16xf32>
    %cst_48 = arith.constant 5.000000e-01 : f32
    %106 = vector.broadcast %cst_48 : f32 to vector<8x16xf32>
    %107 = arith.mulf %106, %105 : vector<8x16xf32>
    %108 = math.tanh %107 : vector<8x16xf32>
    %cst_49 = arith.constant 5.000000e-01 : f32
    %109 = vector.broadcast %cst_49 : f32 to vector<8x16xf32>
    %110 = arith.mulf %109, %108 : vector<8x16xf32>
    %cst_50 = arith.constant 5.000000e-01 : f32
    %111 = vector.broadcast %cst_50 : f32 to vector<8x16xf32>
    %112 = arith.addf %110, %111 : vector<8x16xf32>
    %113 = arith.mulf %102, %17 : vector<8x16xf32>
    %114 = arith.mulf %94, %104 : vector<8x16xf32>
    %115 = arith.addf %113, %114 : vector<8x16xf32>
    %116 = math.tanh %115 : vector<8x16xf32>
    %117 = arith.mulf %112, %116 : vector<8x16xf32>
    %118 = arith.mulf %84, %115 : vector<8x16xf32>
    %119 = arith.mulf %86, %17 : vector<8x16xf32>
    %120 = arith.addf %118, %119 : vector<8x16xf32>
    %121 = arith.mulf %84, %117 : vector<8x16xf32>
    %122 = arith.mulf %86, %17 : vector<8x16xf32>
    %123 = arith.addf %121, %122 : vector<8x16xf32>
    %124 = arith.mulf %84, %117 : vector<8x16xf32>
    %125 = arith.index_cast %18 : i32 to index
    %c0_51 = arith.constant 0 : index
    %c0_52 = arith.constant 0 : index
    %126 = vector.load %arg11[%125, %c0_51, %c0_52] : memref<8x8x16xf32, #tpu.memory_space<vmem>>, vector<1x8x16xf32>
    %127 = vector.shape_cast %126 : vector<1x8x16xf32> to vector<8x16xf32>
    %128 = vector.shape_cast %124 : vector<8x16xf32> to vector<1x8x16xf32>
    tpu.vector_store %arg11[%125, %c0_51, %c0_52], %128 {strides = array<i32>} : memref<8x8x16xf32, #tpu.memory_space<vmem>>, vector<1x8x16xf32>,
    %c1_i32 = arith.constant 1 : i32
    %c7_i32_53 = arith.constant 7 : i32
    %129 = arith.subi %c7_i32_53, %c1_i32 : i32
    %130 = tpu.concatenate %74, %123 in 1 : vector<8x16xf32>, vector<8x16xf32> -> vector<8x32xf32>
    %cst_54 = arith.constant dense<0.000000e+00> : vector<8x128xf32>
    %131 = tpu.matmul %130, %16, %cst_54 {dimension_numbers = #tpu.dot_dimension_numbers<[1], [0], [0], [1], [0, 0, 1, 1], [], []>} : vector<8x32xf32>, vector<32x128xf32>, vector<8x128xf32> -> vector<8x128xf32>
    %132 = arith.index_cast %c1_i32 : i32 to index
    %c0_55 = arith.constant 0 : index
    %c0_56 = arith.constant 0 : index
    %133 = vector.load %arg8[%132, %c0_55, %c0_56] : memref<8x8x64xf32, #tpu.memory_space<vmem>>, vector<1x8x64xf32>
    %134 = vector.shape_cast %133 : vector<1x8x64xf32> to vector<8x64xf32>
    %135 = vector.extract_strided_slice %131 {offsets = [0, 0], sizes = [8, 64], strides = [1, 1]} : vector<8x128xf32> to vector<8x64xf32>
    %136 = arith.addf %134, %135 : vector<8x64xf32>
    %137 = arith.index_cast %129 : i32 to index
    %c0_57 = arith.constant 0 : index
    %c0_58 = arith.constant 0 : index
    %138 = vector.load %arg9[%137, %c0_57, %c0_58] : memref<8x8x64xf32, #tpu.memory_space<vmem>>, vector<1x8x64xf32>
    %139 = vector.shape_cast %138 : vector<1x8x64xf32> to vector<8x64xf32>
    %140 = vector.extract_strided_slice %131 {offsets = [0, 64], sizes = [8, 64], strides = [1, 1]} : vector<8x128xf32> to vector<8x64xf32>
    %141 = arith.addf %139, %140 : vector<8x64xf32>
    %142 = arith.index_cast %c1_i32 : i32 to index
    %c0_59 = arith.constant 0 : index
    %c0_60 = arith.constant 0 : index
    %143 = vector.load %arg1[%142, %c0_59, %c0_60] : memref<8x8x1xf32, #tpu.memory_space<vmem>>, vector<1x8x1xf32>
    %144 = vector.shape_cast %143 : vector<1x8x1xf32> to vector<8x1xf32>
    %145 = vector.shape_cast %144 : vector<8x1xf32> to vector<8x1xf32>
    %146 = vector.broadcast %145 : vector<8x1xf32> to vector<8x16xf32>
    %cst_61 = arith.constant 1.000000e+00 : f32
    %147 = vector.broadcast %cst_61 : f32 to vector<8x16xf32>
    %148 = arith.subf %147, %146 : vector<8x16xf32>
    %149 = vector.extract_strided_slice %136 {offsets = [0, 0], sizes = [8, 16], strides = [1, 1]} : vector<8x64xf32> to vector<8x16xf32>
    %cst_62 = arith.constant 5.000000e-01 : f32
    %150 = vector.broadcast %cst_62 : f32 to vector<8x16xf32>
    %151 = arith.mulf %150, %149 : vector<8x16xf32>
    %152 = math.tanh %151 : vector<8x16xf32>
    %cst_63 = arith.constant 5.000000e-01 : f32
    %153 = vector.broadcast %cst_63 : f32 to vector<8x16xf32>
    %154 = arith.mulf %153, %152 : vector<8x16xf32>
    %cst_64 = arith.constant 5.000000e-01 : f32
    %155 = vector.broadcast %cst_64 : f32 to vector<8x16xf32>
    %156 = arith.addf %154, %155 : vector<8x16xf32>
    %157 = vector.extract_strided_slice %136 {offsets = [0, 16], sizes = [8, 16], strides = [1, 1]} : vector<8x64xf32> to vector<8x16xf32>
    %cst_65 = arith.constant 5.000000e-01 : f32
    %158 = vector.broadcast %cst_65 : f32 to vector<8x16xf32>
    %159 = arith.mulf %158, %157 : vector<8x16xf32>
    %160 = math.tanh %159 : vector<8x16xf32>
    %cst_66 = arith.constant 5.000000e-01 : f32
    %161 = vector.broadcast %cst_66 : f32 to vector<8x16xf32>
    %162 = arith.mulf %161, %160 : vector<8x16xf32>
    %cst_67 = arith.constant 5.000000e-01 : f32
    %163 = vector.broadcast %cst_67 : f32 to vector<8x16xf32>
    %164 = arith.addf %162, %163 : vector<8x16xf32>
    %165 = vector.extract_strided_slice %136 {offsets = [0, 32], sizes = [8, 16], strides = [1, 1]} : vector<8x64xf32> to vector<8x16xf32>
    %166 = math.tanh %165 : vector<8x16xf32>
    %167 = vector.extract_strided_slice %136 {offsets = [0, 48], sizes = [8, 16], strides = [1, 1]} : vector<8x64xf32> to vector<8x16xf32>
    %cst_68 = arith.constant 5.000000e-01 : f32
    %168 = vector.broadcast %cst_68 : f32 to vector<8x16xf32>
    %169 = arith.mulf %168, %167 : vector<8x16xf32>
    %170 = math.tanh %169 : vector<8x16xf32>
    %cst_69 = arith.constant 5.000000e-01 : f32
    %171 = vector.broadcast %cst_69 : f32 to vector<8x16xf32>
    %172 = arith.mulf %171, %170 : vector<8x16xf32>
    %cst_70 = arith.constant 5.000000e-01 : f32
    %173 = vector.broadcast %cst_70 : f32 to vector<8x16xf32>
    %174 = arith.addf %172, %173 : vector<8x16xf32>
    %175 = arith.mulf %164, %71 : vector<8x16xf32>
    %176 = arith.mulf %156, %166 : vector<8x16xf32>
    %177 = arith.addf %175, %176 : vector<8x16xf32>
    %178 = math.tanh %177 : vector<8x16xf32>
    %179 = arith.mulf %174, %178 : vector<8x16xf32>
    %180 = arith.mulf %146, %177 : vector<8x16xf32>
    %181 = arith.mulf %148, %71 : vector<8x16xf32>
    %182 = arith.addf %180, %181 : vector<8x16xf32>
    %183 = arith.mulf %146, %179 : vector<8x16xf32>
    %184 = arith.mulf %148, %74 : vector<8x16xf32>
    %185 = arith.addf %183, %184 : vector<8x16xf32>
    %186 = arith.mulf %146, %179 : vector<8x16xf32>
    %187 = arith.index_cast %c1_i32 : i32 to index
    %c0_71 = arith.constant 0 : index
    %c0_72 = arith.constant 0 : index
    %188 = vector.load %arg10[%187, %c0_71, %c0_72] : memref<8x8x16xf32, #tpu.memory_space<vmem>>, vector<1x8x16xf32>
    %189 = vector.shape_cast %188 : vector<1x8x16xf32> to vector<8x16xf32>
    %190 = vector.shape_cast %186 : vector<8x16xf32> to vector<1x8x16xf32>
    tpu.vector_store %arg10[%187, %c0_71, %c0_72], %190 {strides = array<i32>} : memref<8x8x16xf32, #tpu.memory_space<vmem>>, vector<1x8x16xf32>,
    %191 = arith.index_cast %129 : i32 to index
    %c0_73 = arith.constant 0 : index
    %c0_74 = arith.constant 0 : index
    %192 = vector.load %arg1[%191, %c0_73, %c0_74] : memref<8x8x1xf32, #tpu.memory_space<vmem>>, vector<1x8x1xf32>
    %193 = vector.shape_cast %192 : vector<1x8x1xf32> to vector<8x1xf32>
    %194 = vector.shape_cast %193 : vector<8x1xf32> to vector<8x1xf32>
    %195 = vector.broadcast %194 : vector<8x1xf32> to vector<8x16xf32>
    %cst_75 = arith.constant 1.000000e+00 : f32
    %196 = vector.broadcast %cst_75 : f32 to vector<8x16xf32>
    %197 = arith.subf %196, %195 : vector<8x16xf32>
    %198 = vector.extract_strided_slice %141 {offsets = [0, 0], sizes = [8, 16], strides = [1, 1]} : vector<8x64xf32> to vector<8x16xf32>
    %cst_76 = arith.constant 5.000000e-01 : f32
    %199 = vector.broadcast %cst_76 : f32 to vector<8x16xf32>
    %200 = arith.mulf %199, %198 : vector<8x16xf32>
    %201 = math.tanh %200 : vector<8x16xf32>
    %cst_77 = arith.constant 5.000000e-01 : f32
    %202 = vector.broadcast %cst_77 : f32 to vector<8x16xf32>
    %203 = arith.mulf %202, %201 : vector<8x16xf32>
    %cst_78 = arith.constant 5.000000e-01 : f32
    %204 = vector.broadcast %cst_78 : f32 to vector<8x16xf32>
    %205 = arith.addf %203, %204 : vector<8x16xf32>
    %206 = vector.extract_strided_slice %141 {offsets = [0, 16], sizes = [8, 16], strides = [1, 1]} : vector<8x64xf32> to vector<8x16xf32>
    %cst_79 = arith.constant 5.000000e-01 : f32
    %207 = vector.broadcast %cst_79 : f32 to vector<8x16xf32>
    %208 = arith.mulf %207, %206 : vector<8x16xf32>
    %209 = math.tanh %208 : vector<8x16xf32>
    %cst_80 = arith.constant 5.000000e-01 : f32
    %210 = vector.broadcast %cst_80 : f32 to vector<8x16xf32>
    %211 = arith.mulf %210, %209 : vector<8x16xf32>
    %cst_81 = arith.constant 5.000000e-01 : f32
    %212 = vector.broadcast %cst_81 : f32 to vector<8x16xf32>
    %213 = arith.addf %211, %212 : vector<8x16xf32>
    %214 = vector.extract_strided_slice %141 {offsets = [0, 32], sizes = [8, 16], strides = [1, 1]} : vector<8x64xf32> to vector<8x16xf32>
    %215 = math.tanh %214 : vector<8x16xf32>
    %216 = vector.extract_strided_slice %141 {offsets = [0, 48], sizes = [8, 16], strides = [1, 1]} : vector<8x64xf32> to vector<8x16xf32>
    %cst_82 = arith.constant 5.000000e-01 : f32
    %217 = vector.broadcast %cst_82 : f32 to vector<8x16xf32>
    %218 = arith.mulf %217, %216 : vector<8x16xf32>
    %219 = math.tanh %218 : vector<8x16xf32>
    %cst_83 = arith.constant 5.000000e-01 : f32
    %220 = vector.broadcast %cst_83 : f32 to vector<8x16xf32>
    %221 = arith.mulf %220, %219 : vector<8x16xf32>
    %cst_84 = arith.constant 5.000000e-01 : f32
    %222 = vector.broadcast %cst_84 : f32 to vector<8x16xf32>
    %223 = arith.addf %221, %222 : vector<8x16xf32>
    %224 = arith.mulf %213, %120 : vector<8x16xf32>
    %225 = arith.mulf %205, %215 : vector<8x16xf32>
    %226 = arith.addf %224, %225 : vector<8x16xf32>
    %227 = math.tanh %226 : vector<8x16xf32>
    %228 = arith.mulf %223, %227 : vector<8x16xf32>
    %229 = arith.mulf %195, %226 : vector<8x16xf32>
    %230 = arith.mulf %197, %120 : vector<8x16xf32>
    %231 = arith.addf %229, %230 : vector<8x16xf32>
    %232 = arith.mulf %195, %228 : vector<8x16xf32>
    %233 = arith.mulf %197, %123 : vector<8x16xf32>
    %234 = arith.addf %232, %233 : vector<8x16xf32>
    %235 = arith.mulf %195, %228 : vector<8x16xf32>
    %236 = arith.index_cast %129 : i32 to index
    %c0_85 = arith.constant 0 : index
    %c0_86 = arith.constant 0 : index
    %237 = vector.load %arg11[%236, %c0_85, %c0_86] : memref<8x8x16xf32, #tpu.memory_space<vmem>>, vector<1x8x16xf32>
    %238 = vector.shape_cast %237 : vector<1x8x16xf32> to vector<8x16xf32>
    %239 = vector.shape_cast %235 : vector<8x16xf32> to vector<1x8x16xf32>
    tpu.vector_store %arg11[%236, %c0_85, %c0_86], %239 {strides = array<i32>} : memref<8x8x16xf32, #tpu.memory_space<vmem>>, vector<1x8x16xf32>,
    %c2_i32 = arith.constant 2 : i32
    %c7_i32_87 = arith.constant 7 : i32
    %240 = arith.subi %c7_i32_87, %c2_i32 : i32
    %241 = tpu.concatenate %185, %234 in 1 : vector<8x16xf32>, vector<8x16xf32> -> vector<8x32xf32>
    %cst_88 = arith.constant dense<0.000000e+00> : vector<8x128xf32>
    %242 = tpu.matmul %241, %16, %cst_88 {dimension_numbers = #tpu.dot_dimension_numbers<[1], [0], [0], [1], [0, 0, 1, 1], [], []>} : vector<8x32xf32>, vector<32x128xf32>, vector<8x128xf32> -> vector<8x128xf32>
    %243 = arith.index_cast %c2_i32 : i32 to index
    %c0_89 = arith.constant 0 : index
    %c0_90 = arith.constant 0 : index
    %244 = vector.load %arg8[%243, %c0_89, %c0_90] : memref<8x8x64xf32, #tpu.memory_space<vmem>>, vector<1x8x64xf32>
    %245 = vector.shape_cast %244 : vector<1x8x64xf32> to vector<8x64xf32>
    %246 = vector.extract_strided_slice %242 {offsets = [0, 0], sizes = [8, 64], strides = [1, 1]} : vector<8x128xf32> to vector<8x64xf32>
    %247 = arith.addf %245, %246 : vector<8x64xf32>
    %248 = arith.index_cast %240 : i32 to index
    %c0_91 = arith.constant 0 : index
    %c0_92 = arith.constant 0 : index
    %249 = vector.load %arg9[%248, %c0_91, %c0_92] : memref<8x8x64xf32, #tpu.memory_space<vmem>>, vector<1x8x64xf32>
    %250 = vector.shape_cast %249 : vector<1x8x64xf32> to vector<8x64xf32>
    %251 = vector.extract_strided_slice %242 {offsets = [0, 64], sizes = [8, 64], strides = [1, 1]} : vector<8x128xf32> to vector<8x64xf32>
    %252 = arith.addf %250, %251 : vector<8x64xf32>
    %253 = arith.index_cast %c2_i32 : i32 to index
    %c0_93 = arith.constant 0 : index
    %c0_94 = arith.constant 0 : index
    %254 = vector.load %arg1[%253, %c0_93, %c0_94] : memref<8x8x1xf32, #tpu.memory_space<vmem>>, vector<1x8x1xf32>
    %255 = vector.shape_cast %254 : vector<1x8x1xf32> to vector<8x1xf32>
    %256 = vector.shape_cast %255 : vector<8x1xf32> to vector<8x1xf32>
    %257 = vector.broadcast %256 : vector<8x1xf32> to vector<8x16xf32>
    %cst_95 = arith.constant 1.000000e+00 : f32
    %258 = vector.broadcast %cst_95 : f32 to vector<8x16xf32>
    %259 = arith.subf %258, %257 : vector<8x16xf32>
    %260 = vector.extract_strided_slice %247 {offsets = [0, 0], sizes = [8, 16], strides = [1, 1]} : vector<8x64xf32> to vector<8x16xf32>
    %cst_96 = arith.constant 5.000000e-01 : f32
    %261 = vector.broadcast %cst_96 : f32 to vector<8x16xf32>
    %262 = arith.mulf %261, %260 : vector<8x16xf32>
    %263 = math.tanh %262 : vector<8x16xf32>
    %cst_97 = arith.constant 5.000000e-01 : f32
    %264 = vector.broadcast %cst_97 : f32 to vector<8x16xf32>
    %265 = arith.mulf %264, %263 : vector<8x16xf32>
    %cst_98 = arith.constant 5.000000e-01 : f32
    %266 = vector.broadcast %cst_98 : f32 to vector<8x16xf32>
    %267 = arith.addf %265, %266 : vector<8x16xf32>
    %268 = vector.extract_strided_slice %247 {offsets = [0, 16], sizes = [8, 16], strides = [1, 1]} : vector<8x64xf32> to vector<8x16xf32>
    %cst_99 = arith.constant 5.000000e-01 : f32
    %269 = vector.broadcast %cst_99 : f32 to vector<8x16xf32>
    %270 = arith.mulf %269, %268 : vector<8x16xf32>
    %271 = math.tanh %270 : vector<8x16xf32>
    %cst_100 = arith.constant 5.000000e-01 : f32
    %272 = vector.broadcast %cst_100 : f32 to vector<8x16xf32>
    %273 = arith.mulf %272, %271 : vector<8x16xf32>
    %cst_101 = arith.constant 5.000000e-01 : f32
    %274 = vector.broadcast %cst_101 : f32 to vector<8x16xf32>
    %275 = arith.addf %273, %274 : vector<8x16xf32>
    %276 = vector.extract_strided_slice %247 {offsets = [0, 32], sizes = [8, 16], strides = [1, 1]} : vector<8x64xf32> to vector<8x16xf32>
    %277 = math.tanh %276 : vector<8x16xf32>
    %278 = vector.extract_strided_slice %247 {offsets = [0, 48], sizes = [8, 16], strides = [1, 1]} : vector<8x64xf32> to vector<8x16xf32>
    %cst_102 = arith.constant 5.000000e-01 : f32
    %279 = vector.broadcast %cst_102 : f32 to vector<8x16xf32>
    %280 = arith.mulf %279, %278 : vector<8x16xf32>
    %281 = math.tanh %280 : vector<8x16xf32>
    %cst_103 = arith.constant 5.000000e-01 : f32
    %282 = vector.broadcast %cst_103 : f32 to vector<8x16xf32>
    %283 = arith.mulf %282, %281 : vector<8x16xf32>
    %cst_104 = arith.constant 5.000000e-01 : f32
    %284 = vector.broadcast %cst_104 : f32 to vector<8x16xf32>
    %285 = arith.addf %283, %284 : vector<8x16xf32>
    %286 = arith.mulf %275, %182 : vector<8x16xf32>
    %287 = arith.mulf %267, %277 : vector<8x16xf32>
    %288 = arith.addf %286, %287 : vector<8x16xf32>
    %289 = math.tanh %288 : vector<8x16xf32>
    %290 = arith.mulf %285, %289 : vector<8x16xf32>
    %291 = arith.mulf %257, %288 : vector<8x16xf32>
    %292 = arith.mulf %259, %182 : vector<8x16xf32>
    %293 = arith.addf %291, %292 : vector<8x16xf32>
    %294 = arith.mulf %257, %290 : vector<8x16xf32>
    %295 = arith.mulf %259, %185 : vector<8x16xf32>
    %296 = arith.addf %294, %295 : vector<8x16xf32>
    %297 = arith.mulf %257, %290 : vector<8x16xf32>
    %298 = arith.index_cast %c2_i32 : i32 to index
    %c0_105 = arith.constant 0 : index
    %c0_106 = arith.constant 0 : index
    %299 = vector.load %arg10[%298, %c0_105, %c0_106] : memref<8x8x16xf32, #tpu.memory_space<vmem>>, vector<1x8x16xf32>
    %300 = vector.shape_cast %299 : vector<1x8x16xf32> to vector<8x16xf32>
    %301 = vector.shape_cast %297 : vector<8x16xf32> to vector<1x8x16xf32>
    tpu.vector_store %arg10[%298, %c0_105, %c0_106], %301 {strides = array<i32>} : memref<8x8x16xf32, #tpu.memory_space<vmem>>, vector<1x8x16xf32>,
    %302 = arith.index_cast %240 : i32 to index
    %c0_107 = arith.constant 0 : index
    %c0_108 = arith.constant 0 : index
    %303 = vector.load %arg1[%302, %c0_107, %c0_108] : memref<8x8x1xf32, #tpu.memory_space<vmem>>, vector<1x8x1xf32>
    %304 = vector.shape_cast %303 : vector<1x8x1xf32> to vector<8x1xf32>
    %305 = vector.shape_cast %304 : vector<8x1xf32> to vector<8x1xf32>
    %306 = vector.broadcast %305 : vector<8x1xf32> to vector<8x16xf32>
    %cst_109 = arith.constant 1.000000e+00 : f32
    %307 = vector.broadcast %cst_109 : f32 to vector<8x16xf32>
    %308 = arith.subf %307, %306 : vector<8x16xf32>
    %309 = vector.extract_strided_slice %252 {offsets = [0, 0], sizes = [8, 16], strides = [1, 1]} : vector<8x64xf32> to vector<8x16xf32>
    %cst_110 = arith.constant 5.000000e-01 : f32
    %310 = vector.broadcast %cst_110 : f32 to vector<8x16xf32>
    %311 = arith.mulf %310, %309 : vector<8x16xf32>
    %312 = math.tanh %311 : vector<8x16xf32>
    %cst_111 = arith.constant 5.000000e-01 : f32
    %313 = vector.broadcast %cst_111 : f32 to vector<8x16xf32>
    %314 = arith.mulf %313, %312 : vector<8x16xf32>
    %cst_112 = arith.constant 5.000000e-01 : f32
    %315 = vector.broadcast %cst_112 : f32 to vector<8x16xf32>
    %316 = arith.addf %314, %315 : vector<8x16xf32>
    %317 = vector.extract_strided_slice %252 {offsets = [0, 16], sizes = [8, 16], strides = [1, 1]} : vector<8x64xf32> to vector<8x16xf32>
    %cst_113 = arith.constant 5.000000e-01 : f32
    %318 = vector.broadcast %cst_113 : f32 to vector<8x16xf32>
    %319 = arith.mulf %318, %317 : vector<8x16xf32>
    %320 = math.tanh %319 : vector<8x16xf32>
    %cst_114 = arith.constant 5.000000e-01 : f32
    %321 = vector.broadcast %cst_114 : f32 to vector<8x16xf32>
    %322 = arith.mulf %321, %320 : vector<8x16xf32>
    %cst_115 = arith.constant 5.000000e-01 : f32
    %323 = vector.broadcast %cst_115 : f32 to vector<8x16xf32>
    %324 = arith.addf %322, %323 : vector<8x16xf32>
    %325 = vector.extract_strided_slice %252 {offsets = [0, 32], sizes = [8, 16], strides = [1, 1]} : vector<8x64xf32> to vector<8x16xf32>
    %326 = math.tanh %325 : vector<8x16xf32>
    %327 = vector.extract_strided_slice %252 {offsets = [0, 48], sizes = [8, 16], strides = [1, 1]} : vector<8x64xf32> to vector<8x16xf32>
    %cst_116 = arith.constant 5.000000e-01 : f32
    %328 = vector.broadcast %cst_116 : f32 to vector<8x16xf32>
    %329 = arith.mulf %328, %327 : vector<8x16xf32>
    %330 = math.tanh %329 : vector<8x16xf32>
    %cst_117 = arith.constant 5.000000e-01 : f32
    %331 = vector.broadcast %cst_117 : f32 to vector<8x16xf32>
    %332 = arith.mulf %331, %330 : vector<8x16xf32>
    %cst_118 = arith.constant 5.000000e-01 : f32
    %333 = vector.broadcast %cst_118 : f32 to vector<8x16xf32>
    %334 = arith.addf %332, %333 : vector<8x16xf32>
    %335 = arith.mulf %324, %231 : vector<8x16xf32>
    %336 = arith.mulf %316, %326 : vector<8x16xf32>
    %337 = arith.addf %335, %336 : vector<8x16xf32>
    %338 = math.tanh %337 : vector<8x16xf32>
    %339 = arith.mulf %334, %338 : vector<8x16xf32>
    %340 = arith.mulf %306, %337 : vector<8x16xf32>
    %341 = arith.mulf %308, %231 : vector<8x16xf32>
    %342 = arith.addf %340, %341 : vector<8x16xf32>
    %343 = arith.mulf %306, %339 : vector<8x16xf32>
    %344 = arith.mulf %308, %234 : vector<8x16xf32>
    %345 = arith.addf %343, %344 : vector<8x16xf32>
    %346 = arith.mulf %306, %339 : vector<8x16xf32>
    %347 = arith.index_cast %240 : i32 to index
    %c0_119 = arith.constant 0 : index
    %c0_120 = arith.constant 0 : index
    %348 = vector.load %arg11[%347, %c0_119, %c0_120] : memref<8x8x16xf32, #tpu.memory_space<vmem>>, vector<1x8x16xf32>
    %349 = vector.shape_cast %348 : vector<1x8x16xf32> to vector<8x16xf32>
    %350 = vector.shape_cast %346 : vector<8x16xf32> to vector<1x8x16xf32>
    tpu.vector_store %arg11[%347, %c0_119, %c0_120], %350 {strides = array<i32>} : memref<8x8x16xf32, #tpu.memory_space<vmem>>, vector<1x8x16xf32>,
    %c3_i32 = arith.constant 3 : i32
    %c7_i32_121 = arith.constant 7 : i32
    %351 = arith.subi %c7_i32_121, %c3_i32 : i32
    %352 = tpu.concatenate %296, %345 in 1 : vector<8x16xf32>, vector<8x16xf32> -> vector<8x32xf32>
    %cst_122 = arith.constant dense<0.000000e+00> : vector<8x128xf32>
    %353 = tpu.matmul %352, %16, %cst_122 {dimension_numbers = #tpu.dot_dimension_numbers<[1], [0], [0], [1], [0, 0, 1, 1], [], []>} : vector<8x32xf32>, vector<32x128xf32>, vector<8x128xf32> -> vector<8x128xf32>
    %354 = arith.index_cast %c3_i32 : i32 to index
    %c0_123 = arith.constant 0 : index
    %c0_124 = arith.constant 0 : index
    %355 = vector.load %arg8[%354, %c0_123, %c0_124] : memref<8x8x64xf32, #tpu.memory_space<vmem>>, vector<1x8x64xf32>
    %356 = vector.shape_cast %355 : vector<1x8x64xf32> to vector<8x64xf32>
    %357 = vector.extract_strided_slice %353 {offsets = [0, 0], sizes = [8, 64], strides = [1, 1]} : vector<8x128xf32> to vector<8x64xf32>
    %358 = arith.addf %356, %357 : vector<8x64xf32>
    %359 = arith.index_cast %351 : i32 to index
    %c0_125 = arith.constant 0 : index
    %c0_126 = arith.constant 0 : index
    %360 = vector.load %arg9[%359, %c0_125, %c0_126] : memref<8x8x64xf32, #tpu.memory_space<vmem>>, vector<1x8x64xf32>
    %361 = vector.shape_cast %360 : vector<1x8x64xf32> to vector<8x64xf32>
    %362 = vector.extract_strided_slice %353 {offsets = [0, 64], sizes = [8, 64], strides = [1, 1]} : vector<8x128xf32> to vector<8x64xf32>
    %363 = arith.addf %361, %362 : vector<8x64xf32>
    %364 = arith.index_cast %c3_i32 : i32 to index
    %c0_127 = arith.constant 0 : index
    %c0_128 = arith.constant 0 : index
    %365 = vector.load %arg1[%364, %c0_127, %c0_128] : memref<8x8x1xf32, #tpu.memory_space<vmem>>, vector<1x8x1xf32>
    %366 = vector.shape_cast %365 : vector<1x8x1xf32> to vector<8x1xf32>
    %367 = vector.shape_cast %366 : vector<8x1xf32> to vector<8x1xf32>
    %368 = vector.broadcast %367 : vector<8x1xf32> to vector<8x16xf32>
    %cst_129 = arith.constant 1.000000e+00 : f32
    %369 = vector.broadcast %cst_129 : f32 to vector<8x16xf32>
    %370 = arith.subf %369, %368 : vector<8x16xf32>
    %371 = vector.extract_strided_slice %358 {offsets = [0, 0], sizes = [8, 16], strides = [1, 1]} : vector<8x64xf32> to vector<8x16xf32>
    %cst_130 = arith.constant 5.000000e-01 : f32
    %372 = vector.broadcast %cst_130 : f32 to vector<8x16xf32>
    %373 = arith.mulf %372, %371 : vector<8x16xf32>
    %374 = math.tanh %373 : vector<8x16xf32>
    %cst_131 = arith.constant 5.000000e-01 : f32
    %375 = vector.broadcast %cst_131 : f32 to vector<8x16xf32>
    %376 = arith.mulf %375, %374 : vector<8x16xf32>
    %cst_132 = arith.constant 5.000000e-01 : f32
    %377 = vector.broadcast %cst_132 : f32 to vector<8x16xf32>
    %378 = arith.addf %376, %377 : vector<8x16xf32>
    %379 = vector.extract_strided_slice %358 {offsets = [0, 16], sizes = [8, 16], strides = [1, 1]} : vector<8x64xf32> to vector<8x16xf32>
    %cst_133 = arith.constant 5.000000e-01 : f32
    %380 = vector.broadcast %cst_133 : f32 to vector<8x16xf32>
    %381 = arith.mulf %380, %379 : vector<8x16xf32>
    %382 = math.tanh %381 : vector<8x16xf32>
    %cst_134 = arith.constant 5.000000e-01 : f32
    %383 = vector.broadcast %cst_134 : f32 to vector<8x16xf32>
    %384 = arith.mulf %383, %382 : vector<8x16xf32>
    %cst_135 = arith.constant 5.000000e-01 : f32
    %385 = vector.broadcast %cst_135 : f32 to vector<8x16xf32>
    %386 = arith.addf %384, %385 : vector<8x16xf32>
    %387 = vector.extract_strided_slice %358 {offsets = [0, 32], sizes = [8, 16], strides = [1, 1]} : vector<8x64xf32> to vector<8x16xf32>
    %388 = math.tanh %387 : vector<8x16xf32>
    %389 = vector.extract_strided_slice %358 {offsets = [0, 48], sizes = [8, 16], strides = [1, 1]} : vector<8x64xf32> to vector<8x16xf32>
    %cst_136 = arith.constant 5.000000e-01 : f32
    %390 = vector.broadcast %cst_136 : f32 to vector<8x16xf32>
    %391 = arith.mulf %390, %389 : vector<8x16xf32>
    %392 = math.tanh %391 : vector<8x16xf32>
    %cst_137 = arith.constant 5.000000e-01 : f32
    %393 = vector.broadcast %cst_137 : f32 to vector<8x16xf32>
    %394 = arith.mulf %393, %392 : vector<8x16xf32>
    %cst_138 = arith.constant 5.000000e-01 : f32
    %395 = vector.broadcast %cst_138 : f32 to vector<8x16xf32>
    %396 = arith.addf %394, %395 : vector<8x16xf32>
    %397 = arith.mulf %386, %293 : vector<8x16xf32>
    %398 = arith.mulf %378, %388 : vector<8x16xf32>
    %399 = arith.addf %397, %398 : vector<8x16xf32>
    %400 = math.tanh %399 : vector<8x16xf32>
    %401 = arith.mulf %396, %400 : vector<8x16xf32>
    %402 = arith.mulf %368, %399 : vector<8x16xf32>
    %403 = arith.mulf %370, %293 : vector<8x16xf32>
    %404 = arith.addf %402, %403 : vector<8x16xf32>
    %405 = arith.mulf %368, %401 : vector<8x16xf32>
    %406 = arith.mulf %370, %296 : vector<8x16xf32>
    %407 = arith.addf %405, %406 : vector<8x16xf32>
    %408 = arith.mulf %368, %401 : vector<8x16xf32>
    %409 = arith.index_cast %c3_i32 : i32 to index
    %c0_139 = arith.constant 0 : index
    %c0_140 = arith.constant 0 : index
    %410 = vector.load %arg10[%409, %c0_139, %c0_140] : memref<8x8x16xf32, #tpu.memory_space<vmem>>, vector<1x8x16xf32>
    %411 = vector.shape_cast %410 : vector<1x8x16xf32> to vector<8x16xf32>
    %412 = vector.shape_cast %408 : vector<8x16xf32> to vector<1x8x16xf32>
    tpu.vector_store %arg10[%409, %c0_139, %c0_140], %412 {strides = array<i32>} : memref<8x8x16xf32, #tpu.memory_space<vmem>>, vector<1x8x16xf32>,
    %413 = arith.index_cast %351 : i32 to index
    %c0_141 = arith.constant 0 : index
    %c0_142 = arith.constant 0 : index
    %414 = vector.load %arg1[%413, %c0_141, %c0_142] : memref<8x8x1xf32, #tpu.memory_space<vmem>>, vector<1x8x1xf32>
    %415 = vector.shape_cast %414 : vector<1x8x1xf32> to vector<8x1xf32>
    %416 = vector.shape_cast %415 : vector<8x1xf32> to vector<8x1xf32>
    %417 = vector.broadcast %416 : vector<8x1xf32> to vector<8x16xf32>
    %cst_143 = arith.constant 1.000000e+00 : f32
    %418 = vector.broadcast %cst_143 : f32 to vector<8x16xf32>
    %419 = arith.subf %418, %417 : vector<8x16xf32>
    %420 = vector.extract_strided_slice %363 {offsets = [0, 0], sizes = [8, 16], strides = [1, 1]} : vector<8x64xf32> to vector<8x16xf32>
    %cst_144 = arith.constant 5.000000e-01 : f32
    %421 = vector.broadcast %cst_144 : f32 to vector<8x16xf32>
    %422 = arith.mulf %421, %420 : vector<8x16xf32>
    %423 = math.tanh %422 : vector<8x16xf32>
    %cst_145 = arith.constant 5.000000e-01 : f32
    %424 = vector.broadcast %cst_145 : f32 to vector<8x16xf32>
    %425 = arith.mulf %424, %423 : vector<8x16xf32>
    %cst_146 = arith.constant 5.000000e-01 : f32
    %426 = vector.broadcast %cst_146 : f32 to vector<8x16xf32>
    %427 = arith.addf %425, %426 : vector<8x16xf32>
    %428 = vector.extract_strided_slice %363 {offsets = [0, 16], sizes = [8, 16], strides = [1, 1]} : vector<8x64xf32> to vector<8x16xf32>
    %cst_147 = arith.constant 5.000000e-01 : f32
    %429 = vector.broadcast %cst_147 : f32 to vector<8x16xf32>
    %430 = arith.mulf %429, %428 : vector<8x16xf32>
    %431 = math.tanh %430 : vector<8x16xf32>
    %cst_148 = arith.constant 5.000000e-01 : f32
    %432 = vector.broadcast %cst_148 : f32 to vector<8x16xf32>
    %433 = arith.mulf %432, %431 : vector<8x16xf32>
    %cst_149 = arith.constant 5.000000e-01 : f32
    %434 = vector.broadcast %cst_149 : f32 to vector<8x16xf32>
    %435 = arith.addf %433, %434 : vector<8x16xf32>
    %436 = vector.extract_strided_slice %363 {offsets = [0, 32], sizes = [8, 16], strides = [1, 1]} : vector<8x64xf32> to vector<8x16xf32>
    %437 = math.tanh %436 : vector<8x16xf32>
    %438 = vector.extract_strided_slice %363 {offsets = [0, 48], sizes = [8, 16], strides = [1, 1]} : vector<8x64xf32> to vector<8x16xf32>
    %cst_150 = arith.constant 5.000000e-01 : f32
    %439 = vector.broadcast %cst_150 : f32 to vector<8x16xf32>
    %440 = arith.mulf %439, %438 : vector<8x16xf32>
    %441 = math.tanh %440 : vector<8x16xf32>
    %cst_151 = arith.constant 5.000000e-01 : f32
    %442 = vector.broadcast %cst_151 : f32 to vector<8x16xf32>
    %443 = arith.mulf %442, %441 : vector<8x16xf32>
    %cst_152 = arith.constant 5.000000e-01 : f32
    %444 = vector.broadcast %cst_152 : f32 to vector<8x16xf32>
    %445 = arith.addf %443, %444 : vector<8x16xf32>
    %446 = arith.mulf %435, %342 : vector<8x16xf32>
    %447 = arith.mulf %427, %437 : vector<8x16xf32>
    %448 = arith.addf %446, %447 : vector<8x16xf32>
    %449 = math.tanh %448 : vector<8x16xf32>
    %450 = arith.mulf %445, %449 : vector<8x16xf32>
    %451 = arith.mulf %417, %448 : vector<8x16xf32>
    %452 = arith.mulf %419, %342 : vector<8x16xf32>
    %453 = arith.addf %451, %452 : vector<8x16xf32>
    %454 = arith.mulf %417, %450 : vector<8x16xf32>
    %455 = arith.mulf %419, %345 : vector<8x16xf32>
    %456 = arith.addf %454, %455 : vector<8x16xf32>
    %457 = arith.mulf %417, %450 : vector<8x16xf32>
    %458 = arith.index_cast %351 : i32 to index
    %c0_153 = arith.constant 0 : index
    %c0_154 = arith.constant 0 : index
    %459 = vector.load %arg11[%458, %c0_153, %c0_154] : memref<8x8x16xf32, #tpu.memory_space<vmem>>, vector<1x8x16xf32>
    %460 = vector.shape_cast %459 : vector<1x8x16xf32> to vector<8x16xf32>
    %461 = vector.shape_cast %457 : vector<8x16xf32> to vector<1x8x16xf32>
    tpu.vector_store %arg11[%458, %c0_153, %c0_154], %461 {strides = array<i32>} : memref<8x8x16xf32, #tpu.memory_space<vmem>>, vector<1x8x16xf32>,
    %c4_i32 = arith.constant 4 : i32
    %c7_i32_155 = arith.constant 7 : i32
    %462 = arith.subi %c7_i32_155, %c4_i32 : i32
    %463 = tpu.concatenate %407, %456 in 1 : vector<8x16xf32>, vector<8x16xf32> -> vector<8x32xf32>
    %cst_156 = arith.constant dense<0.000000e+00> : vector<8x128xf32>
    %464 = tpu.matmul %463, %16, %cst_156 {dimension_numbers = #tpu.dot_dimension_numbers<[1], [0], [0], [1], [0, 0, 1, 1], [], []>} : vector<8x32xf32>, vector<32x128xf32>, vector<8x128xf32> -> vector<8x128xf32>
    %465 = arith.index_cast %c4_i32 : i32 to index
    %c0_157 = arith.constant 0 : index
    %c0_158 = arith.constant 0 : index
    %466 = vector.load %arg8[%465, %c0_157, %c0_158] : memref<8x8x64xf32, #tpu.memory_space<vmem>>, vector<1x8x64xf32>
    %467 = vector.shape_cast %466 : vector<1x8x64xf32> to vector<8x64xf32>
    %468 = vector.extract_strided_slice %464 {offsets = [0, 0], sizes = [8, 64], strides = [1, 1]} : vector<8x128xf32> to vector<8x64xf32>
    %469 = arith.addf %467, %468 : vector<8x64xf32>
    %470 = arith.index_cast %462 : i32 to index
    %c0_159 = arith.constant 0 : index
    %c0_160 = arith.constant 0 : index
    %471 = vector.load %arg9[%470, %c0_159, %c0_160] : memref<8x8x64xf32, #tpu.memory_space<vmem>>, vector<1x8x64xf32>
    %472 = vector.shape_cast %471 : vector<1x8x64xf32> to vector<8x64xf32>
    %473 = vector.extract_strided_slice %464 {offsets = [0, 64], sizes = [8, 64], strides = [1, 1]} : vector<8x128xf32> to vector<8x64xf32>
    %474 = arith.addf %472, %473 : vector<8x64xf32>
    %475 = arith.index_cast %c4_i32 : i32 to index
    %c0_161 = arith.constant 0 : index
    %c0_162 = arith.constant 0 : index
    %476 = vector.load %arg1[%475, %c0_161, %c0_162] : memref<8x8x1xf32, #tpu.memory_space<vmem>>, vector<1x8x1xf32>
    %477 = vector.shape_cast %476 : vector<1x8x1xf32> to vector<8x1xf32>
    %478 = vector.shape_cast %477 : vector<8x1xf32> to vector<8x1xf32>
    %479 = vector.broadcast %478 : vector<8x1xf32> to vector<8x16xf32>
    %cst_163 = arith.constant 1.000000e+00 : f32
    %480 = vector.broadcast %cst_163 : f32 to vector<8x16xf32>
    %481 = arith.subf %480, %479 : vector<8x16xf32>
    %482 = vector.extract_strided_slice %469 {offsets = [0, 0], sizes = [8, 16], strides = [1, 1]} : vector<8x64xf32> to vector<8x16xf32>
    %cst_164 = arith.constant 5.000000e-01 : f32
    %483 = vector.broadcast %cst_164 : f32 to vector<8x16xf32>
    %484 = arith.mulf %483, %482 : vector<8x16xf32>
    %485 = math.tanh %484 : vector<8x16xf32>
    %cst_165 = arith.constant 5.000000e-01 : f32
    %486 = vector.broadcast %cst_165 : f32 to vector<8x16xf32>
    %487 = arith.mulf %486, %485 : vector<8x16xf32>
    %cst_166 = arith.constant 5.000000e-01 : f32
    %488 = vector.broadcast %cst_166 : f32 to vector<8x16xf32>
    %489 = arith.addf %487, %488 : vector<8x16xf32>
    %490 = vector.extract_strided_slice %469 {offsets = [0, 16], sizes = [8, 16], strides = [1, 1]} : vector<8x64xf32> to vector<8x16xf32>
    %cst_167 = arith.constant 5.000000e-01 : f32
    %491 = vector.broadcast %cst_167 : f32 to vector<8x16xf32>
    %492 = arith.mulf %491, %490 : vector<8x16xf32>
    %493 = math.tanh %492 : vector<8x16xf32>
    %cst_168 = arith.constant 5.000000e-01 : f32
    %494 = vector.broadcast %cst_168 : f32 to vector<8x16xf32>
    %495 = arith.mulf %494, %493 : vector<8x16xf32>
    %cst_169 = arith.constant 5.000000e-01 : f32
    %496 = vector.broadcast %cst_169 : f32 to vector<8x16xf32>
    %497 = arith.addf %495, %496 : vector<8x16xf32>
    %498 = vector.extract_strided_slice %469 {offsets = [0, 32], sizes = [8, 16], strides = [1, 1]} : vector<8x64xf32> to vector<8x16xf32>
    %499 = math.tanh %498 : vector<8x16xf32>
    %500 = vector.extract_strided_slice %469 {offsets = [0, 48], sizes = [8, 16], strides = [1, 1]} : vector<8x64xf32> to vector<8x16xf32>
    %cst_170 = arith.constant 5.000000e-01 : f32
    %501 = vector.broadcast %cst_170 : f32 to vector<8x16xf32>
    %502 = arith.mulf %501, %500 : vector<8x16xf32>
    %503 = math.tanh %502 : vector<8x16xf32>
    %cst_171 = arith.constant 5.000000e-01 : f32
    %504 = vector.broadcast %cst_171 : f32 to vector<8x16xf32>
    %505 = arith.mulf %504, %503 : vector<8x16xf32>
    %cst_172 = arith.constant 5.000000e-01 : f32
    %506 = vector.broadcast %cst_172 : f32 to vector<8x16xf32>
    %507 = arith.addf %505, %506 : vector<8x16xf32>
    %508 = arith.mulf %497, %404 : vector<8x16xf32>
    %509 = arith.mulf %489, %499 : vector<8x16xf32>
    %510 = arith.addf %508, %509 : vector<8x16xf32>
    %511 = math.tanh %510 : vector<8x16xf32>
    %512 = arith.mulf %507, %511 : vector<8x16xf32>
    %513 = arith.mulf %479, %510 : vector<8x16xf32>
    %514 = arith.mulf %481, %404 : vector<8x16xf32>
    %515 = arith.addf %513, %514 : vector<8x16xf32>
    %516 = arith.mulf %479, %512 : vector<8x16xf32>
    %517 = arith.mulf %481, %407 : vector<8x16xf32>
    %518 = arith.addf %516, %517 : vector<8x16xf32>
    %519 = arith.mulf %479, %512 : vector<8x16xf32>
    %520 = arith.index_cast %c4_i32 : i32 to index
    %c0_173 = arith.constant 0 : index
    %c0_174 = arith.constant 0 : index
    %521 = vector.load %arg10[%520, %c0_173, %c0_174] : memref<8x8x16xf32, #tpu.memory_space<vmem>>, vector<1x8x16xf32>
    %522 = vector.shape_cast %521 : vector<1x8x16xf32> to vector<8x16xf32>
    %523 = vector.shape_cast %519 : vector<8x16xf32> to vector<1x8x16xf32>
    tpu.vector_store %arg10[%520, %c0_173, %c0_174], %523 {strides = array<i32>} : memref<8x8x16xf32, #tpu.memory_space<vmem>>, vector<1x8x16xf32>,
    %524 = arith.index_cast %462 : i32 to index
    %c0_175 = arith.constant 0 : index
    %c0_176 = arith.constant 0 : index
    %525 = vector.load %arg1[%524, %c0_175, %c0_176] : memref<8x8x1xf32, #tpu.memory_space<vmem>>, vector<1x8x1xf32>
    %526 = vector.shape_cast %525 : vector<1x8x1xf32> to vector<8x1xf32>
    %527 = vector.shape_cast %526 : vector<8x1xf32> to vector<8x1xf32>
    %528 = vector.broadcast %527 : vector<8x1xf32> to vector<8x16xf32>
    %cst_177 = arith.constant 1.000000e+00 : f32
    %529 = vector.broadcast %cst_177 : f32 to vector<8x16xf32>
    %530 = arith.subf %529, %528 : vector<8x16xf32>
    %531 = vector.extract_strided_slice %474 {offsets = [0, 0], sizes = [8, 16], strides = [1, 1]} : vector<8x64xf32> to vector<8x16xf32>
    %cst_178 = arith.constant 5.000000e-01 : f32
    %532 = vector.broadcast %cst_178 : f32 to vector<8x16xf32>
    %533 = arith.mulf %532, %531 : vector<8x16xf32>
    %534 = math.tanh %533 : vector<8x16xf32>
    %cst_179 = arith.constant 5.000000e-01 : f32
    %535 = vector.broadcast %cst_179 : f32 to vector<8x16xf32>
    %536 = arith.mulf %535, %534 : vector<8x16xf32>
    %cst_180 = arith.constant 5.000000e-01 : f32
    %537 = vector.broadcast %cst_180 : f32 to vector<8x16xf32>
    %538 = arith.addf %536, %537 : vector<8x16xf32>
    %539 = vector.extract_strided_slice %474 {offsets = [0, 16], sizes = [8, 16], strides = [1, 1]} : vector<8x64xf32> to vector<8x16xf32>
    %cst_181 = arith.constant 5.000000e-01 : f32
    %540 = vector.broadcast %cst_181 : f32 to vector<8x16xf32>
    %541 = arith.mulf %540, %539 : vector<8x16xf32>
    %542 = math.tanh %541 : vector<8x16xf32>
    %cst_182 = arith.constant 5.000000e-01 : f32
    %543 = vector.broadcast %cst_182 : f32 to vector<8x16xf32>
    %544 = arith.mulf %543, %542 : vector<8x16xf32>
    %cst_183 = arith.constant 5.000000e-01 : f32
    %545 = vector.broadcast %cst_183 : f32 to vector<8x16xf32>
    %546 = arith.addf %544, %545 : vector<8x16xf32>
    %547 = vector.extract_strided_slice %474 {offsets = [0, 32], sizes = [8, 16], strides = [1, 1]} : vector<8x64xf32> to vector<8x16xf32>
    %548 = math.tanh %547 : vector<8x16xf32>
    %549 = vector.extract_strided_slice %474 {offsets = [0, 48], sizes = [8, 16], strides = [1, 1]} : vector<8x64xf32> to vector<8x16xf32>
    %cst_184 = arith.constant 5.000000e-01 : f32
    %550 = vector.broadcast %cst_184 : f32 to vector<8x16xf32>
    %551 = arith.mulf %550, %549 : vector<8x16xf32>
    %552 = math.tanh %551 : vector<8x16xf32>
    %cst_185 = arith.constant 5.000000e-01 : f32
    %553 = vector.broadcast %cst_185 : f32 to vector<8x16xf32>
    %554 = arith.mulf %553, %552 : vector<8x16xf32>
    %cst_186 = arith.constant 5.000000e-01 : f32
    %555 = vector.broadcast %cst_186 : f32 to vector<8x16xf32>
    %556 = arith.addf %554, %555 : vector<8x16xf32>
    %557 = arith.mulf %546, %453 : vector<8x16xf32>
    %558 = arith.mulf %538, %548 : vector<8x16xf32>
    %559 = arith.addf %557, %558 : vector<8x16xf32>
    %560 = math.tanh %559 : vector<8x16xf32>
    %561 = arith.mulf %556, %560 : vector<8x16xf32>
    %562 = arith.mulf %528, %559 : vector<8x16xf32>
    %563 = arith.mulf %530, %453 : vector<8x16xf32>
    %564 = arith.addf %562, %563 : vector<8x16xf32>
    %565 = arith.mulf %528, %561 : vector<8x16xf32>
    %566 = arith.mulf %530, %456 : vector<8x16xf32>
    %567 = arith.addf %565, %566 : vector<8x16xf32>
    %568 = arith.mulf %528, %561 : vector<8x16xf32>
    %569 = arith.index_cast %462 : i32 to index
    %c0_187 = arith.constant 0 : index
    %c0_188 = arith.constant 0 : index
    %570 = vector.load %arg11[%569, %c0_187, %c0_188] : memref<8x8x16xf32, #tpu.memory_space<vmem>>, vector<1x8x16xf32>
    %571 = vector.shape_cast %570 : vector<1x8x16xf32> to vector<8x16xf32>
    %572 = vector.shape_cast %568 : vector<8x16xf32> to vector<1x8x16xf32>
    tpu.vector_store %arg11[%569, %c0_187, %c0_188], %572 {strides = array<i32>} : memref<8x8x16xf32, #tpu.memory_space<vmem>>, vector<1x8x16xf32>,
    %c5_i32 = arith.constant 5 : i32
    %c7_i32_189 = arith.constant 7 : i32
    %573 = arith.subi %c7_i32_189, %c5_i32 : i32
    %574 = tpu.concatenate %518, %567 in 1 : vector<8x16xf32>, vector<8x16xf32> -> vector<8x32xf32>
    %cst_190 = arith.constant dense<0.000000e+00> : vector<8x128xf32>
    %575 = tpu.matmul %574, %16, %cst_190 {dimension_numbers = #tpu.dot_dimension_numbers<[1], [0], [0], [1], [0, 0, 1, 1], [], []>} : vector<8x32xf32>, vector<32x128xf32>, vector<8x128xf32> -> vector<8x128xf32>
    %576 = arith.index_cast %c5_i32 : i32 to index
    %c0_191 = arith.constant 0 : index
    %c0_192 = arith.constant 0 : index
    %577 = vector.load %arg8[%576, %c0_191, %c0_192] : memref<8x8x64xf32, #tpu.memory_space<vmem>>, vector<1x8x64xf32>
    %578 = vector.shape_cast %577 : vector<1x8x64xf32> to vector<8x64xf32>
    %579 = vector.extract_strided_slice %575 {offsets = [0, 0], sizes = [8, 64], strides = [1, 1]} : vector<8x128xf32> to vector<8x64xf32>
    %580 = arith.addf %578, %579 : vector<8x64xf32>
    %581 = arith.index_cast %573 : i32 to index
    %c0_193 = arith.constant 0 : index
    %c0_194 = arith.constant 0 : index
    %582 = vector.load %arg9[%581, %c0_193, %c0_194] : memref<8x8x64xf32, #tpu.memory_space<vmem>>, vector<1x8x64xf32>
    %583 = vector.shape_cast %582 : vector<1x8x64xf32> to vector<8x64xf32>
    %584 = vector.extract_strided_slice %575 {offsets = [0, 64], sizes = [8, 64], strides = [1, 1]} : vector<8x128xf32> to vector<8x64xf32>
    %585 = arith.addf %583, %584 : vector<8x64xf32>
    %586 = arith.index_cast %c5_i32 : i32 to index
    %c0_195 = arith.constant 0 : index
    %c0_196 = arith.constant 0 : index
    %587 = vector.load %arg1[%586, %c0_195, %c0_196] : memref<8x8x1xf32, #tpu.memory_space<vmem>>, vector<1x8x1xf32>
    %588 = vector.shape_cast %587 : vector<1x8x1xf32> to vector<8x1xf32>
    %589 = vector.shape_cast %588 : vector<8x1xf32> to vector<8x1xf32>
    %590 = vector.broadcast %589 : vector<8x1xf32> to vector<8x16xf32>
    %cst_197 = arith.constant 1.000000e+00 : f32
    %591 = vector.broadcast %cst_197 : f32 to vector<8x16xf32>
    %592 = arith.subf %591, %590 : vector<8x16xf32>
    %593 = vector.extract_strided_slice %580 {offsets = [0, 0], sizes = [8, 16], strides = [1, 1]} : vector<8x64xf32> to vector<8x16xf32>
    %cst_198 = arith.constant 5.000000e-01 : f32
    %594 = vector.broadcast %cst_198 : f32 to vector<8x16xf32>
    %595 = arith.mulf %594, %593 : vector<8x16xf32>
    %596 = math.tanh %595 : vector<8x16xf32>
    %cst_199 = arith.constant 5.000000e-01 : f32
    %597 = vector.broadcast %cst_199 : f32 to vector<8x16xf32>
    %598 = arith.mulf %597, %596 : vector<8x16xf32>
    %cst_200 = arith.constant 5.000000e-01 : f32
    %599 = vector.broadcast %cst_200 : f32 to vector<8x16xf32>
    %600 = arith.addf %598, %599 : vector<8x16xf32>
    %601 = vector.extract_strided_slice %580 {offsets = [0, 16], sizes = [8, 16], strides = [1, 1]} : vector<8x64xf32> to vector<8x16xf32>
    %cst_201 = arith.constant 5.000000e-01 : f32
    %602 = vector.broadcast %cst_201 : f32 to vector<8x16xf32>
    %603 = arith.mulf %602, %601 : vector<8x16xf32>
    %604 = math.tanh %603 : vector<8x16xf32>
    %cst_202 = arith.constant 5.000000e-01 : f32
    %605 = vector.broadcast %cst_202 : f32 to vector<8x16xf32>
    %606 = arith.mulf %605, %604 : vector<8x16xf32>
    %cst_203 = arith.constant 5.000000e-01 : f32
    %607 = vector.broadcast %cst_203 : f32 to vector<8x16xf32>
    %608 = arith.addf %606, %607 : vector<8x16xf32>
    %609 = vector.extract_strided_slice %580 {offsets = [0, 32], sizes = [8, 16], strides = [1, 1]} : vector<8x64xf32> to vector<8x16xf32>
    %610 = math.tanh %609 : vector<8x16xf32>
    %611 = vector.extract_strided_slice %580 {offsets = [0, 48], sizes = [8, 16], strides = [1, 1]} : vector<8x64xf32> to vector<8x16xf32>
    %cst_204 = arith.constant 5.000000e-01 : f32
    %612 = vector.broadcast %cst_204 : f32 to vector<8x16xf32>
    %613 = arith.mulf %612, %611 : vector<8x16xf32>
    %614 = math.tanh %613 : vector<8x16xf32>
    %cst_205 = arith.constant 5.000000e-01 : f32
    %615 = vector.broadcast %cst_205 : f32 to vector<8x16xf32>
    %616 = arith.mulf %615, %614 : vector<8x16xf32>
    %cst_206 = arith.constant 5.000000e-01 : f32
    %617 = vector.broadcast %cst_206 : f32 to vector<8x16xf32>
    %618 = arith.addf %616, %617 : vector<8x16xf32>
    %619 = arith.mulf %608, %515 : vector<8x16xf32>
    %620 = arith.mulf %600, %610 : vector<8x16xf32>
    %621 = arith.addf %619, %620 : vector<8x16xf32>
    %622 = math.tanh %621 : vector<8x16xf32>
    %623 = arith.mulf %618, %622 : vector<8x16xf32>
    %624 = arith.mulf %590, %621 : vector<8x16xf32>
    %625 = arith.mulf %592, %515 : vector<8x16xf32>
    %626 = arith.addf %624, %625 : vector<8x16xf32>
    %627 = arith.mulf %590, %623 : vector<8x16xf32>
    %628 = arith.mulf %592, %518 : vector<8x16xf32>
    %629 = arith.addf %627, %628 : vector<8x16xf32>
    %630 = arith.mulf %590, %623 : vector<8x16xf32>
    %631 = arith.index_cast %c5_i32 : i32 to index
    %c0_207 = arith.constant 0 : index
    %c0_208 = arith.constant 0 : index
    %632 = vector.load %arg10[%631, %c0_207, %c0_208] : memref<8x8x16xf32, #tpu.memory_space<vmem>>, vector<1x8x16xf32>
    %633 = vector.shape_cast %632 : vector<1x8x16xf32> to vector<8x16xf32>
    %634 = vector.shape_cast %630 : vector<8x16xf32> to vector<1x8x16xf32>
    tpu.vector_store %arg10[%631, %c0_207, %c0_208], %634 {strides = array<i32>} : memref<8x8x16xf32, #tpu.memory_space<vmem>>, vector<1x8x16xf32>,
    %635 = arith.index_cast %573 : i32 to index
    %c0_209 = arith.constant 0 : index
    %c0_210 = arith.constant 0 : index
    %636 = vector.load %arg1[%635, %c0_209, %c0_210] : memref<8x8x1xf32, #tpu.memory_space<vmem>>, vector<1x8x1xf32>
    %637 = vector.shape_cast %636 : vector<1x8x1xf32> to vector<8x1xf32>
    %638 = vector.shape_cast %637 : vector<8x1xf32> to vector<8x1xf32>
    %639 = vector.broadcast %638 : vector<8x1xf32> to vector<8x16xf32>
    %cst_211 = arith.constant 1.000000e+00 : f32
    %640 = vector.broadcast %cst_211 : f32 to vector<8x16xf32>
    %641 = arith.subf %640, %639 : vector<8x16xf32>
    %642 = vector.extract_strided_slice %585 {offsets = [0, 0], sizes = [8, 16], strides = [1, 1]} : vector<8x64xf32> to vector<8x16xf32>
    %cst_212 = arith.constant 5.000000e-01 : f32
    %643 = vector.broadcast %cst_212 : f32 to vector<8x16xf32>
    %644 = arith.mulf %643, %642 : vector<8x16xf32>
    %645 = math.tanh %644 : vector<8x16xf32>
    %cst_213 = arith.constant 5.000000e-01 : f32
    %646 = vector.broadcast %cst_213 : f32 to vector<8x16xf32>
    %647 = arith.mulf %646, %645 : vector<8x16xf32>
    %cst_214 = arith.constant 5.000000e-01 : f32
    %648 = vector.broadcast %cst_214 : f32 to vector<8x16xf32>
    %649 = arith.addf %647, %648 : vector<8x16xf32>
    %650 = vector.extract_strided_slice %585 {offsets = [0, 16], sizes = [8, 16], strides = [1, 1]} : vector<8x64xf32> to vector<8x16xf32>
    %cst_215 = arith.constant 5.000000e-01 : f32
    %651 = vector.broadcast %cst_215 : f32 to vector<8x16xf32>
    %652 = arith.mulf %651, %650 : vector<8x16xf32>
    %653 = math.tanh %652 : vector<8x16xf32>
    %cst_216 = arith.constant 5.000000e-01 : f32
    %654 = vector.broadcast %cst_216 : f32 to vector<8x16xf32>
    %655 = arith.mulf %654, %653 : vector<8x16xf32>
    %cst_217 = arith.constant 5.000000e-01 : f32
    %656 = vector.broadcast %cst_217 : f32 to vector<8x16xf32>
    %657 = arith.addf %655, %656 : vector<8x16xf32>
    %658 = vector.extract_strided_slice %585 {offsets = [0, 32], sizes = [8, 16], strides = [1, 1]} : vector<8x64xf32> to vector<8x16xf32>
    %659 = math.tanh %658 : vector<8x16xf32>
    %660 = vector.extract_strided_slice %585 {offsets = [0, 48], sizes = [8, 16], strides = [1, 1]} : vector<8x64xf32> to vector<8x16xf32>
    %cst_218 = arith.constant 5.000000e-01 : f32
    %661 = vector.broadcast %cst_218 : f32 to vector<8x16xf32>
    %662 = arith.mulf %661, %660 : vector<8x16xf32>
    %663 = math.tanh %662 : vector<8x16xf32>
    %cst_219 = arith.constant 5.000000e-01 : f32
    %664 = vector.broadcast %cst_219 : f32 to vector<8x16xf32>
    %665 = arith.mulf %664, %663 : vector<8x16xf32>
    %cst_220 = arith.constant 5.000000e-01 : f32
    %666 = vector.broadcast %cst_220 : f32 to vector<8x16xf32>
    %667 = arith.addf %665, %666 : vector<8x16xf32>
    %668 = arith.mulf %657, %564 : vector<8x16xf32>
    %669 = arith.mulf %649, %659 : vector<8x16xf32>
    %670 = arith.addf %668, %669 : vector<8x16xf32>
    %671 = math.tanh %670 : vector<8x16xf32>
    %672 = arith.mulf %667, %671 : vector<8x16xf32>
    %673 = arith.mulf %639, %670 : vector<8x16xf32>
    %674 = arith.mulf %641, %564 : vector<8x16xf32>
    %675 = arith.addf %673, %674 : vector<8x16xf32>
    %676 = arith.mulf %639, %672 : vector<8x16xf32>
    %677 = arith.mulf %641, %567 : vector<8x16xf32>
    %678 = arith.addf %676, %677 : vector<8x16xf32>
    %679 = arith.mulf %639, %672 : vector<8x16xf32>
    %680 = arith.index_cast %573 : i32 to index
    %c0_221 = arith.constant 0 : index
    %c0_222 = arith.constant 0 : index
    %681 = vector.load %arg11[%680, %c0_221, %c0_222] : memref<8x8x16xf32, #tpu.memory_space<vmem>>, vector<1x8x16xf32>
    %682 = vector.shape_cast %681 : vector<1x8x16xf32> to vector<8x16xf32>
    %683 = vector.shape_cast %679 : vector<8x16xf32> to vector<1x8x16xf32>
    tpu.vector_store %arg11[%680, %c0_221, %c0_222], %683 {strides = array<i32>} : memref<8x8x16xf32, #tpu.memory_space<vmem>>, vector<1x8x16xf32>,
    %c6_i32 = arith.constant 6 : i32
    %c7_i32_223 = arith.constant 7 : i32
    %684 = arith.subi %c7_i32_223, %c6_i32 : i32
    %685 = tpu.concatenate %629, %678 in 1 : vector<8x16xf32>, vector<8x16xf32> -> vector<8x32xf32>
    %cst_224 = arith.constant dense<0.000000e+00> : vector<8x128xf32>
    %686 = tpu.matmul %685, %16, %cst_224 {dimension_numbers = #tpu.dot_dimension_numbers<[1], [0], [0], [1], [0, 0, 1, 1], [], []>} : vector<8x32xf32>, vector<32x128xf32>, vector<8x128xf32> -> vector<8x128xf32>
    %687 = arith.index_cast %c6_i32 : i32 to index
    %c0_225 = arith.constant 0 : index
    %c0_226 = arith.constant 0 : index
    %688 = vector.load %arg8[%687, %c0_225, %c0_226] : memref<8x8x64xf32, #tpu.memory_space<vmem>>, vector<1x8x64xf32>
    %689 = vector.shape_cast %688 : vector<1x8x64xf32> to vector<8x64xf32>
    %690 = vector.extract_strided_slice %686 {offsets = [0, 0], sizes = [8, 64], strides = [1, 1]} : vector<8x128xf32> to vector<8x64xf32>
    %691 = arith.addf %689, %690 : vector<8x64xf32>
    %692 = arith.index_cast %684 : i32 to index
    %c0_227 = arith.constant 0 : index
    %c0_228 = arith.constant 0 : index
    %693 = vector.load %arg9[%692, %c0_227, %c0_228] : memref<8x8x64xf32, #tpu.memory_space<vmem>>, vector<1x8x64xf32>
    %694 = vector.shape_cast %693 : vector<1x8x64xf32> to vector<8x64xf32>
    %695 = vector.extract_strided_slice %686 {offsets = [0, 64], sizes = [8, 64], strides = [1, 1]} : vector<8x128xf32> to vector<8x64xf32>
    %696 = arith.addf %694, %695 : vector<8x64xf32>
    %697 = arith.index_cast %c6_i32 : i32 to index
    %c0_229 = arith.constant 0 : index
    %c0_230 = arith.constant 0 : index
    %698 = vector.load %arg1[%697, %c0_229, %c0_230] : memref<8x8x1xf32, #tpu.memory_space<vmem>>, vector<1x8x1xf32>
    %699 = vector.shape_cast %698 : vector<1x8x1xf32> to vector<8x1xf32>
    %700 = vector.shape_cast %699 : vector<8x1xf32> to vector<8x1xf32>
    %701 = vector.broadcast %700 : vector<8x1xf32> to vector<8x16xf32>
    %cst_231 = arith.constant 1.000000e+00 : f32
    %702 = vector.broadcast %cst_231 : f32 to vector<8x16xf32>
    %703 = arith.subf %702, %701 : vector<8x16xf32>
    %704 = vector.extract_strided_slice %691 {offsets = [0, 0], sizes = [8, 16], strides = [1, 1]} : vector<8x64xf32> to vector<8x16xf32>
    %cst_232 = arith.constant 5.000000e-01 : f32
    %705 = vector.broadcast %cst_232 : f32 to vector<8x16xf32>
    %706 = arith.mulf %705, %704 : vector<8x16xf32>
    %707 = math.tanh %706 : vector<8x16xf32>
    %cst_233 = arith.constant 5.000000e-01 : f32
    %708 = vector.broadcast %cst_233 : f32 to vector<8x16xf32>
    %709 = arith.mulf %708, %707 : vector<8x16xf32>
    %cst_234 = arith.constant 5.000000e-01 : f32
    %710 = vector.broadcast %cst_234 : f32 to vector<8x16xf32>
    %711 = arith.addf %709, %710 : vector<8x16xf32>
    %712 = vector.extract_strided_slice %691 {offsets = [0, 16], sizes = [8, 16], strides = [1, 1]} : vector<8x64xf32> to vector<8x16xf32>
    %cst_235 = arith.constant 5.000000e-01 : f32
    %713 = vector.broadcast %cst_235 : f32 to vector<8x16xf32>
    %714 = arith.mulf %713, %712 : vector<8x16xf32>
    %715 = math.tanh %714 : vector<8x16xf32>
    %cst_236 = arith.constant 5.000000e-01 : f32
    %716 = vector.broadcast %cst_236 : f32 to vector<8x16xf32>
    %717 = arith.mulf %716, %715 : vector<8x16xf32>
    %cst_237 = arith.constant 5.000000e-01 : f32
    %718 = vector.broadcast %cst_237 : f32 to vector<8x16xf32>
    %719 = arith.addf %717, %718 : vector<8x16xf32>
    %720 = vector.extract_strided_slice %691 {offsets = [0, 32], sizes = [8, 16], strides = [1, 1]} : vector<8x64xf32> to vector<8x16xf32>
    %721 = math.tanh %720 : vector<8x16xf32>
    %722 = vector.extract_strided_slice %691 {offsets = [0, 48], sizes = [8, 16], strides = [1, 1]} : vector<8x64xf32> to vector<8x16xf32>
    %cst_238 = arith.constant 5.000000e-01 : f32
    %723 = vector.broadcast %cst_238 : f32 to vector<8x16xf32>
    %724 = arith.mulf %723, %722 : vector<8x16xf32>
    %725 = math.tanh %724 : vector<8x16xf32>
    %cst_239 = arith.constant 5.000000e-01 : f32
    %726 = vector.broadcast %cst_239 : f32 to vector<8x16xf32>
    %727 = arith.mulf %726, %725 : vector<8x16xf32>
    %cst_240 = arith.constant 5.000000e-01 : f32
    %728 = vector.broadcast %cst_240 : f32 to vector<8x16xf32>
    %729 = arith.addf %727, %728 : vector<8x16xf32>
    %730 = arith.mulf %719, %626 : vector<8x16xf32>
    %731 = arith.mulf %711, %721 : vector<8x16xf32>
    %732 = arith.addf %730, %731 : vector<8x16xf32>
    %733 = math.tanh %732 : vector<8x16xf32>
    %734 = arith.mulf %729, %733 : vector<8x16xf32>
    %735 = arith.mulf %701, %732 : vector<8x16xf32>
    %736 = arith.mulf %703, %626 : vector<8x16xf32>
    %737 = arith.addf %735, %736 : vector<8x16xf32>
    %738 = arith.mulf %701, %734 : vector<8x16xf32>
    %739 = arith.mulf %703, %629 : vector<8x16xf32>
    %740 = arith.addf %738, %739 : vector<8x16xf32>
    %741 = arith.mulf %701, %734 : vector<8x16xf32>
    %742 = arith.index_cast %c6_i32 : i32 to index
    %c0_241 = arith.constant 0 : index
    %c0_242 = arith.constant 0 : index
    %743 = vector.load %arg10[%742, %c0_241, %c0_242] : memref<8x8x16xf32, #tpu.memory_space<vmem>>, vector<1x8x16xf32>
    %744 = vector.shape_cast %743 : vector<1x8x16xf32> to vector<8x16xf32>
    %745 = vector.shape_cast %741 : vector<8x16xf32> to vector<1x8x16xf32>
    tpu.vector_store %arg10[%742, %c0_241, %c0_242], %745 {strides = array<i32>} : memref<8x8x16xf32, #tpu.memory_space<vmem>>, vector<1x8x16xf32>,
    %746 = arith.index_cast %684 : i32 to index
    %c0_243 = arith.constant 0 : index
    %c0_244 = arith.constant 0 : index
    %747 = vector.load %arg1[%746, %c0_243, %c0_244] : memref<8x8x1xf32, #tpu.memory_space<vmem>>, vector<1x8x1xf32>
    %748 = vector.shape_cast %747 : vector<1x8x1xf32> to vector<8x1xf32>
    %749 = vector.shape_cast %748 : vector<8x1xf32> to vector<8x1xf32>
    %750 = vector.broadcast %749 : vector<8x1xf32> to vector<8x16xf32>
    %cst_245 = arith.constant 1.000000e+00 : f32
    %751 = vector.broadcast %cst_245 : f32 to vector<8x16xf32>
    %752 = arith.subf %751, %750 : vector<8x16xf32>
    %753 = vector.extract_strided_slice %696 {offsets = [0, 0], sizes = [8, 16], strides = [1, 1]} : vector<8x64xf32> to vector<8x16xf32>
    %cst_246 = arith.constant 5.000000e-01 : f32
    %754 = vector.broadcast %cst_246 : f32 to vector<8x16xf32>
    %755 = arith.mulf %754, %753 : vector<8x16xf32>
    %756 = math.tanh %755 : vector<8x16xf32>
    %cst_247 = arith.constant 5.000000e-01 : f32
    %757 = vector.broadcast %cst_247 : f32 to vector<8x16xf32>
    %758 = arith.mulf %757, %756 : vector<8x16xf32>
    %cst_248 = arith.constant 5.000000e-01 : f32
    %759 = vector.broadcast %cst_248 : f32 to vector<8x16xf32>
    %760 = arith.addf %758, %759 : vector<8x16xf32>
    %761 = vector.extract_strided_slice %696 {offsets = [0, 16], sizes = [8, 16], strides = [1, 1]} : vector<8x64xf32> to vector<8x16xf32>
    %cst_249 = arith.constant 5.000000e-01 : f32
    %762 = vector.broadcast %cst_249 : f32 to vector<8x16xf32>
    %763 = arith.mulf %762, %761 : vector<8x16xf32>
    %764 = math.tanh %763 : vector<8x16xf32>
    %cst_250 = arith.constant 5.000000e-01 : f32
    %765 = vector.broadcast %cst_250 : f32 to vector<8x16xf32>
    %766 = arith.mulf %765, %764 : vector<8x16xf32>
    %cst_251 = arith.constant 5.000000e-01 : f32
    %767 = vector.broadcast %cst_251 : f32 to vector<8x16xf32>
    %768 = arith.addf %766, %767 : vector<8x16xf32>
    %769 = vector.extract_strided_slice %696 {offsets = [0, 32], sizes = [8, 16], strides = [1, 1]} : vector<8x64xf32> to vector<8x16xf32>
    %770 = math.tanh %769 : vector<8x16xf32>
    %771 = vector.extract_strided_slice %696 {offsets = [0, 48], sizes = [8, 16], strides = [1, 1]} : vector<8x64xf32> to vector<8x16xf32>
    %cst_252 = arith.constant 5.000000e-01 : f32
    %772 = vector.broadcast %cst_252 : f32 to vector<8x16xf32>
    %773 = arith.mulf %772, %771 : vector<8x16xf32>
    %774 = math.tanh %773 : vector<8x16xf32>
    %cst_253 = arith.constant 5.000000e-01 : f32
    %775 = vector.broadcast %cst_253 : f32 to vector<8x16xf32>
    %776 = arith.mulf %775, %774 : vector<8x16xf32>
    %cst_254 = arith.constant 5.000000e-01 : f32
    %777 = vector.broadcast %cst_254 : f32 to vector<8x16xf32>
    %778 = arith.addf %776, %777 : vector<8x16xf32>
    %779 = arith.mulf %768, %675 : vector<8x16xf32>
    %780 = arith.mulf %760, %770 : vector<8x16xf32>
    %781 = arith.addf %779, %780 : vector<8x16xf32>
    %782 = math.tanh %781 : vector<8x16xf32>
    %783 = arith.mulf %778, %782 : vector<8x16xf32>
    %784 = arith.mulf %750, %781 : vector<8x16xf32>
    %785 = arith.mulf %752, %675 : vector<8x16xf32>
    %786 = arith.addf %784, %785 : vector<8x16xf32>
    %787 = arith.mulf %750, %783 : vector<8x16xf32>
    %788 = arith.mulf %752, %678 : vector<8x16xf32>
    %789 = arith.addf %787, %788 : vector<8x16xf32>
    %790 = arith.mulf %750, %783 : vector<8x16xf32>
    %791 = arith.index_cast %684 : i32 to index
    %c0_255 = arith.constant 0 : index
    %c0_256 = arith.constant 0 : index
    %792 = vector.load %arg11[%791, %c0_255, %c0_256] : memref<8x8x16xf32, #tpu.memory_space<vmem>>, vector<1x8x16xf32>
    %793 = vector.shape_cast %792 : vector<1x8x16xf32> to vector<8x16xf32>
    %794 = vector.shape_cast %790 : vector<8x16xf32> to vector<1x8x16xf32>
    tpu.vector_store %arg11[%791, %c0_255, %c0_256], %794 {strides = array<i32>} : memref<8x8x16xf32, #tpu.memory_space<vmem>>, vector<1x8x16xf32>,
    %c7_i32_257 = arith.constant 7 : i32
    %c7_i32_258 = arith.constant 7 : i32
    %795 = arith.subi %c7_i32_258, %c7_i32_257 : i32
    %796 = tpu.concatenate %740, %789 in 1 : vector<8x16xf32>, vector<8x16xf32> -> vector<8x32xf32>
    %cst_259 = arith.constant dense<0.000000e+00> : vector<8x128xf32>
    %797 = tpu.matmul %796, %16, %cst_259 {dimension_numbers = #tpu.dot_dimension_numbers<[1], [0], [0], [1], [0, 0, 1, 1], [], []>} : vector<8x32xf32>, vector<32x128xf32>, vector<8x128xf32> -> vector<8x128xf32>
    %798 = arith.index_cast %c7_i32_257 : i32 to index
    %c0_260 = arith.constant 0 : index
    %c0_261 = arith.constant 0 : index
    %799 = vector.load %arg8[%798, %c0_260, %c0_261] : memref<8x8x64xf32, #tpu.memory_space<vmem>>, vector<1x8x64xf32>
    %800 = vector.shape_cast %799 : vector<1x8x64xf32> to vector<8x64xf32>
    %801 = vector.extract_strided_slice %797 {offsets = [0, 0], sizes = [8, 64], strides = [1, 1]} : vector<8x128xf32> to vector<8x64xf32>
    %802 = arith.addf %800, %801 : vector<8x64xf32>
    %803 = arith.index_cast %795 : i32 to index
    %c0_262 = arith.constant 0 : index
    %c0_263 = arith.constant 0 : index
    %804 = vector.load %arg9[%803, %c0_262, %c0_263] : memref<8x8x64xf32, #tpu.memory_space<vmem>>, vector<1x8x64xf32>
    %805 = vector.shape_cast %804 : vector<1x8x64xf32> to vector<8x64xf32>
    %806 = vector.extract_strided_slice %797 {offsets = [0, 64], sizes = [8, 64], strides = [1, 1]} : vector<8x128xf32> to vector<8x64xf32>
    %807 = arith.addf %805, %806 : vector<8x64xf32>
    %808 = arith.index_cast %c7_i32_257 : i32 to index
    %c0_264 = arith.constant 0 : index
    %c0_265 = arith.constant 0 : index
    %809 = vector.load %arg1[%808, %c0_264, %c0_265] : memref<8x8x1xf32, #tpu.memory_space<vmem>>, vector<1x8x1xf32>
    %810 = vector.shape_cast %809 : vector<1x8x1xf32> to vector<8x1xf32>
    %811 = vector.shape_cast %810 : vector<8x1xf32> to vector<8x1xf32>
    %812 = vector.broadcast %811 : vector<8x1xf32> to vector<8x16xf32>
    %cst_266 = arith.constant 1.000000e+00 : f32
    %813 = vector.broadcast %cst_266 : f32 to vector<8x16xf32>
    %814 = arith.subf %813, %812 : vector<8x16xf32>
    %815 = vector.extract_strided_slice %802 {offsets = [0, 0], sizes = [8, 16], strides = [1, 1]} : vector<8x64xf32> to vector<8x16xf32>
    %cst_267 = arith.constant 5.000000e-01 : f32
    %816 = vector.broadcast %cst_267 : f32 to vector<8x16xf32>
    %817 = arith.mulf %816, %815 : vector<8x16xf32>
    %818 = math.tanh %817 : vector<8x16xf32>
    %cst_268 = arith.constant 5.000000e-01 : f32
    %819 = vector.broadcast %cst_268 : f32 to vector<8x16xf32>
    %820 = arith.mulf %819, %818 : vector<8x16xf32>
    %cst_269 = arith.constant 5.000000e-01 : f32
    %821 = vector.broadcast %cst_269 : f32 to vector<8x16xf32>
    %822 = arith.addf %820, %821 : vector<8x16xf32>
    %823 = vector.extract_strided_slice %802 {offsets = [0, 16], sizes = [8, 16], strides = [1, 1]} : vector<8x64xf32> to vector<8x16xf32>
    %cst_270 = arith.constant 5.000000e-01 : f32
    %824 = vector.broadcast %cst_270 : f32 to vector<8x16xf32>
    %825 = arith.mulf %824, %823 : vector<8x16xf32>
    %826 = math.tanh %825 : vector<8x16xf32>
    %cst_271 = arith.constant 5.000000e-01 : f32
    %827 = vector.broadcast %cst_271 : f32 to vector<8x16xf32>
    %828 = arith.mulf %827, %826 : vector<8x16xf32>
    %cst_272 = arith.constant 5.000000e-01 : f32
    %829 = vector.broadcast %cst_272 : f32 to vector<8x16xf32>
    %830 = arith.addf %828, %829 : vector<8x16xf32>
    %831 = vector.extract_strided_slice %802 {offsets = [0, 32], sizes = [8, 16], strides = [1, 1]} : vector<8x64xf32> to vector<8x16xf32>
    %832 = math.tanh %831 : vector<8x16xf32>
    %833 = vector.extract_strided_slice %802 {offsets = [0, 48], sizes = [8, 16], strides = [1, 1]} : vector<8x64xf32> to vector<8x16xf32>
    %cst_273 = arith.constant 5.000000e-01 : f32
    %834 = vector.broadcast %cst_273 : f32 to vector<8x16xf32>
    %835 = arith.mulf %834, %833 : vector<8x16xf32>
    %836 = math.tanh %835 : vector<8x16xf32>
    %cst_274 = arith.constant 5.000000e-01 : f32
    %837 = vector.broadcast %cst_274 : f32 to vector<8x16xf32>
    %838 = arith.mulf %837, %836 : vector<8x16xf32>
    %cst_275 = arith.constant 5.000000e-01 : f32
    %839 = vector.broadcast %cst_275 : f32 to vector<8x16xf32>
    %840 = arith.addf %838, %839 : vector<8x16xf32>
    %841 = arith.mulf %830, %737 : vector<8x16xf32>
    %842 = arith.mulf %822, %832 : vector<8x16xf32>
    %843 = arith.addf %841, %842 : vector<8x16xf32>
    %844 = math.tanh %843 : vector<8x16xf32>
    %845 = arith.mulf %840, %844 : vector<8x16xf32>
    %846 = arith.mulf %812, %843 : vector<8x16xf32>
    %847 = arith.mulf %814, %737 : vector<8x16xf32>
    %848 = arith.addf %846, %847 : vector<8x16xf32>
    %849 = arith.mulf %812, %845 : vector<8x16xf32>
    %850 = arith.mulf %814, %740 : vector<8x16xf32>
    %851 = arith.addf %849, %850 : vector<8x16xf32>
    %852 = arith.mulf %812, %845 : vector<8x16xf32>
    %853 = arith.index_cast %c7_i32_257 : i32 to index
    %c0_276 = arith.constant 0 : index
    %c0_277 = arith.constant 0 : index
    %854 = vector.load %arg10[%853, %c0_276, %c0_277] : memref<8x8x16xf32, #tpu.memory_space<vmem>>, vector<1x8x16xf32>
    %855 = vector.shape_cast %854 : vector<1x8x16xf32> to vector<8x16xf32>
    %856 = vector.shape_cast %852 : vector<8x16xf32> to vector<1x8x16xf32>
    tpu.vector_store %arg10[%853, %c0_276, %c0_277], %856 {strides = array<i32>} : memref<8x8x16xf32, #tpu.memory_space<vmem>>, vector<1x8x16xf32>,
    %857 = arith.index_cast %795 : i32 to index
    %c0_278 = arith.constant 0 : index
    %c0_279 = arith.constant 0 : index
    %858 = vector.load %arg1[%857, %c0_278, %c0_279] : memref<8x8x1xf32, #tpu.memory_space<vmem>>, vector<1x8x1xf32>
    %859 = vector.shape_cast %858 : vector<1x8x1xf32> to vector<8x1xf32>
    %860 = vector.shape_cast %859 : vector<8x1xf32> to vector<8x1xf32>
    %861 = vector.broadcast %860 : vector<8x1xf32> to vector<8x16xf32>
    %cst_280 = arith.constant 1.000000e+00 : f32
    %862 = vector.broadcast %cst_280 : f32 to vector<8x16xf32>
    %863 = arith.subf %862, %861 : vector<8x16xf32>
    %864 = vector.extract_strided_slice %807 {offsets = [0, 0], sizes = [8, 16], strides = [1, 1]} : vector<8x64xf32> to vector<8x16xf32>
    %cst_281 = arith.constant 5.000000e-01 : f32
    %865 = vector.broadcast %cst_281 : f32 to vector<8x16xf32>
    %866 = arith.mulf %865, %864 : vector<8x16xf32>
    %867 = math.tanh %866 : vector<8x16xf32>
    %cst_282 = arith.constant 5.000000e-01 : f32
    %868 = vector.broadcast %cst_282 : f32 to vector<8x16xf32>
    %869 = arith.mulf %868, %867 : vector<8x16xf32>
    %cst_283 = arith.constant 5.000000e-01 : f32
    %870 = vector.broadcast %cst_283 : f32 to vector<8x16xf32>
    %871 = arith.addf %869, %870 : vector<8x16xf32>
    %872 = vector.extract_strided_slice %807 {offsets = [0, 16], sizes = [8, 16], strides = [1, 1]} : vector<8x64xf32> to vector<8x16xf32>
    %cst_284 = arith.constant 5.000000e-01 : f32
    %873 = vector.broadcast %cst_284 : f32 to vector<8x16xf32>
    %874 = arith.mulf %873, %872 : vector<8x16xf32>
    %875 = math.tanh %874 : vector<8x16xf32>
    %cst_285 = arith.constant 5.000000e-01 : f32
    %876 = vector.broadcast %cst_285 : f32 to vector<8x16xf32>
    %877 = arith.mulf %876, %875 : vector<8x16xf32>
    %cst_286 = arith.constant 5.000000e-01 : f32
    %878 = vector.broadcast %cst_286 : f32 to vector<8x16xf32>
    %879 = arith.addf %877, %878 : vector<8x16xf32>
    %880 = vector.extract_strided_slice %807 {offsets = [0, 32], sizes = [8, 16], strides = [1, 1]} : vector<8x64xf32> to vector<8x16xf32>
    %881 = math.tanh %880 : vector<8x16xf32>
    %882 = vector.extract_strided_slice %807 {offsets = [0, 48], sizes = [8, 16], strides = [1, 1]} : vector<8x64xf32> to vector<8x16xf32>
    %cst_287 = arith.constant 5.000000e-01 : f32
    %883 = vector.broadcast %cst_287 : f32 to vector<8x16xf32>
    %884 = arith.mulf %883, %882 : vector<8x16xf32>
    %885 = math.tanh %884 : vector<8x16xf32>
    %cst_288 = arith.constant 5.000000e-01 : f32
    %886 = vector.broadcast %cst_288 : f32 to vector<8x16xf32>
    %887 = arith.mulf %886, %885 : vector<8x16xf32>
    %cst_289 = arith.constant 5.000000e-01 : f32
    %888 = vector.broadcast %cst_289 : f32 to vector<8x16xf32>
    %889 = arith.addf %887, %888 : vector<8x16xf32>
    %890 = arith.mulf %879, %786 : vector<8x16xf32>
    %891 = arith.mulf %871, %881 : vector<8x16xf32>
    %892 = arith.addf %890, %891 : vector<8x16xf32>
    %893 = math.tanh %892 : vector<8x16xf32>
    %894 = arith.mulf %889, %893 : vector<8x16xf32>
    %895 = arith.mulf %861, %892 : vector<8x16xf32>
    %896 = arith.mulf %863, %786 : vector<8x16xf32>
    %897 = arith.addf %895, %896 : vector<8x16xf32>
    %898 = arith.mulf %861, %894 : vector<8x16xf32>
    %899 = arith.mulf %863, %789 : vector<8x16xf32>
    %900 = arith.addf %898, %899 : vector<8x16xf32>
    %901 = arith.mulf %861, %894 : vector<8x16xf32>
    %902 = arith.index_cast %795 : i32 to index
    %c0_290 = arith.constant 0 : index
    %c0_291 = arith.constant 0 : index
    %903 = vector.load %arg11[%902, %c0_290, %c0_291] : memref<8x8x16xf32, #tpu.memory_space<vmem>>, vector<1x8x16xf32>
    %904 = vector.shape_cast %903 : vector<1x8x16xf32> to vector<8x16xf32>
    %905 = vector.shape_cast %901 : vector<8x16xf32> to vector<1x8x16xf32>
    tpu.vector_store %arg11[%902, %c0_290, %c0_291], %905 {strides = array<i32>} : memref<8x8x16xf32, #tpu.memory_space<vmem>>, vector<1x8x16xf32>,
    %c8_i32 = arith.constant 8 : i32
    %c0_292 = arith.constant 0 : index
    %c0_293 = arith.constant 0 : index
    %c0_294 = arith.constant 0 : index
    %906 = vector.load %arg10[%c0_292, %c0_293, %c0_294] : memref<8x8x16xf32, #tpu.memory_space<vmem>>, vector<8x8x16xf32>
    %c0_295 = arith.constant 0 : index
    %c0_296 = arith.constant 0 : index
    %c0_297 = arith.constant 0 : index
    %907 = vector.load %arg11[%c0_295, %c0_296, %c0_297] : memref<8x8x16xf32, #tpu.memory_space<vmem>>, vector<8x8x16xf32>
    %908 = tpu.concatenate %906, %907 in 2 : vector<8x8x16xf32>, vector<8x8x16xf32> -> vector<8x8x32xf32>
    %c0_298 = arith.constant 0 : index
    %c0_299 = arith.constant 0 : index
    %c0_300 = arith.constant 0 : index
    %909 = vector.load %arg7[%c0_298, %c0_299, %c0_300] : memref<8x8x32xf32, #tpu.memory_space<vmem>>, vector<8x8x32xf32>
    tpu.vector_store %arg7[%c0_298, %c0_299, %c0_300], %908 {strides = array<i32>} : memref<8x8x32xf32, #tpu.memory_space<vmem>>, vector<8x8x32xf32>,
    return
  }
}

module attributes {stable_mosaic.version = 11 : i64} {
  func.func @_bilstm_layer_kernel(%arg0: memref<8x8x16xf32, #tpu.memory_space<vmem>>, %arg1: memref<8x8x1xf32, #tpu.memory_space<vmem>>, %arg2: memref<16x64xf32, #tpu.memory_space<vmem>>, %arg3: memref<16x64xf32, #tpu.memory_space<vmem>>, %arg4: memref<1x64xf32, #tpu.memory_space<vmem>>, %arg5: memref<1x64xf32, #tpu.memory_space<vmem>>, %arg6: memref<32x128xf32, #tpu.memory_space<vmem>>, %arg7: memref<8x8x32xf32, #tpu.memory_space<vmem>>, %arg8: memref<8x8x64xf32, #tpu.memory_space<vmem>>, %arg9: memref<8x8x64xf32, #tpu.memory_space<vmem>>, %arg10: memref<8x8x16xf32, #tpu.memory_space<vmem>>, %arg11: memref<8x8x16xf32, #tpu.memory_space<vmem>>) attributes {dimension_semantics = [], scalar_prefetch = 0 : i64, scratch_operands = 4 : i64, tpu.core_type = #tpu.core_type<tc>} {
    %c0 = arith.constant 0 : index
    %c0_0 = arith.constant 0 : index
    %c0_1 = arith.constant 0 : index
    %0 = vector.load %arg0[%c0, %c0_0, %c0_1] : memref<8x8x16xf32, #tpu.memory_space<vmem>>, vector<8x8x16xf32>
    %1 = vector.shape_cast %0 : vector<8x8x16xf32> to vector<64x16xf32>
    %c0_2 = arith.constant 0 : index
    %c0_3 = arith.constant 0 : index
    %2 = vector.load %arg2[%c0_2, %c0_3] : memref<16x64xf32, #tpu.memory_space<vmem>>, vector<16x64xf32>
    %cst = arith.constant dense<0.000000e+00> : vector<64x64xf32>
    %3 = tpu.matmul %1, %2, %cst {dimension_numbers = #tpu.dot_dimension_numbers<[1], [0], [0], [1], [0, 0, 1, 1], [], []>} : vector<64x16xf32>, vector<16x64xf32>, vector<64x64xf32> -> vector<64x64xf32>
    %c0_4 = arith.constant 0 : index
    %c0_5 = arith.constant 0 : index
    %4 = vector.load %arg4[%c0_4, %c0_5] : memref<1x64xf32, #tpu.memory_space<vmem>>, vector<1x64xf32>
    %5 = vector.broadcast %4 : vector<1x64xf32> to vector<64x64xf32>
    %6 = arith.addf %3, %5 : vector<64x64xf32>
    %7 = vector.shape_cast %6 : vector<64x64xf32> to vector<8x8x64xf32>
    %c0_6 = arith.constant 0 : index
    %c0_7 = arith.constant 0 : index
    %c0_8 = arith.constant 0 : index
    %8 = vector.load %arg8[%c0_6, %c0_7, %c0_8] : memref<8x8x64xf32, #tpu.memory_space<vmem>>, vector<8x8x64xf32>
    tpu.vector_store %arg8[%c0_6, %c0_7, %c0_8], %7 {strides = array<i32>} : memref<8x8x64xf32, #tpu.memory_space<vmem>>, vector<8x8x64xf32>,
    %c0_9 = arith.constant 0 : index
    %c0_10 = arith.constant 0 : index
    %9 = vector.load %arg3[%c0_9, %c0_10] : memref<16x64xf32, #tpu.memory_space<vmem>>, vector<16x64xf32>
    %cst_11 = arith.constant dense<0.000000e+00> : vector<64x64xf32>
    %10 = tpu.matmul %1, %9, %cst_11 {dimension_numbers = #tpu.dot_dimension_numbers<[1], [0], [0], [1], [0, 0, 1, 1], [], []>} : vector<64x16xf32>, vector<16x64xf32>, vector<64x64xf32> -> vector<64x64xf32>
    %c0_12 = arith.constant 0 : index
    %c0_13 = arith.constant 0 : index
    %11 = vector.load %arg5[%c0_12, %c0_13] : memref<1x64xf32, #tpu.memory_space<vmem>>, vector<1x64xf32>
    %12 = vector.broadcast %11 : vector<1x64xf32> to vector<64x64xf32>
    %13 = arith.addf %10, %12 : vector<64x64xf32>
    %14 = vector.shape_cast %13 : vector<64x64xf32> to vector<8x8x64xf32>
    %c0_14 = arith.constant 0 : index
    %c0_15 = arith.constant 0 : index
    %c0_16 = arith.constant 0 : index
    %15 = vector.load %arg9[%c0_14, %c0_15, %c0_16] : memref<8x8x64xf32, #tpu.memory_space<vmem>>, vector<8x8x64xf32>
    tpu.vector_store %arg9[%c0_14, %c0_15, %c0_16], %14 {strides = array<i32>} : memref<8x8x64xf32, #tpu.memory_space<vmem>>, vector<8x8x64xf32>,
    %c0_17 = arith.constant 0 : index
    %c0_18 = arith.constant 0 : index
    %16 = vector.load %arg6[%c0_17, %c0_18] : memref<32x128xf32, #tpu.memory_space<vmem>>, vector<32x128xf32>
    %cst_19 = arith.constant 0.000000e+00 : f32
    %17 = vector.broadcast %cst_19 : f32 to vector<8x16xf32>
    %c0_i32 = arith.constant 0 : i32
    %c7_i32 = arith.constant 7 : i32
    %18 = arith.subi %c7_i32, %c0_i32 : i32
    %19 = tpu.concatenate %17, %17 in 1 : vector<8x16xf32>, vector<8x16xf32> -> vector<8x32xf32>
    %cst_20 = arith.constant dense<0.000000e+00> : vector<8x128xf32>
    %20 = tpu.matmul %19, %16, %cst_20 {dimension_numbers = #tpu.dot_dimension_numbers<[1], [0], [0], [1], [0, 0, 1, 1], [], []>} : vector<8x32xf32>, vector<32x128xf32>, vector<8x128xf32> -> vector<8x128xf32>
    %21 = arith.index_cast %c0_i32 : i32 to index
    %c0_21 = arith.constant 0 : index
    %c0_22 = arith.constant 0 : index
    %22 = vector.load %arg8[%21, %c0_21, %c0_22] : memref<8x8x64xf32, #tpu.memory_space<vmem>>, vector<1x8x64xf32>
    %23 = vector.shape_cast %22 : vector<1x8x64xf32> to vector<8x64xf32>
    %24 = vector.extract_strided_slice %20 {offsets = [0, 0], sizes = [8, 64], strides = [1, 1]} : vector<8x128xf32> to vector<8x64xf32>
    %25 = arith.addf %23, %24 : vector<8x64xf32>
    %26 = arith.index_cast %18 : i32 to index
    %c0_23 = arith.constant 0 : index
    %c0_24 = arith.constant 0 : index
    %27 = vector.load %arg9[%26, %c0_23, %c0_24] : memref<8x8x64xf32, #tpu.memory_space<vmem>>, vector<1x8x64xf32>
    %28 = vector.shape_cast %27 : vector<1x8x64xf32> to vector<8x64xf32>
    %29 = vector.extract_strided_slice %20 {offsets = [0, 64], sizes = [8, 64], strides = [1, 1]} : vector<8x128xf32> to vector<8x64xf32>
    %30 = arith.addf %28, %29 : vector<8x64xf32>
    %31 = arith.index_cast %c0_i32 : i32 to index
    %c0_25 = arith.constant 0 : index
    %c0_26 = arith.constant 0 : index
    %32 = vector.load %arg1[%31, %c0_25, %c0_26] : memref<8x8x1xf32, #tpu.memory_space<vmem>>, vector<1x8x1xf32>
    %33 = vector.shape_cast %32 : vector<1x8x1xf32> to vector<8x1xf32>
    %34 = vector.shape_cast %33 : vector<8x1xf32> to vector<8x1xf32>
    %35 = vector.broadcast %34 : vector<8x1xf32> to vector<8x16xf32>
    %cst_27 = arith.constant 1.000000e+00 : f32
    %36 = vector.broadcast %cst_27 : f32 to vector<8x16xf32>
    %37 = arith.subf %36, %35 : vector<8x16xf32>
    %38 = vector.extract_strided_slice %25 {offsets = [0, 0], sizes = [8, 16], strides = [1, 1]} : vector<8x64xf32> to vector<8x16xf32>
    %cst_28 = arith.constant 5.000000e-01 : f32
    %39 = vector.broadcast %cst_28 : f32 to vector<8x16xf32>
    %40 = arith.mulf %39, %38 : vector<8x16xf32>
    %41 = math.tanh %40 : vector<8x16xf32>
    %cst_29 = arith.constant 5.000000e-01 : f32
    %42 = vector.broadcast %cst_29 : f32 to vector<8x16xf32>
    %43 = arith.mulf %42, %41 : vector<8x16xf32>
    %cst_30 = arith.constant 5.000000e-01 : f32
    %44 = vector.broadcast %cst_30 : f32 to vector<8x16xf32>
    %45 = arith.addf %43, %44 : vector<8x16xf32>
    %46 = vector.extract_strided_slice %25 {offsets = [0, 16], sizes = [8, 16], strides = [1, 1]} : vector<8x64xf32> to vector<8x16xf32>
    %cst_31 = arith.constant 5.000000e-01 : f32
    %47 = vector.broadcast %cst_31 : f32 to vector<8x16xf32>
    %48 = arith.mulf %47, %46 : vector<8x16xf32>
    %49 = math.tanh %48 : vector<8x16xf32>
    %cst_32 = arith.constant 5.000000e-01 : f32
    %50 = vector.broadcast %cst_32 : f32 to vector<8x16xf32>
    %51 = arith.mulf %50, %49 : vector<8x16xf32>
    %cst_33 = arith.constant 5.000000e-01 : f32
    %52 = vector.broadcast %cst_33 : f32 to vector<8x16xf32>
    %53 = arith.addf %51, %52 : vector<8x16xf32>
    %54 = vector.extract_strided_slice %25 {offsets = [0, 32], sizes = [8, 16], strides = [1, 1]} : vector<8x64xf32> to vector<8x16xf32>
    %55 = math.tanh %54 : vector<8x16xf32>
    %56 = vector.extract_strided_slice %25 {offsets = [0, 48], sizes = [8, 16], strides = [1, 1]} : vector<8x64xf32> to vector<8x16xf32>
    %cst_34 = arith.constant 5.000000e-01 : f32
    %57 = vector.broadcast %cst_34 : f32 to vector<8x16xf32>
    %58 = arith.mulf %57, %56 : vector<8x16xf32>
    %59 = math.tanh %58 : vector<8x16xf32>
    %cst_35 = arith.constant 5.000000e-01 : f32
    %60 = vector.broadcast %cst_35 : f32 to vector<8x16xf32>
    %61 = arith.mulf %60, %59 : vector<8x16xf32>
    %cst_36 = arith.constant 5.000000e-01 : f32
    %62 = vector.broadcast %cst_36 : f32 to vector<8x16xf32>
    %63 = arith.addf %61, %62 : vector<8x16xf32>
    %64 = arith.mulf %53, %17 : vector<8x16xf32>
    %65 = arith.mulf %45, %55 : vector<8x16xf32>
    %66 = arith.addf %64, %65 : vector<8x16xf32>
    %67 = math.tanh %66 : vector<8x16xf32>
    %68 = arith.mulf %63, %67 : vector<8x16xf32>
    %69 = arith.mulf %35, %66 : vector<8x16xf32>
    %70 = arith.mulf %37, %17 : vector<8x16xf32>
    %71 = arith.addf %69, %70 : vector<8x16xf32>
    %72 = arith.mulf %35, %68 : vector<8x16xf32>
    %73 = arith.mulf %37, %17 : vector<8x16xf32>
    %74 = arith.addf %72, %73 : vector<8x16xf32>
    %75 = arith.mulf %35, %68 : vector<8x16xf32>
    %76 = arith.index_cast %c0_i32 : i32 to index
    %c0_37 = arith.constant 0 : index
    %c0_38 = arith.constant 0 : index
    %77 = vector.load %arg10[%76, %c0_37, %c0_38] : memref<8x8x16xf32, #tpu.memory_space<vmem>>, vector<1x8x16xf32>
    %78 = vector.shape_cast %77 : vector<1x8x16xf32> to vector<8x16xf32>
    %79 = vector.shape_cast %75 : vector<8x16xf32> to vector<1x8x16xf32>
    tpu.vector_store %arg10[%76, %c0_37, %c0_38], %79 {strides = array<i32>} : memref<8x8x16xf32, #tpu.memory_space<vmem>>, vector<1x8x16xf32>,
    %80 = arith.index_cast %18 : i32 to index
    %c0_39 = arith.constant 0 : index
    %c0_40 = arith.constant 0 : index
    %81 = vector.load %arg1[%80, %c0_39, %c0_40] : memref<8x8x1xf32, #tpu.memory_space<vmem>>, vector<1x8x1xf32>
    %82 = vector.shape_cast %81 : vector<1x8x1xf32> to vector<8x1xf32>
    %83 = vector.shape_cast %82 : vector<8x1xf32> to vector<8x1xf32>
    %84 = vector.broadcast %83 : vector<8x1xf32> to vector<8x16xf32>
    %cst_41 = arith.constant 1.000000e+00 : f32
    %85 = vector.broadcast %cst_41 : f32 to vector<8x16xf32>
    %86 = arith.subf %85, %84 : vector<8x16xf32>
    %87 = vector.extract_strided_slice %30 {offsets = [0, 0], sizes = [8, 16], strides = [1, 1]} : vector<8x64xf32> to vector<8x16xf32>
    %cst_42 = arith.constant 5.000000e-01 : f32
    %88 = vector.broadcast %cst_42 : f32 to vector<8x16xf32>
    %89 = arith.mulf %88, %87 : vector<8x16xf32>
    %90 = math.tanh %89 : vector<8x16xf32>
    %cst_43 = arith.constant 5.000000e-01 : f32
    %91 = vector.broadcast %cst_43 : f32 to vector<8x16xf32>
    %92 = arith.mulf %91, %90 : vector<8x16xf32>
    %cst_44 = arith.constant 5.000000e-01 : f32
    %93 = vector.broadcast %cst_44 : f32 to vector<8x16xf32>
    %94 = arith.addf %92, %93 : vector<8x16xf32>
    %95 = vector.extract_strided_slice %30 {offsets = [0, 16], sizes = [8, 16], strides = [1, 1]} : vector<8x64xf32> to vector<8x16xf32>
    %cst_45 = arith.constant 5.000000e-01 : f32
    %96 = vector.broadcast %cst_45 : f32 to vector<8x16xf32>
    %97 = arith.mulf %96, %95 : vector<8x16xf32>
    %98 = math.tanh %97 : vector<8x16xf32>
    %cst_46 = arith.constant 5.000000e-01 : f32
    %99 = vector.broadcast %cst_46 : f32 to vector<8x16xf32>
    %100 = arith.mulf %99, %98 : vector<8x16xf32>
    %cst_47 = arith.constant 5.000000e-01 : f32
    %101 = vector.broadcast %cst_47 : f32 to vector<8x16xf32>
    %102 = arith.addf %100, %101 : vector<8x16xf32>
    %103 = vector.extract_strided_slice %30 {offsets = [0, 32], sizes = [8, 16], strides = [1, 1]} : vector<8x64xf32> to vector<8x16xf32>
    %104 = math.tanh %103 : vector<8x16xf32>
    %105 = vector.extract_strided_slice %30 {offsets = [0, 48], sizes = [8, 16], strides = [1, 1]} : vector<8x64xf32> to vector<8x16xf32>
    %cst_48 = arith.constant 5.000000e-01 : f32
    %106 = vector.broadcast %cst_48 : f32 to vector<8x16xf32>
    %107 = arith.mulf %106, %105 : vector<8x16xf32>
    %108 = math.tanh %107 : vector<8x16xf32>
    %cst_49 = arith.constant 5.000000e-01 : f32
    %109 = vector.broadcast %cst_49 : f32 to vector<8x16xf32>
    %110 = arith.mulf %109, %108 : vector<8x16xf32>
    %cst_50 = arith.constant 5.000000e-01 : f32
    %111 = vector.broadcast %cst_50 : f32 to vector<8x16xf32>
    %112 = arith.addf %110, %111 : vector<8x16xf32>
    %113 = arith.mulf %102, %17 : vector<8x16xf32>
    %114 = arith.mulf %94, %104 : vector<8x16xf32>
    %115 = arith.addf %113, %114 : vector<8x16xf32>
    %116 = math.tanh %115 : vector<8x16xf32>
    %117 = arith.mulf %112, %116 : vector<8x16xf32>
    %118 = arith.mulf %84, %115 : vector<8x16xf32>
    %119 = arith.mulf %86, %17 : vector<8x16xf32>
    %120 = arith.addf %118, %119 : vector<8x16xf32>
    %121 = arith.mulf %84, %117 : vector<8x16xf32>
    %122 = arith.mulf %86, %17 : vector<8x16xf32>
    %123 = arith.addf %121, %122 : vector<8x16xf32>
    %124 = arith.mulf %84, %117 : vector<8x16xf32>
    %125 = arith.index_cast %18 : i32 to index
    %c0_51 = arith.constant 0 : index
    %c0_52 = arith.constant 0 : index
    %126 = vector.load %arg11[%125, %c0_51, %c0_52] : memref<8x8x16xf32, #tpu.memory_space<vmem>>, vector<1x8x16xf32>
    %127 = vector.shape_cast %126 : vector<1x8x16xf32> to vector<8x16xf32>
    %128 = vector.shape_cast %124 : vector<8x16xf32> to vector<1x8x16xf32>
    tpu.vector_store %arg11[%125, %c0_51, %c0_52], %128 {strides = array<i32>} : memref<8x8x16xf32, #tpu.memory_space<vmem>>, vector<1x8x16xf32>,
    %c1_i32 = arith.constant 1 : i32
    %c7_i32_53 = arith.constant 7 : i32
    %129 = arith.subi %c7_i32_53, %c1_i32 : i32
    %130 = tpu.concatenate %74, %123 in 1 : vector<8x16xf32>, vector<8x16xf32> -> vector<8x32xf32>
    %cst_54 = arith.constant dense<0.000000e+00> : vector<8x128xf32>
    %131 = tpu.matmul %130, %16, %cst_54 {dimension_numbers = #tpu.dot_dimension_numbers<[1], [0], [0], [1], [0, 0, 1, 1], [], []>} : vector<8x32xf32>, vector<32x128xf32>, vector<8x128xf32> -> vector<8x128xf32>
    %132 = arith.index_cast %c1_i32 : i32 to index
    %c0_55 = arith.constant 0 : index
    %c0_56 = arith.constant 0 : index
    %133 = vector.load %arg8[%132, %c0_55, %c0_56] : memref<8x8x64xf32, #tpu.memory_space<vmem>>, vector<1x8x64xf32>
    %134 = vector.shape_cast %133 : vector<1x8x64xf32> to vector<8x64xf32>
    %135 = vector.extract_strided_slice %131 {offsets = [0, 0], sizes = [8, 64], strides = [1, 1]} : vector<8x128xf32> to vector<8x64xf32>
    %136 = arith.addf %134, %135 : vector<8x64xf32>
    %137 = arith.index_cast %129 : i32 to index
    %c0_57 = arith.constant 0 : index
    %c0_58 = arith.constant 0 : index
    %138 = vector.load %arg9[%137, %c0_57, %c0_58] : memref<8x8x64xf32, #tpu.memory_space<vmem>>, vector<1x8x64xf32>
    %139 = vector.shape_cast %138 : vector<1x8x64xf32> to vector<8x64xf32>
    %140 = vector.extract_strided_slice %131 {offsets = [0, 64], sizes = [8, 64], strides = [1, 1]} : vector<8x128xf32> to vector<8x64xf32>
    %141 = arith.addf %139, %140 : vector<8x64xf32>
    %142 = arith.index_cast %c1_i32 : i32 to index
    %c0_59 = arith.constant 0 : index
    %c0_60 = arith.constant 0 : index
    %143 = vector.load %arg1[%142, %c0_59, %c0_60] : memref<8x8x1xf32, #tpu.memory_space<vmem>>, vector<1x8x1xf32>
    %144 = vector.shape_cast %143 : vector<1x8x1xf32> to vector<8x1xf32>
    %145 = vector.shape_cast %144 : vector<8x1xf32> to vector<8x1xf32>
    %146 = vector.broadcast %145 : vector<8x1xf32> to vector<8x16xf32>
    %cst_61 = arith.constant 1.000000e+00 : f32
    %147 = vector.broadcast %cst_61 : f32 to vector<8x16xf32>
    %148 = arith.subf %147, %146 : vector<8x16xf32>
    %149 = vector.extract_strided_slice %136 {offsets = [0, 0], sizes = [8, 16], strides = [1, 1]} : vector<8x64xf32> to vector<8x16xf32>
    %cst_62 = arith.constant 5.000000e-01 : f32
    %150 = vector.broadcast %cst_62 : f32 to vector<8x16xf32>
    %151 = arith.mulf %150, %149 : vector<8x16xf32>
    %152 = math.tanh %151 : vector<8x16xf32>
    %cst_63 = arith.constant 5.000000e-01 : f32
    %153 = vector.broadcast %cst_63 : f32 to vector<8x16xf32>
    %154 = arith.mulf %153, %152 : vector<8x16xf32>
    %cst_64 = arith.constant 5.000000e-01 : f32
    %155 = vector.broadcast %cst_64 : f32 to vector<8x16xf32>
    %156 = arith.addf %154, %155 : vector<8x16xf32>
    %157 = vector.extract_strided_slice %136 {offsets = [0, 16], sizes = [8, 16], strides = [1, 1]} : vector<8x64xf32> to vector<8x16xf32>
    %cst_65 = arith.constant 5.000000e-01 : f32
    %158 = vector.broadcast %cst_65 : f32 to vector<8x16xf32>
    %159 = arith.mulf %158, %157 : vector<8x16xf32>
    %160 = math.tanh %159 : vector<8x16xf32>
    %cst_66 = arith.constant 5.000000e-01 : f32
    %161 = vector.broadcast %cst_66 : f32 to vector<8x16xf32>
    %162 = arith.mulf %161, %160 : vector<8x16xf32>
    %cst_67 = arith.constant 5.000000e-01 : f32
    %163 = vector.broadcast %cst_67 : f32 to vector<8x16xf32>
    %164 = arith.addf %162, %163 : vector<8x16xf32>
    %165 = vector.extract_strided_slice %136 {offsets = [0, 32], sizes = [8, 16], strides = [1, 1]} : vector<8x64xf32> to vector<8x16xf32>
    %166 = math.tanh %165 : vector<8x16xf32>
    %167 = vector.extract_strided_slice %136 {offsets = [0, 48], sizes = [8, 16], strides = [1, 1]} : vector<8x64xf32> to vector<8x16xf32>
    %cst_68 = arith.constant 5.000000e-01 : f32
    %168 = vector.broadcast %cst_68 : f32 to vector<8x16xf32>
    %169 = arith.mulf %168, %167 : vector<8x16xf32>
    %170 = math.tanh %169 : vector<8x16xf32>
    %cst_69 = arith.constant 5.000000e-01 : f32
    %171 = vector.broadcast %cst_69 : f32 to vector<8x16xf32>
    %172 = arith.mulf %171, %170 : vector<8x16xf32>
    %cst_70 = arith.constant 5.000000e-01 : f32
    %173 = vector.broadcast %cst_70 : f32 to vector<8x16xf32>
    %174 = arith.addf %172, %173 : vector<8x16xf32>
    %175 = arith.mulf %164, %71 : vector<8x16xf32>
    %176 = arith.mulf %156, %166 : vector<8x16xf32>
    %177 = arith.addf %175, %176 : vector<8x16xf32>
    %178 = math.tanh %177 : vector<8x16xf32>
    %179 = arith.mulf %174, %178 : vector<8x16xf32>
    %180 = arith.mulf %146, %177 : vector<8x16xf32>
    %181 = arith.mulf %148, %71 : vector<8x16xf32>
    %182 = arith.addf %180, %181 : vector<8x16xf32>
    %183 = arith.mulf %146, %179 : vector<8x16xf32>
    %184 = arith.mulf %148, %74 : vector<8x16xf32>
    %185 = arith.addf %183, %184 : vector<8x16xf32>
    %186 = arith.mulf %146, %179 : vector<8x16xf32>
    %187 = arith.index_cast %c1_i32 : i32 to index
    %c0_71 = arith.constant 0 : index
    %c0_72 = arith.constant 0 : index
    %188 = vector.load %arg10[%187, %c0_71, %c0_72] : memref<8x8x16xf32, #tpu.memory_space<vmem>>, vector<1x8x16xf32>
    %189 = vector.shape_cast %188 : vector<1x8x16xf32> to vector<8x16xf32>
    %190 = vector.shape_cast %186 : vector<8x16xf32> to vector<1x8x16xf32>
    tpu.vector_store %arg10[%187, %c0_71, %c0_72], %190 {strides = array<i32>} : memref<8x8x16xf32, #tpu.memory_space<vmem>>, vector<1x8x16xf32>,
    %191 = arith.index_cast %129 : i32 to index
    %c0_73 = arith.constant 0 : index
    %c0_74 = arith.constant 0 : index
    %192 = vector.load %arg1[%191, %c0_73, %c0_74] : memref<8x8x1xf32, #tpu.memory_space<vmem>>, vector<1x8x1xf32>
    %193 = vector.shape_cast %192 : vector<1x8x1xf32> to vector<8x1xf32>
    %194 = vector.shape_cast %193 : vector<8x1xf32> to vector<8x1xf32>
    %195 = vector.broadcast %194 : vector<8x1xf32> to vector<8x16xf32>
    %cst_75 = arith.constant 1.000000e+00 : f32
    %196 = vector.broadcast %cst_75 : f32 to vector<8x16xf32>
    %197 = arith.subf %196, %195 : vector<8x16xf32>
    %198 = vector.extract_strided_slice %141 {offsets = [0, 0], sizes = [8, 16], strides = [1, 1]} : vector<8x64xf32> to vector<8x16xf32>
    %cst_76 = arith.constant 5.000000e-01 : f32
    %199 = vector.broadcast %cst_76 : f32 to vector<8x16xf32>
    %200 = arith.mulf %199, %198 : vector<8x16xf32>
    %201 = math.tanh %200 : vector<8x16xf32>
    %cst_77 = arith.constant 5.000000e-01 : f32
    %202 = vector.broadcast %cst_77 : f32 to vector<8x16xf32>
    %203 = arith.mulf %202, %201 : vector<8x16xf32>
    %cst_78 = arith.constant 5.000000e-01 : f32
    %204 = vector.broadcast %cst_78 : f32 to vector<8x16xf32>
    %205 = arith.addf %203, %204 : vector<8x16xf32>
    %206 = vector.extract_strided_slice %141 {offsets = [0, 16], sizes = [8, 16], strides = [1, 1]} : vector<8x64xf32> to vector<8x16xf32>
    %cst_79 = arith.constant 5.000000e-01 : f32
    %207 = vector.broadcast %cst_79 : f32 to vector<8x16xf32>
    %208 = arith.mulf %207, %206 : vector<8x16xf32>
    %209 = math.tanh %208 : vector<8x16xf32>
    %cst_80 = arith.constant 5.000000e-01 : f32
    %210 = vector.broadcast %cst_80 : f32 to vector<8x16xf32>
    %211 = arith.mulf %210, %209 : vector<8x16xf32>
    %cst_81 = arith.constant 5.000000e-01 : f32
    %212 = vector.broadcast %cst_81 : f32 to vector<8x16xf32>
    %213 = arith.addf %211, %212 : vector<8x16xf32>
    %214 = vector.extract_strided_slice %141 {offsets = [0, 32], sizes = [8, 16], strides = [1, 1]} : vector<8x64xf32> to vector<8x16xf32>
    %215 = math.tanh %214 : vector<8x16xf32>
    %216 = vector.extract_strided_slice %141 {offsets = [0, 48], sizes = [8, 16], strides = [1, 1]} : vector<8x64xf32> to vector<8x16xf32>
    %cst_82 = arith.constant 5.000000e-01 : f32
    %217 = vector.broadcast %cst_82 : f32 to vector<8x16xf32>
    %218 = arith.mulf %217, %216 : vector<8x16xf32>
    %219 = math.tanh %218 : vector<8x16xf32>
    %cst_83 = arith.constant 5.000000e-01 : f32
    %220 = vector.broadcast %cst_83 : f32 to vector<8x16xf32>
    %221 = arith.mulf %220, %219 : vector<8x16xf32>
    %cst_84 = arith.constant 5.000000e-01 : f32
    %222 = vector.broadcast %cst_84 : f32 to vector<8x16xf32>
    %223 = arith.addf %221, %222 : vector<8x16xf32>
    %224 = arith.mulf %213, %120 : vector<8x16xf32>
    %225 = arith.mulf %205, %215 : vector<8x16xf32>
    %226 = arith.addf %224, %225 : vector<8x16xf32>
    %227 = math.tanh %226 : vector<8x16xf32>
    %228 = arith.mulf %223, %227 : vector<8x16xf32>
    %229 = arith.mulf %195, %226 : vector<8x16xf32>
    %230 = arith.mulf %197, %120 : vector<8x16xf32>
    %231 = arith.addf %229, %230 : vector<8x16xf32>
    %232 = arith.mulf %195, %228 : vector<8x16xf32>
    %233 = arith.mulf %197, %123 : vector<8x16xf32>
    %234 = arith.addf %232, %233 : vector<8x16xf32>
    %235 = arith.mulf %195, %228 : vector<8x16xf32>
    %236 = arith.index_cast %129 : i32 to index
    %c0_85 = arith.constant 0 : index
    %c0_86 = arith.constant 0 : index
    %237 = vector.load %arg11[%236, %c0_85, %c0_86] : memref<8x8x16xf32, #tpu.memory_space<vmem>>, vector<1x8x16xf32>
    %238 = vector.shape_cast %237 : vector<1x8x16xf32> to vector<8x16xf32>
    %239 = vector.shape_cast %235 : vector<8x16xf32> to vector<1x8x16xf32>
    tpu.vector_store %arg11[%236, %c0_85, %c0_86], %239 {strides = array<i32>} : memref<8x8x16xf32, #tpu.memory_space<vmem>>, vector<1x8x16xf32>,
    %c2_i32 = arith.constant 2 : i32
    %c7_i32_87 = arith.constant 7 : i32
    %240 = arith.subi %c7_i32_87, %c2_i32 : i32
    %241 = tpu.concatenate %185, %234 in 1 : vector<8x16xf32>, vector<8x16xf32> -> vector<8x32xf32>
    %cst_88 = arith.constant dense<0.000000e+00> : vector<8x128xf32>
    %242 = tpu.matmul %241, %16, %cst_88 {dimension_numbers = #tpu.dot_dimension_numbers<[1], [0], [0], [1], [0, 0, 1, 1], [], []>} : vector<8x32xf32>, vector<32x128xf32>, vector<8x128xf32> -> vector<8x128xf32>
    %243 = arith.index_cast %c2_i32 : i32 to index
    %c0_89 = arith.constant 0 : index
    %c0_90 = arith.constant 0 : index
    %244 = vector.load %arg8[%243, %c0_89, %c0_90] : memref<8x8x64xf32, #tpu.memory_space<vmem>>, vector<1x8x64xf32>
    %245 = vector.shape_cast %244 : vector<1x8x64xf32> to vector<8x64xf32>
    %246 = vector.extract_strided_slice %242 {offsets = [0, 0], sizes = [8, 64], strides = [1, 1]} : vector<8x128xf32> to vector<8x64xf32>
    %247 = arith.addf %245, %246 : vector<8x64xf32>
    %248 = arith.index_cast %240 : i32 to index
    %c0_91 = arith.constant 0 : index
    %c0_92 = arith.constant 0 : index
    %249 = vector.load %arg9[%248, %c0_91, %c0_92] : memref<8x8x64xf32, #tpu.memory_space<vmem>>, vector<1x8x64xf32>
    %250 = vector.shape_cast %249 : vector<1x8x64xf32> to vector<8x64xf32>
    %251 = vector.extract_strided_slice %242 {offsets = [0, 64], sizes = [8, 64], strides = [1, 1]} : vector<8x128xf32> to vector<8x64xf32>
    %252 = arith.addf %250, %251 : vector<8x64xf32>
    %253 = arith.index_cast %c2_i32 : i32 to index
    %c0_93 = arith.constant 0 : index
    %c0_94 = arith.constant 0 : index
    %254 = vector.load %arg1[%253, %c0_93, %c0_94] : memref<8x8x1xf32, #tpu.memory_space<vmem>>, vector<1x8x1xf32>
    %255 = vector.shape_cast %254 : vector<1x8x1xf32> to vector<8x1xf32>
    %256 = vector.shape_cast %255 : vector<8x1xf32> to vector<8x1xf32>
    %257 = vector.broadcast %256 : vector<8x1xf32> to vector<8x16xf32>
    %cst_95 = arith.constant 1.000000e+00 : f32
    %258 = vector.broadcast %cst_95 : f32 to vector<8x16xf32>
    %259 = arith.subf %258, %257 : vector<8x16xf32>
    %260 = vector.extract_strided_slice %247 {offsets = [0, 0], sizes = [8, 16], strides = [1, 1]} : vector<8x64xf32> to vector<8x16xf32>
    %cst_96 = arith.constant 5.000000e-01 : f32
    %261 = vector.broadcast %cst_96 : f32 to vector<8x16xf32>
    %262 = arith.mulf %261, %260 : vector<8x16xf32>
    %263 = math.tanh %262 : vector<8x16xf32>
    %cst_97 = arith.constant 5.000000e-01 : f32
    %264 = vector.broadcast %cst_97 : f32 to vector<8x16xf32>
    %265 = arith.mulf %264, %263 : vector<8x16xf32>
    %cst_98 = arith.constant 5.000000e-01 : f32
    %266 = vector.broadcast %cst_98 : f32 to vector<8x16xf32>
    %267 = arith.addf %265, %266 : vector<8x16xf32>
    %268 = vector.extract_strided_slice %247 {offsets = [0, 16], sizes = [8, 16], strides = [1, 1]} : vector<8x64xf32> to vector<8x16xf32>
    %cst_99 = arith.constant 5.000000e-01 : f32
    %269 = vector.broadcast %cst_99 : f32 to vector<8x16xf32>
    %270 = arith.mulf %269, %268 : vector<8x16xf32>
    %271 = math.tanh %270 : vector<8x16xf32>
    %cst_100 = arith.constant 5.000000e-01 : f32
    %272 = vector.broadcast %cst_100 : f32 to vector<8x16xf32>
    %273 = arith.mulf %272, %271 : vector<8x16xf32>
    %cst_101 = arith.constant 5.000000e-01 : f32
    %274 = vector.broadcast %cst_101 : f32 to vector<8x16xf32>
    %275 = arith.addf %273, %274 : vector<8x16xf32>
    %276 = vector.extract_strided_slice %247 {offsets = [0, 32], sizes = [8, 16], strides = [1, 1]} : vector<8x64xf32> to vector<8x16xf32>
    %277 = math.tanh %276 : vector<8x16xf32>
    %278 = vector.extract_strided_slice %247 {offsets = [0, 48], sizes = [8, 16], strides = [1, 1]} : vector<8x64xf32> to vector<8x16xf32>
    %cst_102 = arith.constant 5.000000e-01 : f32
    %279 = vector.broadcast %cst_102 : f32 to vector<8x16xf32>
    %280 = arith.mulf %279, %278 : vector<8x16xf32>
    %281 = math.tanh %280 : vector<8x16xf32>
    %cst_103 = arith.constant 5.000000e-01 : f32
    %282 = vector.broadcast %cst_103 : f32 to vector<8x16xf32>
    %283 = arith.mulf %282, %281 : vector<8x16xf32>
    %cst_104 = arith.constant 5.000000e-01 : f32
    %284 = vector.broadcast %cst_104 : f32 to vector<8x16xf32>
    %285 = arith.addf %283, %284 : vector<8x16xf32>
    %286 = arith.mulf %275, %182 : vector<8x16xf32>
    %287 = arith.mulf %267, %277 : vector<8x16xf32>
    %288 = arith.addf %286, %287 : vector<8x16xf32>
    %289 = math.tanh %288 : vector<8x16xf32>
    %290 = arith.mulf %285, %289 : vector<8x16xf32>
    %291 = arith.mulf %257, %288 : vector<8x16xf32>
    %292 = arith.mulf %259, %182 : vector<8x16xf32>
    %293 = arith.addf %291, %292 : vector<8x16xf32>
    %294 = arith.mulf %257, %290 : vector<8x16xf32>
    %295 = arith.mulf %259, %185 : vector<8x16xf32>
    %296 = arith.addf %294, %295 : vector<8x16xf32>
    %297 = arith.mulf %257, %290 : vector<8x16xf32>
    %298 = arith.index_cast %c2_i32 : i32 to index
    %c0_105 = arith.constant 0 : index
    %c0_106 = arith.constant 0 : index
    %299 = vector.load %arg10[%298, %c0_105, %c0_106] : memref<8x8x16xf32, #tpu.memory_space<vmem>>, vector<1x8x16xf32>
    %300 = vector.shape_cast %299 : vector<1x8x16xf32> to vector<8x16xf32>
    %301 = vector.shape_cast %297 : vector<8x16xf32> to vector<1x8x16xf32>
    tpu.vector_store %arg10[%298, %c0_105, %c0_106], %301 {strides = array<i32>} : memref<8x8x16xf32, #tpu.memory_space<vmem>>, vector<1x8x16xf32>,
    %302 = arith.index_cast %240 : i32 to index
    %c0_107 = arith.constant 0 : index
    %c0_108 = arith.constant 0 : index
    %303 = vector.load %arg1[%302, %c0_107, %c0_108] : memref<8x8x1xf32, #tpu.memory_space<vmem>>, vector<1x8x1xf32>
    %304 = vector.shape_cast %303 : vector<1x8x1xf32> to vector<8x1xf32>
    %305 = vector.shape_cast %304 : vector<8x1xf32> to vector<8x1xf32>
    %306 = vector.broadcast %305 : vector<8x1xf32> to vector<8x16xf32>
    %cst_109 = arith.constant 1.000000e+00 : f32
    %307 = vector.broadcast %cst_109 : f32 to vector<8x16xf32>
    %308 = arith.subf %307, %306 : vector<8x16xf32>
    %309 = vector.extract_strided_slice %252 {offsets = [0, 0], sizes = [8, 16], strides = [1, 1]} : vector<8x64xf32> to vector<8x16xf32>
    %cst_110 = arith.constant 5.000000e-01 : f32
    %310 = vector.broadcast %cst_110 : f32 to vector<8x16xf32>
    %311 = arith.mulf %310, %309 : vector<8x16xf32>
    %312 = math.tanh %311 : vector<8x16xf32>
    %cst_111 = arith.constant 5.000000e-01 : f32
    %313 = vector.broadcast %cst_111 : f32 to vector<8x16xf32>
    %314 = arith.mulf %313, %312 : vector<8x16xf32>
    %cst_112 = arith.constant 5.000000e-01 : f32
    %315 = vector.broadcast %cst_112 : f32 to vector<8x16xf32>
    %316 = arith.addf %314, %315 : vector<8x16xf32>
    %317 = vector.extract_strided_slice %252 {offsets = [0, 16], sizes = [8, 16], strides = [1, 1]} : vector<8x64xf32> to vector<8x16xf32>
    %cst_113 = arith.constant 5.000000e-01 : f32
    %318 = vector.broadcast %cst_113 : f32 to vector<8x16xf32>
    %319 = arith.mulf %318, %317 : vector<8x16xf32>
    %320 = math.tanh %319 : vector<8x16xf32>
    %cst_114 = arith.constant 5.000000e-01 : f32
    %321 = vector.broadcast %cst_114 : f32 to vector<8x16xf32>
    %322 = arith.mulf %321, %320 : vector<8x16xf32>
    %cst_115 = arith.constant 5.000000e-01 : f32
    %323 = vector.broadcast %cst_115 : f32 to vector<8x16xf32>
    %324 = arith.addf %322, %323 : vector<8x16xf32>
    %325 = vector.extract_strided_slice %252 {offsets = [0, 32], sizes = [8, 16], strides = [1, 1]} : vector<8x64xf32> to vector<8x16xf32>
    %326 = math.tanh %325 : vector<8x16xf32>
    %327 = vector.extract_strided_slice %252 {offsets = [0, 48], sizes = [8, 16], strides = [1, 1]} : vector<8x64xf32> to vector<8x16xf32>
    %cst_116 = arith.constant 5.000000e-01 : f32
    %328 = vector.broadcast %cst_116 : f32 to vector<8x16xf32>
    %329 = arith.mulf %328, %327 : vector<8x16xf32>
    %330 = math.tanh %329 : vector<8x16xf32>
    %cst_117 = arith.constant 5.000000e-01 : f32
    %331 = vector.broadcast %cst_117 : f32 to vector<8x16xf32>
    %332 = arith.mulf %331, %330 : vector<8x16xf32>
    %cst_118 = arith.constant 5.000000e-01 : f32
    %333 = vector.broadcast %cst_118 : f32 to vector<8x16xf32>
    %334 = arith.addf %332, %333 : vector<8x16xf32>
    %335 = arith.mulf %324, %231 : vector<8x16xf32>
    %336 = arith.mulf %316, %326 : vector<8x16xf32>
    %337 = arith.addf %335, %336 : vector<8x16xf32>
    %338 = math.tanh %337 : vector<8x16xf32>
    %339 = arith.mulf %334, %338 : vector<8x16xf32>
    %340 = arith.mulf %306, %337 : vector<8x16xf32>
    %341 = arith.mulf %308, %231 : vector<8x16xf32>
    %342 = arith.addf %340, %341 : vector<8x16xf32>
    %343 = arith.mulf %306, %339 : vector<8x16xf32>
    %344 = arith.mulf %308, %234 : vector<8x16xf32>
    %345 = arith.addf %343, %344 : vector<8x16xf32>
    %346 = arith.mulf %306, %339 : vector<8x16xf32>
    %347 = arith.index_cast %240 : i32 to index
    %c0_119 = arith.constant 0 : index
    %c0_120 = arith.constant 0 : index
    %348 = vector.load %arg11[%347, %c0_119, %c0_120] : memref<8x8x16xf32, #tpu.memory_space<vmem>>, vector<1x8x16xf32>
    %349 = vector.shape_cast %348 : vector<1x8x16xf32> to vector<8x16xf32>
    %350 = vector.shape_cast %346 : vector<8x16xf32> to vector<1x8x16xf32>
    tpu.vector_store %arg11[%347, %c0_119, %c0_120], %350 {strides = array<i32>} : memref<8x8x16xf32, #tpu.memory_space<vmem>>, vector<1x8x16xf32>,
    %c3_i32 = arith.constant 3 : i32
    %c7_i32_121 = arith.constant 7 : i32
    %351 = arith.subi %c7_i32_121, %c3_i32 : i32
    %352 = tpu.concatenate %296, %345 in 1 : vector<8x16xf32>, vector<8x16xf32> -> vector<8x32xf32>
    %cst_122 = arith.constant dense<0.000000e+00> : vector<8x128xf32>
    %353 = tpu.matmul %352, %16, %cst_122 {dimension_numbers = #tpu.dot_dimension_numbers<[1], [0], [0], [1], [0, 0, 1, 1], [], []>} : vector<8x32xf32>, vector<32x128xf32>, vector<8x128xf32> -> vector<8x128xf32>
    %354 = arith.index_cast %c3_i32 : i32 to index
    %c0_123 = arith.constant 0 : index
    %c0_124 = arith.constant 0 : index
    %355 = vector.load %arg8[%354, %c0_123, %c0_124] : memref<8x8x64xf32, #tpu.memory_space<vmem>>, vector<1x8x64xf32>
    %356 = vector.shape_cast %355 : vector<1x8x64xf32> to vector<8x64xf32>
    %357 = vector.extract_strided_slice %353 {offsets = [0, 0], sizes = [8, 64], strides = [1, 1]} : vector<8x128xf32> to vector<8x64xf32>
    %358 = arith.addf %356, %357 : vector<8x64xf32>
    %359 = arith.index_cast %351 : i32 to index
    %c0_125 = arith.constant 0 : index
    %c0_126 = arith.constant 0 : index
    %360 = vector.load %arg9[%359, %c0_125, %c0_126] : memref<8x8x64xf32, #tpu.memory_space<vmem>>, vector<1x8x64xf32>
    %361 = vector.shape_cast %360 : vector<1x8x64xf32> to vector<8x64xf32>
    %362 = vector.extract_strided_slice %353 {offsets = [0, 64], sizes = [8, 64], strides = [1, 1]} : vector<8x128xf32> to vector<8x64xf32>
    %363 = arith.addf %361, %362 : vector<8x64xf32>
    %364 = arith.index_cast %c3_i32 : i32 to index
    %c0_127 = arith.constant 0 : index
    %c0_128 = arith.constant 0 : index
    %365 = vector.load %arg1[%364, %c0_127, %c0_128] : memref<8x8x1xf32, #tpu.memory_space<vmem>>, vector<1x8x1xf32>
    %366 = vector.shape_cast %365 : vector<1x8x1xf32> to vector<8x1xf32>
    %367 = vector.shape_cast %366 : vector<8x1xf32> to vector<8x1xf32>
    %368 = vector.broadcast %367 : vector<8x1xf32> to vector<8x16xf32>
    %cst_129 = arith.constant 1.000000e+00 : f32
    %369 = vector.broadcast %cst_129 : f32 to vector<8x16xf32>
    %370 = arith.subf %369, %368 : vector<8x16xf32>
    %371 = vector.extract_strided_slice %358 {offsets = [0, 0], sizes = [8, 16], strides = [1, 1]} : vector<8x64xf32> to vector<8x16xf32>
    %cst_130 = arith.constant 5.000000e-01 : f32
    %372 = vector.broadcast %cst_130 : f32 to vector<8x16xf32>
    %373 = arith.mulf %372, %371 : vector<8x16xf32>
    %374 = math.tanh %373 : vector<8x16xf32>
    %cst_131 = arith.constant 5.000000e-01 : f32
    %375 = vector.broadcast %cst_131 : f32 to vector<8x16xf32>
    %376 = arith.mulf %375, %374 : vector<8x16xf32>
    %cst_132 = arith.constant 5.000000e-01 : f32
    %377 = vector.broadcast %cst_132 : f32 to vector<8x16xf32>
    %378 = arith.addf %376, %377 : vector<8x16xf32>
    %379 = vector.extract_strided_slice %358 {offsets = [0, 16], sizes = [8, 16], strides = [1, 1]} : vector<8x64xf32> to vector<8x16xf32>
    %cst_133 = arith.constant 5.000000e-01 : f32
    %380 = vector.broadcast %cst_133 : f32 to vector<8x16xf32>
    %381 = arith.mulf %380, %379 : vector<8x16xf32>
    %382 = math.tanh %381 : vector<8x16xf32>
    %cst_134 = arith.constant 5.000000e-01 : f32
    %383 = vector.broadcast %cst_134 : f32 to vector<8x16xf32>
    %384 = arith.mulf %383, %382 : vector<8x16xf32>
    %cst_135 = arith.constant 5.000000e-01 : f32
    %385 = vector.broadcast %cst_135 : f32 to vector<8x16xf32>
    %386 = arith.addf %384, %385 : vector<8x16xf32>
    %387 = vector.extract_strided_slice %358 {offsets = [0, 32], sizes = [8, 16], strides = [1, 1]} : vector<8x64xf32> to vector<8x16xf32>
    %388 = math.tanh %387 : vector<8x16xf32>
    %389 = vector.extract_strided_slice %358 {offsets = [0, 48], sizes = [8, 16], strides = [1, 1]} : vector<8x64xf32> to vector<8x16xf32>
    %cst_136 = arith.constant 5.000000e-01 : f32
    %390 = vector.broadcast %cst_136 : f32 to vector<8x16xf32>
    %391 = arith.mulf %390, %389 : vector<8x16xf32>
    %392 = math.tanh %391 : vector<8x16xf32>
    %cst_137 = arith.constant 5.000000e-01 : f32
    %393 = vector.broadcast %cst_137 : f32 to vector<8x16xf32>
    %394 = arith.mulf %393, %392 : vector<8x16xf32>
    %cst_138 = arith.constant 5.000000e-01 : f32
    %395 = vector.broadcast %cst_138 : f32 to vector<8x16xf32>
    %396 = arith.addf %394, %395 : vector<8x16xf32>
    %397 = arith.mulf %386, %293 : vector<8x16xf32>
    %398 = arith.mulf %378, %388 : vector<8x16xf32>
    %399 = arith.addf %397, %398 : vector<8x16xf32>
    %400 = math.tanh %399 : vector<8x16xf32>
    %401 = arith.mulf %396, %400 : vector<8x16xf32>
    %402 = arith.mulf %368, %399 : vector<8x16xf32>
    %403 = arith.mulf %370, %293 : vector<8x16xf32>
    %404 = arith.addf %402, %403 : vector<8x16xf32>
    %405 = arith.mulf %368, %401 : vector<8x16xf32>
    %406 = arith.mulf %370, %296 : vector<8x16xf32>
    %407 = arith.addf %405, %406 : vector<8x16xf32>
    %408 = arith.mulf %368, %401 : vector<8x16xf32>
    %409 = arith.index_cast %c3_i32 : i32 to index
    %c0_139 = arith.constant 0 : index
    %c0_140 = arith.constant 0 : index
    %410 = vector.load %arg10[%409, %c0_139, %c0_140] : memref<8x8x16xf32, #tpu.memory_space<vmem>>, vector<1x8x16xf32>
    %411 = vector.shape_cast %410 : vector<1x8x16xf32> to vector<8x16xf32>
    %412 = vector.shape_cast %408 : vector<8x16xf32> to vector<1x8x16xf32>
    tpu.vector_store %arg10[%409, %c0_139, %c0_140], %412 {strides = array<i32>} : memref<8x8x16xf32, #tpu.memory_space<vmem>>, vector<1x8x16xf32>,
    %413 = arith.index_cast %351 : i32 to index
    %c0_141 = arith.constant 0 : index
    %c0_142 = arith.constant 0 : index
    %414 = vector.load %arg1[%413, %c0_141, %c0_142] : memref<8x8x1xf32, #tpu.memory_space<vmem>>, vector<1x8x1xf32>
    %415 = vector.shape_cast %414 : vector<1x8x1xf32> to vector<8x1xf32>
    %416 = vector.shape_cast %415 : vector<8x1xf32> to vector<8x1xf32>
    %417 = vector.broadcast %416 : vector<8x1xf32> to vector<8x16xf32>
    %cst_143 = arith.constant 1.000000e+00 : f32
    %418 = vector.broadcast %cst_143 : f32 to vector<8x16xf32>
    %419 = arith.subf %418, %417 : vector<8x16xf32>
    %420 = vector.extract_strided_slice %363 {offsets = [0, 0], sizes = [8, 16], strides = [1, 1]} : vector<8x64xf32> to vector<8x16xf32>
    %cst_144 = arith.constant 5.000000e-01 : f32
    %421 = vector.broadcast %cst_144 : f32 to vector<8x16xf32>
    %422 = arith.mulf %421, %420 : vector<8x16xf32>
    %423 = math.tanh %422 : vector<8x16xf32>
    %cst_145 = arith.constant 5.000000e-01 : f32
    %424 = vector.broadcast %cst_145 : f32 to vector<8x16xf32>
    %425 = arith.mulf %424, %423 : vector<8x16xf32>
    %cst_146 = arith.constant 5.000000e-01 : f32
    %426 = vector.broadcast %cst_146 : f32 to vector<8x16xf32>
    %427 = arith.addf %425, %426 : vector<8x16xf32>
    %428 = vector.extract_strided_slice %363 {offsets = [0, 16], sizes = [8, 16], strides = [1, 1]} : vector<8x64xf32> to vector<8x16xf32>
    %cst_147 = arith.constant 5.000000e-01 : f32
    %429 = vector.broadcast %cst_147 : f32 to vector<8x16xf32>
    %430 = arith.mulf %429, %428 : vector<8x16xf32>
    %431 = math.tanh %430 : vector<8x16xf32>
    %cst_148 = arith.constant 5.000000e-01 : f32
    %432 = vector.broadcast %cst_148 : f32 to vector<8x16xf32>
    %433 = arith.mulf %432, %431 : vector<8x16xf32>
    %cst_149 = arith.constant 5.000000e-01 : f32
    %434 = vector.broadcast %cst_149 : f32 to vector<8x16xf32>
    %435 = arith.addf %433, %434 : vector<8x16xf32>
    %436 = vector.extract_strided_slice %363 {offsets = [0, 32], sizes = [8, 16], strides = [1, 1]} : vector<8x64xf32> to vector<8x16xf32>
    %437 = math.tanh %436 : vector<8x16xf32>
    %438 = vector.extract_strided_slice %363 {offsets = [0, 48], sizes = [8, 16], strides = [1, 1]} : vector<8x64xf32> to vector<8x16xf32>
    %cst_150 = arith.constant 5.000000e-01 : f32
    %439 = vector.broadcast %cst_150 : f32 to vector<8x16xf32>
    %440 = arith.mulf %439, %438 : vector<8x16xf32>
    %441 = math.tanh %440 : vector<8x16xf32>
    %cst_151 = arith.constant 5.000000e-01 : f32
    %442 = vector.broadcast %cst_151 : f32 to vector<8x16xf32>
    %443 = arith.mulf %442, %441 : vector<8x16xf32>
    %cst_152 = arith.constant 5.000000e-01 : f32
    %444 = vector.broadcast %cst_152 : f32 to vector<8x16xf32>
    %445 = arith.addf %443, %444 : vector<8x16xf32>
    %446 = arith.mulf %435, %342 : vector<8x16xf32>
    %447 = arith.mulf %427, %437 : vector<8x16xf32>
    %448 = arith.addf %446, %447 : vector<8x16xf32>
    %449 = math.tanh %448 : vector<8x16xf32>
    %450 = arith.mulf %445, %449 : vector<8x16xf32>
    %451 = arith.mulf %417, %448 : vector<8x16xf32>
    %452 = arith.mulf %419, %342 : vector<8x16xf32>
    %453 = arith.addf %451, %452 : vector<8x16xf32>
    %454 = arith.mulf %417, %450 : vector<8x16xf32>
    %455 = arith.mulf %419, %345 : vector<8x16xf32>
    %456 = arith.addf %454, %455 : vector<8x16xf32>
    %457 = arith.mulf %417, %450 : vector<8x16xf32>
    %458 = arith.index_cast %351 : i32 to index
    %c0_153 = arith.constant 0 : index
    %c0_154 = arith.constant 0 : index
    %459 = vector.load %arg11[%458, %c0_153, %c0_154] : memref<8x8x16xf32, #tpu.memory_space<vmem>>, vector<1x8x16xf32>
    %460 = vector.shape_cast %459 : vector<1x8x16xf32> to vector<8x16xf32>
    %461 = vector.shape_cast %457 : vector<8x16xf32> to vector<1x8x16xf32>
    tpu.vector_store %arg11[%458, %c0_153, %c0_154], %461 {strides = array<i32>} : memref<8x8x16xf32, #tpu.memory_space<vmem>>, vector<1x8x16xf32>,
    %c4_i32 = arith.constant 4 : i32
    %c7_i32_155 = arith.constant 7 : i32
    %462 = arith.subi %c7_i32_155, %c4_i32 : i32
    %463 = tpu.concatenate %407, %456 in 1 : vector<8x16xf32>, vector<8x16xf32> -> vector<8x32xf32>
    %cst_156 = arith.constant dense<0.000000e+00> : vector<8x128xf32>
    %464 = tpu.matmul %463, %16, %cst_156 {dimension_numbers = #tpu.dot_dimension_numbers<[1], [0], [0], [1], [0, 0, 1, 1], [], []>} : vector<8x32xf32>, vector<32x128xf32>, vector<8x128xf32> -> vector<8x128xf32>
    %465 = arith.index_cast %c4_i32 : i32 to index
    %c0_157 = arith.constant 0 : index
    %c0_158 = arith.constant 0 : index
    %466 = vector.load %arg8[%465, %c0_157, %c0_158] : memref<8x8x64xf32, #tpu.memory_space<vmem>>, vector<1x8x64xf32>
    %467 = vector.shape_cast %466 : vector<1x8x64xf32> to vector<8x64xf32>
    %468 = vector.extract_strided_slice %464 {offsets = [0, 0], sizes = [8, 64], strides = [1, 1]} : vector<8x128xf32> to vector<8x64xf32>
    %469 = arith.addf %467, %468 : vector<8x64xf32>
    %470 = arith.index_cast %462 : i32 to index
    %c0_159 = arith.constant 0 : index
    %c0_160 = arith.constant 0 : index
    %471 = vector.load %arg9[%470, %c0_159, %c0_160] : memref<8x8x64xf32, #tpu.memory_space<vmem>>, vector<1x8x64xf32>
    %472 = vector.shape_cast %471 : vector<1x8x64xf32> to vector<8x64xf32>
    %473 = vector.extract_strided_slice %464 {offsets = [0, 64], sizes = [8, 64], strides = [1, 1]} : vector<8x128xf32> to vector<8x64xf32>
    %474 = arith.addf %472, %473 : vector<8x64xf32>
    %475 = arith.index_cast %c4_i32 : i32 to index
    %c0_161 = arith.constant 0 : index
    %c0_162 = arith.constant 0 : index
    %476 = vector.load %arg1[%475, %c0_161, %c0_162] : memref<8x8x1xf32, #tpu.memory_space<vmem>>, vector<1x8x1xf32>
    %477 = vector.shape_cast %476 : vector<1x8x1xf32> to vector<8x1xf32>
    %478 = vector.shape_cast %477 : vector<8x1xf32> to vector<8x1xf32>
    %479 = vector.broadcast %478 : vector<8x1xf32> to vector<8x16xf32>
    %cst_163 = arith.constant 1.000000e+00 : f32
    %480 = vector.broadcast %cst_163 : f32 to vector<8x16xf32>
    %481 = arith.subf %480, %479 : vector<8x16xf32>
    %482 = vector.extract_strided_slice %469 {offsets = [0, 0], sizes = [8, 16], strides = [1, 1]} : vector<8x64xf32> to vector<8x16xf32>
    %cst_164 = arith.constant 5.000000e-01 : f32
    %483 = vector.broadcast %cst_164 : f32 to vector<8x16xf32>
    %484 = arith.mulf %483, %482 : vector<8x16xf32>
    %485 = math.tanh %484 : vector<8x16xf32>
    %cst_165 = arith.constant 5.000000e-01 : f32
    %486 = vector.broadcast %cst_165 : f32 to vector<8x16xf32>
    %487 = arith.mulf %486, %485 : vector<8x16xf32>
    %cst_166 = arith.constant 5.000000e-01 : f32
    %488 = vector.broadcast %cst_166 : f32 to vector<8x16xf32>
    %489 = arith.addf %487, %488 : vector<8x16xf32>
    %490 = vector.extract_strided_slice %469 {offsets = [0, 16], sizes = [8, 16], strides = [1, 1]} : vector<8x64xf32> to vector<8x16xf32>
    %cst_167 = arith.constant 5.000000e-01 : f32
    %491 = vector.broadcast %cst_167 : f32 to vector<8x16xf32>
    %492 = arith.mulf %491, %490 : vector<8x16xf32>
    %493 = math.tanh %492 : vector<8x16xf32>
    %cst_168 = arith.constant 5.000000e-01 : f32
    %494 = vector.broadcast %cst_168 : f32 to vector<8x16xf32>
    %495 = arith.mulf %494, %493 : vector<8x16xf32>
    %cst_169 = arith.constant 5.000000e-01 : f32
    %496 = vector.broadcast %cst_169 : f32 to vector<8x16xf32>
    %497 = arith.addf %495, %496 : vector<8x16xf32>
    %498 = vector.extract_strided_slice %469 {offsets = [0, 32], sizes = [8, 16], strides = [1, 1]} : vector<8x64xf32> to vector<8x16xf32>
    %499 = math.tanh %498 : vector<8x16xf32>
    %500 = vector.extract_strided_slice %469 {offsets = [0, 48], sizes = [8, 16], strides = [1, 1]} : vector<8x64xf32> to vector<8x16xf32>
    %cst_170 = arith.constant 5.000000e-01 : f32
    %501 = vector.broadcast %cst_170 : f32 to vector<8x16xf32>
    %502 = arith.mulf %501, %500 : vector<8x16xf32>
    %503 = math.tanh %502 : vector<8x16xf32>
    %cst_171 = arith.constant 5.000000e-01 : f32
    %504 = vector.broadcast %cst_171 : f32 to vector<8x16xf32>
    %505 = arith.mulf %504, %503 : vector<8x16xf32>
    %cst_172 = arith.constant 5.000000e-01 : f32
    %506 = vector.broadcast %cst_172 : f32 to vector<8x16xf32>
    %507 = arith.addf %505, %506 : vector<8x16xf32>
    %508 = arith.mulf %497, %404 : vector<8x16xf32>
    %509 = arith.mulf %489, %499 : vector<8x16xf32>
    %510 = arith.addf %508, %509 : vector<8x16xf32>
    %511 = math.tanh %510 : vector<8x16xf32>
    %512 = arith.mulf %507, %511 : vector<8x16xf32>
    %513 = arith.mulf %479, %510 : vector<8x16xf32>
    %514 = arith.mulf %481, %404 : vector<8x16xf32>
    %515 = arith.addf %513, %514 : vector<8x16xf32>
    %516 = arith.mulf %479, %512 : vector<8x16xf32>
    %517 = arith.mulf %481, %407 : vector<8x16xf32>
    %518 = arith.addf %516, %517 : vector<8x16xf32>
    %519 = arith.mulf %479, %512 : vector<8x16xf32>
    %520 = arith.index_cast %c4_i32 : i32 to index
    %c0_173 = arith.constant 0 : index
    %c0_174 = arith.constant 0 : index
    %521 = vector.load %arg10[%520, %c0_173, %c0_174] : memref<8x8x16xf32, #tpu.memory_space<vmem>>, vector<1x8x16xf32>
    %522 = vector.shape_cast %521 : vector<1x8x16xf32> to vector<8x16xf32>
    %523 = vector.shape_cast %519 : vector<8x16xf32> to vector<1x8x16xf32>
    tpu.vector_store %arg10[%520, %c0_173, %c0_174], %523 {strides = array<i32>} : memref<8x8x16xf32, #tpu.memory_space<vmem>>, vector<1x8x16xf32>,
    %524 = arith.index_cast %462 : i32 to index
    %c0_175 = arith.constant 0 : index
    %c0_176 = arith.constant 0 : index
    %525 = vector.load %arg1[%524, %c0_175, %c0_176] : memref<8x8x1xf32, #tpu.memory_space<vmem>>, vector<1x8x1xf32>
    %526 = vector.shape_cast %525 : vector<1x8x1xf32> to vector<8x1xf32>
    %527 = vector.shape_cast %526 : vector<8x1xf32> to vector<8x1xf32>
    %528 = vector.broadcast %527 : vector<8x1xf32> to vector<8x16xf32>
    %cst_177 = arith.constant 1.000000e+00 : f32
    %529 = vector.broadcast %cst_177 : f32 to vector<8x16xf32>
    %530 = arith.subf %529, %528 : vector<8x16xf32>
    %531 = vector.extract_strided_slice %474 {offsets = [0, 0], sizes = [8, 16], strides = [1, 1]} : vector<8x64xf32> to vector<8x16xf32>
    %cst_178 = arith.constant 5.000000e-01 : f32
    %532 = vector.broadcast %cst_178 : f32 to vector<8x16xf32>
    %533 = arith.mulf %532, %531 : vector<8x16xf32>
    %534 = math.tanh %533 : vector<8x16xf32>
    %cst_179 = arith.constant 5.000000e-01 : f32
    %535 = vector.broadcast %cst_179 : f32 to vector<8x16xf32>
    %536 = arith.mulf %535, %534 : vector<8x16xf32>
    %cst_180 = arith.constant 5.000000e-01 : f32
    %537 = vector.broadcast %cst_180 : f32 to vector<8x16xf32>
    %538 = arith.addf %536, %537 : vector<8x16xf32>
    %539 = vector.extract_strided_slice %474 {offsets = [0, 16], sizes = [8, 16], strides = [1, 1]} : vector<8x64xf32> to vector<8x16xf32>
    %cst_181 = arith.constant 5.000000e-01 : f32
    %540 = vector.broadcast %cst_181 : f32 to vector<8x16xf32>
    %541 = arith.mulf %540, %539 : vector<8x16xf32>
    %542 = math.tanh %541 : vector<8x16xf32>
    %cst_182 = arith.constant 5.000000e-01 : f32
    %543 = vector.broadcast %cst_182 : f32 to vector<8x16xf32>
    %544 = arith.mulf %543, %542 : vector<8x16xf32>
    %cst_183 = arith.constant 5.000000e-01 : f32
    %545 = vector.broadcast %cst_183 : f32 to vector<8x16xf32>
    %546 = arith.addf %544, %545 : vector<8x16xf32>
    %547 = vector.extract_strided_slice %474 {offsets = [0, 32], sizes = [8, 16], strides = [1, 1]} : vector<8x64xf32> to vector<8x16xf32>
    %548 = math.tanh %547 : vector<8x16xf32>
    %549 = vector.extract_strided_slice %474 {offsets = [0, 48], sizes = [8, 16], strides = [1, 1]} : vector<8x64xf32> to vector<8x16xf32>
    %cst_184 = arith.constant 5.000000e-01 : f32
    %550 = vector.broadcast %cst_184 : f32 to vector<8x16xf32>
    %551 = arith.mulf %550, %549 : vector<8x16xf32>
    %552 = math.tanh %551 : vector<8x16xf32>
    %cst_185 = arith.constant 5.000000e-01 : f32
    %553 = vector.broadcast %cst_185 : f32 to vector<8x16xf32>
    %554 = arith.mulf %553, %552 : vector<8x16xf32>
    %cst_186 = arith.constant 5.000000e-01 : f32
    %555 = vector.broadcast %cst_186 : f32 to vector<8x16xf32>
    %556 = arith.addf %554, %555 : vector<8x16xf32>
    %557 = arith.mulf %546, %453 : vector<8x16xf32>
    %558 = arith.mulf %538, %548 : vector<8x16xf32>
    %559 = arith.addf %557, %558 : vector<8x16xf32>
    %560 = math.tanh %559 : vector<8x16xf32>
    %561 = arith.mulf %556, %560 : vector<8x16xf32>
    %562 = arith.mulf %528, %559 : vector<8x16xf32>
    %563 = arith.mulf %530, %453 : vector<8x16xf32>
    %564 = arith.addf %562, %563 : vector<8x16xf32>
    %565 = arith.mulf %528, %561 : vector<8x16xf32>
    %566 = arith.mulf %530, %456 : vector<8x16xf32>
    %567 = arith.addf %565, %566 : vector<8x16xf32>
    %568 = arith.mulf %528, %561 : vector<8x16xf32>
    %569 = arith.index_cast %462 : i32 to index
    %c0_187 = arith.constant 0 : index
    %c0_188 = arith.constant 0 : index
    %570 = vector.load %arg11[%569, %c0_187, %c0_188] : memref<8x8x16xf32, #tpu.memory_space<vmem>>, vector<1x8x16xf32>
    %571 = vector.shape_cast %570 : vector<1x8x16xf32> to vector<8x16xf32>
    %572 = vector.shape_cast %568 : vector<8x16xf32> to vector<1x8x16xf32>
    tpu.vector_store %arg11[%569, %c0_187, %c0_188], %572 {strides = array<i32>} : memref<8x8x16xf32, #tpu.memory_space<vmem>>, vector<1x8x16xf32>,
    %c5_i32 = arith.constant 5 : i32
    %c7_i32_189 = arith.constant 7 : i32
    %573 = arith.subi %c7_i32_189, %c5_i32 : i32
    %574 = tpu.concatenate %518, %567 in 1 : vector<8x16xf32>, vector<8x16xf32> -> vector<8x32xf32>
    %cst_190 = arith.constant dense<0.000000e+00> : vector<8x128xf32>
    %575 = tpu.matmul %574, %16, %cst_190 {dimension_numbers = #tpu.dot_dimension_numbers<[1], [0], [0], [1], [0, 0, 1, 1], [], []>} : vector<8x32xf32>, vector<32x128xf32>, vector<8x128xf32> -> vector<8x128xf32>
    %576 = arith.index_cast %c5_i32 : i32 to index
    %c0_191 = arith.constant 0 : index
    %c0_192 = arith.constant 0 : index
    %577 = vector.load %arg8[%576, %c0_191, %c0_192] : memref<8x8x64xf32, #tpu.memory_space<vmem>>, vector<1x8x64xf32>
    %578 = vector.shape_cast %577 : vector<1x8x64xf32> to vector<8x64xf32>
    %579 = vector.extract_strided_slice %575 {offsets = [0, 0], sizes = [8, 64], strides = [1, 1]} : vector<8x128xf32> to vector<8x64xf32>
    %580 = arith.addf %578, %579 : vector<8x64xf32>
    %581 = arith.index_cast %573 : i32 to index
    %c0_193 = arith.constant 0 : index
    %c0_194 = arith.constant 0 : index
    %582 = vector.load %arg9[%581, %c0_193, %c0_194] : memref<8x8x64xf32, #tpu.memory_space<vmem>>, vector<1x8x64xf32>
    %583 = vector.shape_cast %582 : vector<1x8x64xf32> to vector<8x64xf32>
    %584 = vector.extract_strided_slice %575 {offsets = [0, 64], sizes = [8, 64], strides = [1, 1]} : vector<8x128xf32> to vector<8x64xf32>
    %585 = arith.addf %583, %584 : vector<8x64xf32>
    %586 = arith.index_cast %c5_i32 : i32 to index
    %c0_195 = arith.constant 0 : index
    %c0_196 = arith.constant 0 : index
    %587 = vector.load %arg1[%586, %c0_195, %c0_196] : memref<8x8x1xf32, #tpu.memory_space<vmem>>, vector<1x8x1xf32>
    %588 = vector.shape_cast %587 : vector<1x8x1xf32> to vector<8x1xf32>
    %589 = vector.shape_cast %588 : vector<8x1xf32> to vector<8x1xf32>
    %590 = vector.broadcast %589 : vector<8x1xf32> to vector<8x16xf32>
    %cst_197 = arith.constant 1.000000e+00 : f32
    %591 = vector.broadcast %cst_197 : f32 to vector<8x16xf32>
    %592 = arith.subf %591, %590 : vector<8x16xf32>
    %593 = vector.extract_strided_slice %580 {offsets = [0, 0], sizes = [8, 16], strides = [1, 1]} : vector<8x64xf32> to vector<8x16xf32>
    %cst_198 = arith.constant 5.000000e-01 : f32
    %594 = vector.broadcast %cst_198 : f32 to vector<8x16xf32>
    %595 = arith.mulf %594, %593 : vector<8x16xf32>
    %596 = math.tanh %595 : vector<8x16xf32>
    %cst_199 = arith.constant 5.000000e-01 : f32
    %597 = vector.broadcast %cst_199 : f32 to vector<8x16xf32>
    %598 = arith.mulf %597, %596 : vector<8x16xf32>
    %cst_200 = arith.constant 5.000000e-01 : f32
    %599 = vector.broadcast %cst_200 : f32 to vector<8x16xf32>
    %600 = arith.addf %598, %599 : vector<8x16xf32>
    %601 = vector.extract_strided_slice %580 {offsets = [0, 16], sizes = [8, 16], strides = [1, 1]} : vector<8x64xf32> to vector<8x16xf32>
    %cst_201 = arith.constant 5.000000e-01 : f32
    %602 = vector.broadcast %cst_201 : f32 to vector<8x16xf32>
    %603 = arith.mulf %602, %601 : vector<8x16xf32>
    %604 = math.tanh %603 : vector<8x16xf32>
    %cst_202 = arith.constant 5.000000e-01 : f32
    %605 = vector.broadcast %cst_202 : f32 to vector<8x16xf32>
    %606 = arith.mulf %605, %604 : vector<8x16xf32>
    %cst_203 = arith.constant 5.000000e-01 : f32
    %607 = vector.broadcast %cst_203 : f32 to vector<8x16xf32>
    %608 = arith.addf %606, %607 : vector<8x16xf32>
    %609 = vector.extract_strided_slice %580 {offsets = [0, 32], sizes = [8, 16], strides = [1, 1]} : vector<8x64xf32> to vector<8x16xf32>
    %610 = math.tanh %609 : vector<8x16xf32>
    %611 = vector.extract_strided_slice %580 {offsets = [0, 48], sizes = [8, 16], strides = [1, 1]} : vector<8x64xf32> to vector<8x16xf32>
    %cst_204 = arith.constant 5.000000e-01 : f32
    %612 = vector.broadcast %cst_204 : f32 to vector<8x16xf32>
    %613 = arith.mulf %612, %611 : vector<8x16xf32>
    %614 = math.tanh %613 : vector<8x16xf32>
    %cst_205 = arith.constant 5.000000e-01 : f32
    %615 = vector.broadcast %cst_205 : f32 to vector<8x16xf32>
    %616 = arith.mulf %615, %614 : vector<8x16xf32>
    %cst_206 = arith.constant 5.000000e-01 : f32
    %617 = vector.broadcast %cst_206 : f32 to vector<8x16xf32>
    %618 = arith.addf %616, %617 : vector<8x16xf32>
    %619 = arith.mulf %608, %515 : vector<8x16xf32>
    %620 = arith.mulf %600, %610 : vector<8x16xf32>
    %621 = arith.addf %619, %620 : vector<8x16xf32>
    %622 = math.tanh %621 : vector<8x16xf32>
    %623 = arith.mulf %618, %622 : vector<8x16xf32>
    %624 = arith.mulf %590, %621 : vector<8x16xf32>
    %625 = arith.mulf %592, %515 : vector<8x16xf32>
    %626 = arith.addf %624, %625 : vector<8x16xf32>
    %627 = arith.mulf %590, %623 : vector<8x16xf32>
    %628 = arith.mulf %592, %518 : vector<8x16xf32>
    %629 = arith.addf %627, %628 : vector<8x16xf32>
    %630 = arith.mulf %590, %623 : vector<8x16xf32>
    %631 = arith.index_cast %c5_i32 : i32 to index
    %c0_207 = arith.constant 0 : index
    %c0_208 = arith.constant 0 : index
    %632 = vector.load %arg10[%631, %c0_207, %c0_208] : memref<8x8x16xf32, #tpu.memory_space<vmem>>, vector<1x8x16xf32>
    %633 = vector.shape_cast %632 : vector<1x8x16xf32> to vector<8x16xf32>
    %634 = vector.shape_cast %630 : vector<8x16xf32> to vector<1x8x16xf32>
    tpu.vector_store %arg10[%631, %c0_207, %c0_208], %634 {strides = array<i32>} : memref<8x8x16xf32, #tpu.memory_space<vmem>>, vector<1x8x16xf32>,
    %635 = arith.index_cast %573 : i32 to index
    %c0_209 = arith.constant 0 : index
    %c0_210 = arith.constant 0 : index
    %636 = vector.load %arg1[%635, %c0_209, %c0_210] : memref<8x8x1xf32, #tpu.memory_space<vmem>>, vector<1x8x1xf32>
    %637 = vector.shape_cast %636 : vector<1x8x1xf32> to vector<8x1xf32>
    %638 = vector.shape_cast %637 : vector<8x1xf32> to vector<8x1xf32>
    %639 = vector.broadcast %638 : vector<8x1xf32> to vector<8x16xf32>
    %cst_211 = arith.constant 1.000000e+00 : f32
    %640 = vector.broadcast %cst_211 : f32 to vector<8x16xf32>
    %641 = arith.subf %640, %639 : vector<8x16xf32>
    %642 = vector.extract_strided_slice %585 {offsets = [0, 0], sizes = [8, 16], strides = [1, 1]} : vector<8x64xf32> to vector<8x16xf32>
    %cst_212 = arith.constant 5.000000e-01 : f32
    %643 = vector.broadcast %cst_212 : f32 to vector<8x16xf32>
    %644 = arith.mulf %643, %642 : vector<8x16xf32>
    %645 = math.tanh %644 : vector<8x16xf32>
    %cst_213 = arith.constant 5.000000e-01 : f32
    %646 = vector.broadcast %cst_213 : f32 to vector<8x16xf32>
    %647 = arith.mulf %646, %645 : vector<8x16xf32>
    %cst_214 = arith.constant 5.000000e-01 : f32
    %648 = vector.broadcast %cst_214 : f32 to vector<8x16xf32>
    %649 = arith.addf %647, %648 : vector<8x16xf32>
    %650 = vector.extract_strided_slice %585 {offsets = [0, 16], sizes = [8, 16], strides = [1, 1]} : vector<8x64xf32> to vector<8x16xf32>
    %cst_215 = arith.constant 5.000000e-01 : f32
    %651 = vector.broadcast %cst_215 : f32 to vector<8x16xf32>
    %652 = arith.mulf %651, %650 : vector<8x16xf32>
    %653 = math.tanh %652 : vector<8x16xf32>
    %cst_216 = arith.constant 5.000000e-01 : f32
    %654 = vector.broadcast %cst_216 : f32 to vector<8x16xf32>
    %655 = arith.mulf %654, %653 : vector<8x16xf32>
    %cst_217 = arith.constant 5.000000e-01 : f32
    %656 = vector.broadcast %cst_217 : f32 to vector<8x16xf32>
    %657 = arith.addf %655, %656 : vector<8x16xf32>
    %658 = vector.extract_strided_slice %585 {offsets = [0, 32], sizes = [8, 16], strides = [1, 1]} : vector<8x64xf32> to vector<8x16xf32>
    %659 = math.tanh %658 : vector<8x16xf32>
    %660 = vector.extract_strided_slice %585 {offsets = [0, 48], sizes = [8, 16], strides = [1, 1]} : vector<8x64xf32> to vector<8x16xf32>
    %cst_218 = arith.constant 5.000000e-01 : f32
    %661 = vector.broadcast %cst_218 : f32 to vector<8x16xf32>
    %662 = arith.mulf %661, %660 : vector<8x16xf32>
    %663 = math.tanh %662 : vector<8x16xf32>
    %cst_219 = arith.constant 5.000000e-01 : f32
    %664 = vector.broadcast %cst_219 : f32 to vector<8x16xf32>
    %665 = arith.mulf %664, %663 : vector<8x16xf32>
    %cst_220 = arith.constant 5.000000e-01 : f32
    %666 = vector.broadcast %cst_220 : f32 to vector<8x16xf32>
    %667 = arith.addf %665, %666 : vector<8x16xf32>
    %668 = arith.mulf %657, %564 : vector<8x16xf32>
    %669 = arith.mulf %649, %659 : vector<8x16xf32>
    %670 = arith.addf %668, %669 : vector<8x16xf32>
    %671 = math.tanh %670 : vector<8x16xf32>
    %672 = arith.mulf %667, %671 : vector<8x16xf32>
    %673 = arith.mulf %639, %670 : vector<8x16xf32>
    %674 = arith.mulf %641, %564 : vector<8x16xf32>
    %675 = arith.addf %673, %674 : vector<8x16xf32>
    %676 = arith.mulf %639, %672 : vector<8x16xf32>
    %677 = arith.mulf %641, %567 : vector<8x16xf32>
    %678 = arith.addf %676, %677 : vector<8x16xf32>
    %679 = arith.mulf %639, %672 : vector<8x16xf32>
    %680 = arith.index_cast %573 : i32 to index
    %c0_221 = arith.constant 0 : index
    %c0_222 = arith.constant 0 : index
    %681 = vector.load %arg11[%680, %c0_221, %c0_222] : memref<8x8x16xf32, #tpu.memory_space<vmem>>, vector<1x8x16xf32>
    %682 = vector.shape_cast %681 : vector<1x8x16xf32> to vector<8x16xf32>
    %683 = vector.shape_cast %679 : vector<8x16xf32> to vector<1x8x16xf32>
    tpu.vector_store %arg11[%680, %c0_221, %c0_222], %683 {strides = array<i32>} : memref<8x8x16xf32, #tpu.memory_space<vmem>>, vector<1x8x16xf32>,
    %c6_i32 = arith.constant 6 : i32
    %c7_i32_223 = arith.constant 7 : i32
    %684 = arith.subi %c7_i32_223, %c6_i32 : i32
    %685 = tpu.concatenate %629, %678 in 1 : vector<8x16xf32>, vector<8x16xf32> -> vector<8x32xf32>
    %cst_224 = arith.constant dense<0.000000e+00> : vector<8x128xf32>
    %686 = tpu.matmul %685, %16, %cst_224 {dimension_numbers = #tpu.dot_dimension_numbers<[1], [0], [0], [1], [0, 0, 1, 1], [], []>} : vector<8x32xf32>, vector<32x128xf32>, vector<8x128xf32> -> vector<8x128xf32>
    %687 = arith.index_cast %c6_i32 : i32 to index
    %c0_225 = arith.constant 0 : index
    %c0_226 = arith.constant 0 : index
    %688 = vector.load %arg8[%687, %c0_225, %c0_226] : memref<8x8x64xf32, #tpu.memory_space<vmem>>, vector<1x8x64xf32>
    %689 = vector.shape_cast %688 : vector<1x8x64xf32> to vector<8x64xf32>
    %690 = vector.extract_strided_slice %686 {offsets = [0, 0], sizes = [8, 64], strides = [1, 1]} : vector<8x128xf32> to vector<8x64xf32>
    %691 = arith.addf %689, %690 : vector<8x64xf32>
    %692 = arith.index_cast %684 : i32 to index
    %c0_227 = arith.constant 0 : index
    %c0_228 = arith.constant 0 : index
    %693 = vector.load %arg9[%692, %c0_227, %c0_228] : memref<8x8x64xf32, #tpu.memory_space<vmem>>, vector<1x8x64xf32>
    %694 = vector.shape_cast %693 : vector<1x8x64xf32> to vector<8x64xf32>
    %695 = vector.extract_strided_slice %686 {offsets = [0, 64], sizes = [8, 64], strides = [1, 1]} : vector<8x128xf32> to vector<8x64xf32>
    %696 = arith.addf %694, %695 : vector<8x64xf32>
    %697 = arith.index_cast %c6_i32 : i32 to index
    %c0_229 = arith.constant 0 : index
    %c0_230 = arith.constant 0 : index
    %698 = vector.load %arg1[%697, %c0_229, %c0_230] : memref<8x8x1xf32, #tpu.memory_space<vmem>>, vector<1x8x1xf32>
    %699 = vector.shape_cast %698 : vector<1x8x1xf32> to vector<8x1xf32>
    %700 = vector.shape_cast %699 : vector<8x1xf32> to vector<8x1xf32>
    %701 = vector.broadcast %700 : vector<8x1xf32> to vector<8x16xf32>
    %cst_231 = arith.constant 1.000000e+00 : f32
    %702 = vector.broadcast %cst_231 : f32 to vector<8x16xf32>
    %703 = arith.subf %702, %701 : vector<8x16xf32>
    %704 = vector.extract_strided_slice %691 {offsets = [0, 0], sizes = [8, 16], strides = [1, 1]} : vector<8x64xf32> to vector<8x16xf32>
    %cst_232 = arith.constant 5.000000e-01 : f32
    %705 = vector.broadcast %cst_232 : f32 to vector<8x16xf32>
    %706 = arith.mulf %705, %704 : vector<8x16xf32>
    %707 = math.tanh %706 : vector<8x16xf32>
    %cst_233 = arith.constant 5.000000e-01 : f32
    %708 = vector.broadcast %cst_233 : f32 to vector<8x16xf32>
    %709 = arith.mulf %708, %707 : vector<8x16xf32>
    %cst_234 = arith.constant 5.000000e-01 : f32
    %710 = vector.broadcast %cst_234 : f32 to vector<8x16xf32>
    %711 = arith.addf %709, %710 : vector<8x16xf32>
    %712 = vector.extract_strided_slice %691 {offsets = [0, 16], sizes = [8, 16], strides = [1, 1]} : vector<8x64xf32> to vector<8x16xf32>
    %cst_235 = arith.constant 5.000000e-01 : f32
    %713 = vector.broadcast %cst_235 : f32 to vector<8x16xf32>
    %714 = arith.mulf %713, %712 : vector<8x16xf32>
    %715 = math.tanh %714 : vector<8x16xf32>
    %cst_236 = arith.constant 5.000000e-01 : f32
    %716 = vector.broadcast %cst_236 : f32 to vector<8x16xf32>
    %717 = arith.mulf %716, %715 : vector<8x16xf32>
    %cst_237 = arith.constant 5.000000e-01 : f32
    %718 = vector.broadcast %cst_237 : f32 to vector<8x16xf32>
    %719 = arith.addf %717, %718 : vector<8x16xf32>
    %720 = vector.extract_strided_slice %691 {offsets = [0, 32], sizes = [8, 16], strides = [1, 1]} : vector<8x64xf32> to vector<8x16xf32>
    %721 = math.tanh %720 : vector<8x16xf32>
    %722 = vector.extract_strided_slice %691 {offsets = [0, 48], sizes = [8, 16], strides = [1, 1]} : vector<8x64xf32> to vector<8x16xf32>
    %cst_238 = arith.constant 5.000000e-01 : f32
    %723 = vector.broadcast %cst_238 : f32 to vector<8x16xf32>
    %724 = arith.mulf %723, %722 : vector<8x16xf32>
    %725 = math.tanh %724 : vector<8x16xf32>
    %cst_239 = arith.constant 5.000000e-01 : f32
    %726 = vector.broadcast %cst_239 : f32 to vector<8x16xf32>
    %727 = arith.mulf %726, %725 : vector<8x16xf32>
    %cst_240 = arith.constant 5.000000e-01 : f32
    %728 = vector.broadcast %cst_240 : f32 to vector<8x16xf32>
    %729 = arith.addf %727, %728 : vector<8x16xf32>
    %730 = arith.mulf %719, %626 : vector<8x16xf32>
    %731 = arith.mulf %711, %721 : vector<8x16xf32>
    %732 = arith.addf %730, %731 : vector<8x16xf32>
    %733 = math.tanh %732 : vector<8x16xf32>
    %734 = arith.mulf %729, %733 : vector<8x16xf32>
    %735 = arith.mulf %701, %732 : vector<8x16xf32>
    %736 = arith.mulf %703, %626 : vector<8x16xf32>
    %737 = arith.addf %735, %736 : vector<8x16xf32>
    %738 = arith.mulf %701, %734 : vector<8x16xf32>
    %739 = arith.mulf %703, %629 : vector<8x16xf32>
    %740 = arith.addf %738, %739 : vector<8x16xf32>
    %741 = arith.mulf %701, %734 : vector<8x16xf32>
    %742 = arith.index_cast %c6_i32 : i32 to index
    %c0_241 = arith.constant 0 : index
    %c0_242 = arith.constant 0 : index
    %743 = vector.load %arg10[%742, %c0_241, %c0_242] : memref<8x8x16xf32, #tpu.memory_space<vmem>>, vector<1x8x16xf32>
    %744 = vector.shape_cast %743 : vector<1x8x16xf32> to vector<8x16xf32>
    %745 = vector.shape_cast %741 : vector<8x16xf32> to vector<1x8x16xf32>
    tpu.vector_store %arg10[%742, %c0_241, %c0_242], %745 {strides = array<i32>} : memref<8x8x16xf32, #tpu.memory_space<vmem>>, vector<1x8x16xf32>,
    %746 = arith.index_cast %684 : i32 to index
    %c0_243 = arith.constant 0 : index
    %c0_244 = arith.constant 0 : index
    %747 = vector.load %arg1[%746, %c0_243, %c0_244] : memref<8x8x1xf32, #tpu.memory_space<vmem>>, vector<1x8x1xf32>
    %748 = vector.shape_cast %747 : vector<1x8x1xf32> to vector<8x1xf32>
    %749 = vector.shape_cast %748 : vector<8x1xf32> to vector<8x1xf32>
    %750 = vector.broadcast %749 : vector<8x1xf32> to vector<8x16xf32>
    %cst_245 = arith.constant 1.000000e+00 : f32
    %751 = vector.broadcast %cst_245 : f32 to vector<8x16xf32>
    %752 = arith.subf %751, %750 : vector<8x16xf32>
    %753 = vector.extract_strided_slice %696 {offsets = [0, 0], sizes = [8, 16], strides = [1, 1]} : vector<8x64xf32> to vector<8x16xf32>
    %cst_246 = arith.constant 5.000000e-01 : f32
    %754 = vector.broadcast %cst_246 : f32 to vector<8x16xf32>
    %755 = arith.mulf %754, %753 : vector<8x16xf32>
    %756 = math.tanh %755 : vector<8x16xf32>
    %cst_247 = arith.constant 5.000000e-01 : f32
    %757 = vector.broadcast %cst_247 : f32 to vector<8x16xf32>
    %758 = arith.mulf %757, %756 : vector<8x16xf32>
    %cst_248 = arith.constant 5.000000e-01 : f32
    %759 = vector.broadcast %cst_248 : f32 to vector<8x16xf32>
    %760 = arith.addf %758, %759 : vector<8x16xf32>
    %761 = vector.extract_strided_slice %696 {offsets = [0, 16], sizes = [8, 16], strides = [1, 1]} : vector<8x64xf32> to vector<8x16xf32>
    %cst_249 = arith.constant 5.000000e-01 : f32
    %762 = vector.broadcast %cst_249 : f32 to vector<8x16xf32>
    %763 = arith.mulf %762, %761 : vector<8x16xf32>
    %764 = math.tanh %763 : vector<8x16xf32>
    %cst_250 = arith.constant 5.000000e-01 : f32
    %765 = vector.broadcast %cst_250 : f32 to vector<8x16xf32>
    %766 = arith.mulf %765, %764 : vector<8x16xf32>
    %cst_251 = arith.constant 5.000000e-01 : f32
    %767 = vector.broadcast %cst_251 : f32 to vector<8x16xf32>
    %768 = arith.addf %766, %767 : vector<8x16xf32>
    %769 = vector.extract_strided_slice %696 {offsets = [0, 32], sizes = [8, 16], strides = [1, 1]} : vector<8x64xf32> to vector<8x16xf32>
    %770 = math.tanh %769 : vector<8x16xf32>
    %771 = vector.extract_strided_slice %696 {offsets = [0, 48], sizes = [8, 16], strides = [1, 1]} : vector<8x64xf32> to vector<8x16xf32>
    %cst_252 = arith.constant 5.000000e-01 : f32
    %772 = vector.broadcast %cst_252 : f32 to vector<8x16xf32>
    %773 = arith.mulf %772, %771 : vector<8x16xf32>
    %774 = math.tanh %773 : vector<8x16xf32>
    %cst_253 = arith.constant 5.000000e-01 : f32
    %775 = vector.broadcast %cst_253 : f32 to vector<8x16xf32>
    %776 = arith.mulf %775, %774 : vector<8x16xf32>
    %cst_254 = arith.constant 5.000000e-01 : f32
    %777 = vector.broadcast %cst_254 : f32 to vector<8x16xf32>
    %778 = arith.addf %776, %777 : vector<8x16xf32>
    %779 = arith.mulf %768, %675 : vector<8x16xf32>
    %780 = arith.mulf %760, %770 : vector<8x16xf32>
    %781 = arith.addf %779, %780 : vector<8x16xf32>
    %782 = math.tanh %781 : vector<8x16xf32>
    %783 = arith.mulf %778, %782 : vector<8x16xf32>
    %784 = arith.mulf %750, %781 : vector<8x16xf32>
    %785 = arith.mulf %752, %675 : vector<8x16xf32>
    %786 = arith.addf %784, %785 : vector<8x16xf32>
    %787 = arith.mulf %750, %783 : vector<8x16xf32>
    %788 = arith.mulf %752, %678 : vector<8x16xf32>
    %789 = arith.addf %787, %788 : vector<8x16xf32>
    %790 = arith.mulf %750, %783 : vector<8x16xf32>
    %791 = arith.index_cast %684 : i32 to index
    %c0_255 = arith.constant 0 : index
    %c0_256 = arith.constant 0 : index
    %792 = vector.load %arg11[%791, %c0_255, %c0_256] : memref<8x8x16xf32, #tpu.memory_space<vmem>>, vector<1x8x16xf32>
    %793 = vector.shape_cast %792 : vector<1x8x16xf32> to vector<8x16xf32>
    %794 = vector.shape_cast %790 : vector<8x16xf32> to vector<1x8x16xf32>
    tpu.vector_store %arg11[%791, %c0_255, %c0_256], %794 {strides = array<i32>} : memref<8x8x16xf32, #tpu.memory_space<vmem>>, vector<1x8x16xf32>,
    %c7_i32_257 = arith.constant 7 : i32
    %c7_i32_258 = arith.constant 7 : i32
    %795 = arith.subi %c7_i32_258, %c7_i32_257 : i32
    %796 = tpu.concatenate %740, %789 in 1 : vector<8x16xf32>, vector<8x16xf32> -> vector<8x32xf32>
    %cst_259 = arith.constant dense<0.000000e+00> : vector<8x128xf32>
    %797 = tpu.matmul %796, %16, %cst_259 {dimension_numbers = #tpu.dot_dimension_numbers<[1], [0], [0], [1], [0, 0, 1, 1], [], []>} : vector<8x32xf32>, vector<32x128xf32>, vector<8x128xf32> -> vector<8x128xf32>
    %798 = arith.index_cast %c7_i32_257 : i32 to index
    %c0_260 = arith.constant 0 : index
    %c0_261 = arith.constant 0 : index
    %799 = vector.load %arg8[%798, %c0_260, %c0_261] : memref<8x8x64xf32, #tpu.memory_space<vmem>>, vector<1x8x64xf32>
    %800 = vector.shape_cast %799 : vector<1x8x64xf32> to vector<8x64xf32>
    %801 = vector.extract_strided_slice %797 {offsets = [0, 0], sizes = [8, 64], strides = [1, 1]} : vector<8x128xf32> to vector<8x64xf32>
    %802 = arith.addf %800, %801 : vector<8x64xf32>
    %803 = arith.index_cast %795 : i32 to index
    %c0_262 = arith.constant 0 : index
    %c0_263 = arith.constant 0 : index
    %804 = vector.load %arg9[%803, %c0_262, %c0_263] : memref<8x8x64xf32, #tpu.memory_space<vmem>>, vector<1x8x64xf32>
    %805 = vector.shape_cast %804 : vector<1x8x64xf32> to vector<8x64xf32>
    %806 = vector.extract_strided_slice %797 {offsets = [0, 64], sizes = [8, 64], strides = [1, 1]} : vector<8x128xf32> to vector<8x64xf32>
    %807 = arith.addf %805, %806 : vector<8x64xf32>
    %808 = arith.index_cast %c7_i32_257 : i32 to index
    %c0_264 = arith.constant 0 : index
    %c0_265 = arith.constant 0 : index
    %809 = vector.load %arg1[%808, %c0_264, %c0_265] : memref<8x8x1xf32, #tpu.memory_space<vmem>>, vector<1x8x1xf32>
    %810 = vector.shape_cast %809 : vector<1x8x1xf32> to vector<8x1xf32>
    %811 = vector.shape_cast %810 : vector<8x1xf32> to vector<8x1xf32>
    %812 = vector.broadcast %811 : vector<8x1xf32> to vector<8x16xf32>
    %cst_266 = arith.constant 1.000000e+00 : f32
    %813 = vector.broadcast %cst_266 : f32 to vector<8x16xf32>
    %814 = arith.subf %813, %812 : vector<8x16xf32>
    %815 = vector.extract_strided_slice %802 {offsets = [0, 0], sizes = [8, 16], strides = [1, 1]} : vector<8x64xf32> to vector<8x16xf32>
    %cst_267 = arith.constant 5.000000e-01 : f32
    %816 = vector.broadcast %cst_267 : f32 to vector<8x16xf32>
    %817 = arith.mulf %816, %815 : vector<8x16xf32>
    %818 = math.tanh %817 : vector<8x16xf32>
    %cst_268 = arith.constant 5.000000e-01 : f32
    %819 = vector.broadcast %cst_268 : f32 to vector<8x16xf32>
    %820 = arith.mulf %819, %818 : vector<8x16xf32>
    %cst_269 = arith.constant 5.000000e-01 : f32
    %821 = vector.broadcast %cst_269 : f32 to vector<8x16xf32>
    %822 = arith.addf %820, %821 : vector<8x16xf32>
    %823 = vector.extract_strided_slice %802 {offsets = [0, 16], sizes = [8, 16], strides = [1, 1]} : vector<8x64xf32> to vector<8x16xf32>
    %cst_270 = arith.constant 5.000000e-01 : f32
    %824 = vector.broadcast %cst_270 : f32 to vector<8x16xf32>
    %825 = arith.mulf %824, %823 : vector<8x16xf32>
    %826 = math.tanh %825 : vector<8x16xf32>
    %cst_271 = arith.constant 5.000000e-01 : f32
    %827 = vector.broadcast %cst_271 : f32 to vector<8x16xf32>
    %828 = arith.mulf %827, %826 : vector<8x16xf32>
    %cst_272 = arith.constant 5.000000e-01 : f32
    %829 = vector.broadcast %cst_272 : f32 to vector<8x16xf32>
    %830 = arith.addf %828, %829 : vector<8x16xf32>
    %831 = vector.extract_strided_slice %802 {offsets = [0, 32], sizes = [8, 16], strides = [1, 1]} : vector<8x64xf32> to vector<8x16xf32>
    %832 = math.tanh %831 : vector<8x16xf32>
    %833 = vector.extract_strided_slice %802 {offsets = [0, 48], sizes = [8, 16], strides = [1, 1]} : vector<8x64xf32> to vector<8x16xf32>
    %cst_273 = arith.constant 5.000000e-01 : f32
    %834 = vector.broadcast %cst_273 : f32 to vector<8x16xf32>
    %835 = arith.mulf %834, %833 : vector<8x16xf32>
    %836 = math.tanh %835 : vector<8x16xf32>
    %cst_274 = arith.constant 5.000000e-01 : f32
    %837 = vector.broadcast %cst_274 : f32 to vector<8x16xf32>
    %838 = arith.mulf %837, %836 : vector<8x16xf32>
    %cst_275 = arith.constant 5.000000e-01 : f32
    %839 = vector.broadcast %cst_275 : f32 to vector<8x16xf32>
    %840 = arith.addf %838, %839 : vector<8x16xf32>
    %841 = arith.mulf %830, %737 : vector<8x16xf32>
    %842 = arith.mulf %822, %832 : vector<8x16xf32>
    %843 = arith.addf %841, %842 : vector<8x16xf32>
    %844 = math.tanh %843 : vector<8x16xf32>
    %845 = arith.mulf %840, %844 : vector<8x16xf32>
    %846 = arith.mulf %812, %843 : vector<8x16xf32>
    %847 = arith.mulf %814, %737 : vector<8x16xf32>
    %848 = arith.addf %846, %847 : vector<8x16xf32>
    %849 = arith.mulf %812, %845 : vector<8x16xf32>
    %850 = arith.mulf %814, %740 : vector<8x16xf32>
    %851 = arith.addf %849, %850 : vector<8x16xf32>
    %852 = arith.mulf %812, %845 : vector<8x16xf32>
    %853 = arith.index_cast %c7_i32_257 : i32 to index
    %c0_276 = arith.constant 0 : index
    %c0_277 = arith.constant 0 : index
    %854 = vector.load %arg10[%853, %c0_276, %c0_277] : memref<8x8x16xf32, #tpu.memory_space<vmem>>, vector<1x8x16xf32>
    %855 = vector.shape_cast %854 : vector<1x8x16xf32> to vector<8x16xf32>
    %856 = vector.shape_cast %852 : vector<8x16xf32> to vector<1x8x16xf32>
    tpu.vector_store %arg10[%853, %c0_276, %c0_277], %856 {strides = array<i32>} : memref<8x8x16xf32, #tpu.memory_space<vmem>>, vector<1x8x16xf32>,
    %857 = arith.index_cast %795 : i32 to index
    %c0_278 = arith.constant 0 : index
    %c0_279 = arith.constant 0 : index
    %858 = vector.load %arg1[%857, %c0_278, %c0_279] : memref<8x8x1xf32, #tpu.memory_space<vmem>>, vector<1x8x1xf32>
    %859 = vector.shape_cast %858 : vector<1x8x1xf32> to vector<8x1xf32>
    %860 = vector.shape_cast %859 : vector<8x1xf32> to vector<8x1xf32>
    %861 = vector.broadcast %860 : vector<8x1xf32> to vector<8x16xf32>
    %cst_280 = arith.constant 1.000000e+00 : f32
    %862 = vector.broadcast %cst_280 : f32 to vector<8x16xf32>
    %863 = arith.subf %862, %861 : vector<8x16xf32>
    %864 = vector.extract_strided_slice %807 {offsets = [0, 0], sizes = [8, 16], strides = [1, 1]} : vector<8x64xf32> to vector<8x16xf32>
    %cst_281 = arith.constant 5.000000e-01 : f32
    %865 = vector.broadcast %cst_281 : f32 to vector<8x16xf32>
    %866 = arith.mulf %865, %864 : vector<8x16xf32>
    %867 = math.tanh %866 : vector<8x16xf32>
    %cst_282 = arith.constant 5.000000e-01 : f32
    %868 = vector.broadcast %cst_282 : f32 to vector<8x16xf32>
    %869 = arith.mulf %868, %867 : vector<8x16xf32>
    %cst_283 = arith.constant 5.000000e-01 : f32
    %870 = vector.broadcast %cst_283 : f32 to vector<8x16xf32>
    %871 = arith.addf %869, %870 : vector<8x16xf32>
    %872 = vector.extract_strided_slice %807 {offsets = [0, 16], sizes = [8, 16], strides = [1, 1]} : vector<8x64xf32> to vector<8x16xf32>
    %cst_284 = arith.constant 5.000000e-01 : f32
    %873 = vector.broadcast %cst_284 : f32 to vector<8x16xf32>
    %874 = arith.mulf %873, %872 : vector<8x16xf32>
    %875 = math.tanh %874 : vector<8x16xf32>
    %cst_285 = arith.constant 5.000000e-01 : f32
    %876 = vector.broadcast %cst_285 : f32 to vector<8x16xf32>
    %877 = arith.mulf %876, %875 : vector<8x16xf32>
    %cst_286 = arith.constant 5.000000e-01 : f32
    %878 = vector.broadcast %cst_286 : f32 to vector<8x16xf32>
    %879 = arith.addf %877, %878 : vector<8x16xf32>
    %880 = vector.extract_strided_slice %807 {offsets = [0, 32], sizes = [8, 16], strides = [1, 1]} : vector<8x64xf32> to vector<8x16xf32>
    %881 = math.tanh %880 : vector<8x16xf32>
    %882 = vector.extract_strided_slice %807 {offsets = [0, 48], sizes = [8, 16], strides = [1, 1]} : vector<8x64xf32> to vector<8x16xf32>
    %cst_287 = arith.constant 5.000000e-01 : f32
    %883 = vector.broadcast %cst_287 : f32 to vector<8x16xf32>
    %884 = arith.mulf %883, %882 : vector<8x16xf32>
    %885 = math.tanh %884 : vector<8x16xf32>
    %cst_288 = arith.constant 5.000000e-01 : f32
    %886 = vector.broadcast %cst_288 : f32 to vector<8x16xf32>
    %887 = arith.mulf %886, %885 : vector<8x16xf32>
    %cst_289 = arith.constant 5.000000e-01 : f32
    %888 = vector.broadcast %cst_289 : f32 to vector<8x16xf32>
    %889 = arith.addf %887, %888 : vector<8x16xf32>
    %890 = arith.mulf %879, %786 : vector<8x16xf32>
    %891 = arith.mulf %871, %881 : vector<8x16xf32>
    %892 = arith.addf %890, %891 : vector<8x16xf32>
    %893 = math.tanh %892 : vector<8x16xf32>
    %894 = arith.mulf %889, %893 : vector<8x16xf32>
    %895 = arith.mulf %861, %892 : vector<8x16xf32>
    %896 = arith.mulf %863, %786 : vector<8x16xf32>
    %897 = arith.addf %895, %896 : vector<8x16xf32>
    %898 = arith.mulf %861, %894 : vector<8x16xf32>
    %899 = arith.mulf %863, %789 : vector<8x16xf32>
    %900 = arith.addf %898, %899 : vector<8x16xf32>
    %901 = arith.mulf %861, %894 : vector<8x16xf32>
    %902 = arith.index_cast %795 : i32 to index
    %c0_290 = arith.constant 0 : index
    %c0_291 = arith.constant 0 : index
    %903 = vector.load %arg11[%902, %c0_290, %c0_291] : memref<8x8x16xf32, #tpu.memory_space<vmem>>, vector<1x8x16xf32>
    %904 = vector.shape_cast %903 : vector<1x8x16xf32> to vector<8x16xf32>
    %905 = vector.shape_cast %901 : vector<8x16xf32> to vector<1x8x16xf32>
    tpu.vector_store %arg11[%902, %c0_290, %c0_291], %905 {strides = array<i32>} : memref<8x8x16xf32, #tpu.memory_space<vmem>>, vector<1x8x16xf32>,
    %c8_i32 = arith.constant 8 : i32
    %c0_292 = arith.constant 0 : index
    %c0_293 = arith.constant 0 : index
    %c0_294 = arith.constant 0 : index
    %906 = vector.load %arg10[%c0_292, %c0_293, %c0_294] : memref<8x8x16xf32, #tpu.memory_space<vmem>>, vector<8x8x16xf32>
    %c0_295 = arith.constant 0 : index
    %c0_296 = arith.constant 0 : index
    %c0_297 = arith.constant 0 : index
    %907 = vector.load %arg11[%c0_295, %c0_296, %c0_297] : memref<8x8x16xf32, #tpu.memory_space<vmem>>, vector<8x8x16xf32>
    %908 = tpu.concatenate %906, %907 in 2 : vector<8x8x16xf32>, vector<8x8x16xf32> -> vector<8x8x32xf32>
    %c0_298 = arith.constant 0 : index
    %c0_299 = arith.constant 0 : index
    %c0_300 = arith.constant 0 : index
    %909 = vector.load %arg7[%c0_298, %c0_299, %c0_300] : memref<8x8x32xf32, #tpu.memory_space<vmem>>, vector<8x8x32xf32>
    tpu.vector_store %arg7[%c0_298, %c0_299, %c0_300], %908 {strides = array<i32>} : memref<8x8x32xf32, #tpu.memory_space<vmem>>, vector<8x8x32xf32>,
    return
  }
}

</mosaic_0001>

<bundles_post_ra>
// kernel: feature_encoder_forward.2
= control target key start
LH: loop header
LB: loop body
LE: loop exit
PB: predicated region body
PF: predicated region fallthrough
CT: control target
= control target key end

     0   :  { %vm40_vm0 = vcmask 130048   ;;  %v1364_v11 = vmov 0.0   ;;  %vm106_vm1 = vcmask 523264   ;;  %v1367_v28 = vmov 0   ;;  %s1368_s24 = smov 16   ;;  %s1369_s29 = smov 32   ;;  %s1929_s2 = inlined_call_operand.vmem [shape: f32[16,64], index: 2, kind: input, shape index: {}]   ;;  %s1930_s0 = inlined_call_operand.vmem [shape: f32[8,8,16], index: 0, kind: input, shape index: {}]   ;;  %s1931_s6 = inlined_call_operand.vmem [shape: f32[32,128], index: 6, kind: input, shape index: {}]   ;;  %s1932_s3 = inlined_call_operand.vmem [shape: f32[16,64], index: 3, kind: input, shape index: {}]   ;;  %s1933_s4 = inlined_call_operand.vmem [shape: f32[1,64], index: 4, kind: input, shape index: {}]   ;;  %s1934_s5 = inlined_call_operand.vmem [shape: f32[1,64], index: 5, kind: input, shape index: {}]   ;;  %s1935_s1 = inlined_call_operand.vmem [shape: f32[8,8,1], index: 1, kind: input, shape index: {}]   ;;  %s1936_s7 = inlined_call_operand.vmem [shape: f32[8,8,32], index: 7, kind: output, shape index: {}]  }
   0x1   :  { %v35_v0 = vld [vmem:[%s1929_s2 + $0x8] sm:$0xff]  ;;  %v34_v1 = vld [vmem:[%s1929_s2] sm:$0xff]  ;;  %v32_v2 = vld [vmem:[%s1930_s0 + $0x30] sm:$0xff]  ;;  %1264 = vset.pattern.permute.xlu1 %v1367_v28  ;;  %1263 = vset.pattern.permute.xlu2 %v1367_v28  ;;  %s1370_s30 = smov 80   ;;  %vm174_vm2 = vcmask 261120  }
   0x2   :  { %1252 = vmatpush.msra.mxu2 %v35_v0  ;;  %79 = vmatpush.msra.mxu0 %v35_v0  ;;  %v1423_v3 = vld [vmem:[%s1931_s6 + $0x18] sm:$0xff]  ;;  %v26_v4 = vld [vmem:[%s1930_s0] sm:$0xff]  ;;  %v116_v5 = vld [vmem:[%s1932_s3 + $0x8] sm:$0xff] }
   0x3   :  { %v1435_v6 = vld [vmem:[%s1931_s6 + $0x10] sm:$0xff]  ;;  %v115_v7 = vld [vmem:[%s1932_s3] sm:$0xff]  ;;  %1254 = vmatpush.msra.mxu3 %v116_v5  ;;  %v1445_v8 = vld [vmem:[%s1931_s6 + $0x8] sm:$0xff]  ;;  %135 = vmatpush.msra.mxu1 %v116_v5 }
   0x4   :  { %1253 = vmatpush.msra.mxu2 %v34_v1  ;;  %80 = vmatpush.msra.mxu0 %v34_v1  ;;  %v1451_v9 = vld [vmem:[%s1931_s6] sm:$0xff]  ;;  %v33_v10 = vld [vmem:[%s1930_s0 + $0x38] sm:$0xff] }
   0x5   :  { %1221 = vmatmul.msk.f32.vlgmr.msra.gmra.mxu2 %vm40_vm0, %v32_v2  ;;  %1215 = vmatmul.msk.f32.vlgmr.msra.gmra.mxu0 %vm40_vm0, %v26_v4  ;;  %v1481_v12 = vld [vmem:[%s1933_s4] ss:$0 sm:$0xff]  ;;  %s1365_s4 = smov 64   ;;  %v1231_v39 = vld [vmem:[%s1935_s1 + $0x38] sm:$0xff] }
   0x6   :  { %190 = vmatpush.msrb.mxu2 %v1423_v3  ;;  %1255 = vmatpush.msra.mxu3 %v115_v7  ;;  %v1489_v17 = vld [vmem:[%s1934_s5] ss:$0 sm:$0xff]  ;;  %s1366_s5 = smov 96  }
   0x7   :  { %1229 = vmatmul.msk.f32.vlgmr.msra.gmra.mxu3 %vm40_vm0, %v32_v2  ;;  %136 = vmatpush.msra.mxu1 %v115_v7  ;;  %v207_v48 = vld [vmem:[%s1935_s1] sm:$0xff]  ;;  %v27_v7 = vld [vmem:[%s1930_s0 + $0x8] sm:$0xff] }
   0x8   :  { %191 = vmatpush.msrb.mxu2 %v1435_v6  ;;  %311 = vmatpush.msrb.mxu3 %v1423_v3 }
   0x9   :  { %1223 = vmatmul.msk.f32.vlgmr.msra.gmra.mxu1 %vm40_vm0, %v26_v4  ;;  %1265 = vset.pattern.permute.xlu0 %v1367_v28 }
   0xa   :  { %192 = vmatpush.msrb.mxu2 %v1445_v8  ;;  %312 = vmatpush.msrb.mxu3 %v1435_v6 }
   0xc   :  { %193 = vmatpush.msrb.mxu2 %v1451_v9  ;;  %313 = vmatpush.msrb.mxu3 %v1445_v8 }
   0xd   :  { %1222 = vmatmul.msk.f32.gmra.mxu2 %vm40_vm0, %v33_v10  ;;  %1216 = vmatmul.msk.f32.gmra.mxu0 %vm40_vm0, %v27_v7 }
   0xe   :  { %437 = vmatpush.msra.mxu2 %v1423_v3  ;;  %314 = vmatpush.msrb.mxu3 %v1451_v9 }
   0xf   :  { %1230 = vmatmul.msk.f32.gmra.mxu3 %vm40_vm0, %v33_v10 }
  0x10   :  { %438 = vmatpush.msra.mxu2 %v1435_v6  ;;  %563 = vmatpush.msra.mxu3 %v1423_v3 }
  0x11   :  { %1224 = vmatmul.msk.f32.gmra.mxu1 %vm40_vm0, %v27_v7 }
  0x12   :  { %439 = vmatpush.msra.mxu2 %v1445_v8  ;;  %564 = vmatpush.msra.mxu3 %v1435_v6 }
  0x14   :  { %440 = vmatpush.msra.mxu2 %v1451_v9  ;;  %565 = vmatpush.msra.mxu3 %v1445_v8 }
  0x15   :  { %194 = vmatmul.f32.vlgmr.msrb.gmra.mxu2 %v1364_v11 }
  0x16   :  { %689 = vmatpush.msrb.mxu2 %v1423_v3  ;;  %566 = vmatpush.msra.mxu3 %v1451_v9 }
  0x18   :  { %690 = vmatpush.msrb.mxu2 %v1435_v6 }
  0x1a   :  { %691 = vmatpush.msrb.mxu2 %v1445_v8 }
  0x1c   :  { %692 = vmatpush.msrb.mxu2 %v1451_v9 }
  0x82   :  { %v82_v13 = vpop.f32.mrf.mxu0 }
  0x83   :  { %v83_v14 = vadd.f32 %v1481_v12, %v82_v13 }
  0x85   :  { %107 = vst.msk [vmem:[#allocation2] sm:$0xff] %vm106_vm1, %v83_v14 }
  0x88   :  { %v100_v15 = vpop.f32.mrf.mxu2 }
  0x89   :  { %v101_v16 = vadd.f32 %v1481_v12, %v100_v15 }
  0x8a   :  { %v156_v18 = vpop.f32.mrf.mxu3  ;;  %v85_v14 = vpop.f32.mrf.mxu0 }
  0x8b   :  { %113 = vst.msk [vmem:[#allocation2 + $0x30] sm:$0xff] %vm106_vm1, %v101_v16  ;;  %v157_v19 = vadd.f32 %v1489_v17, %v156_v18  ;;  %v86_v15 = vadd.f32 %v1481_v12, %v85_v14 }
  0x8c   :  { %v198_v24 = vld [vmem:[#allocation2] sm:$0xff] }
  0x8d   :  { %168 = vst.msk [vmem:[#allocation3 + $0x30] sm:$0xff] %vm106_vm1, %v157_v19 }
  0x8e   :  { %108 = vst.msk [vmem:[#allocation2 + $0x8] sm:$0xff] %vm106_vm1, %v86_v15 }
  0x90   :  { %v103_v20 = vpop.f32.mrf.mxu2 }
  0x91   :  { %v104_v21 = vadd.f32 %v1481_v12, %v103_v20 }
  0x92   :  { %v159_v22 = vpop.f32.mrf.mxu3 }
  0x93   :  { %114 = vst.msk [vmem:[#allocation2 + $0x38] sm:$0xff] %vm106_vm1, %v104_v21  ;;  %v160_v23 = vadd.f32 %v1489_v17, %v159_v22 }
  0x94   :  { %v323_v21 = vld [vmem:[#allocation3 + $0x30] sm:$0xff] }
  0x95   :  { %169 = vst.msk [vmem:[#allocation3 + $0x38] sm:$0xff] %vm106_vm1, %v160_v23  ;;  %v320_v16 = vld [vmem:[#allocation2 + $0x8] sm:$0xff] }
  0x98   :  { %v195_v25 = vpop.f32.mrf.mxu2 }
  0x99   :  { %v199_v26 = vadd.f32 %v198_v24, %v195_v25  ;;  %203 = vrot.lane.b32.xlu0 %v195_v25, %s1365_s4 }
  0x9b   :  { %1268 = vtanh.f32 %v199_v26  ;;  %v214_v29 = vmul.f32 0.5, %v199_v26  ;;  %v1557_v26 = vld [vmem:[%s1935_s1 + $0x8] sm:$0xff] }
  0x9c   :  { %v201_v30 = vld [vmem:[#allocation3 + $0x38] sm:$0xff] }
  0x9d   :  { %1270 = vtanh.f32 %v214_v29 }
  0xa1   :  { %v1269_v27 = vpop.eup %1268 }
  0xa2   :  { %221 = vrot.lane.b32.xlu0 %v1269_v27, %s1366_s5 }
  0xa3   :  { %v1271_v33 = vpop.eup %1270 }
  0xa4   :  { %v216_v35 = vmul.f32 0.5, %v1271_v33 }
  0xa6   :  { %v217_v37 = vadd.f32 0.5, %v216_v35 }
  0xa8   :  { %v219_v46 = vmul.f32 0.0, %v217_v37 }
 0x10b   :  { %v204_v31 = vpop.permute.xlu0 %203 }
 0x10c   :  { %v206_v32 = vadd.f32 %v204_v31, %v201_v30 }
 0x10e   :  { %1272 = vtanh.f32 %v206_v32  ;;  %v254_v40 = vmul.f32 0.5, %v206_v32 }
 0x110   :  { %1274 = vtanh.f32 %v254_v40 }
 0x114   :  { %v1273_v34 = vpop.eup %1272  ;;  %v222_v36 = vpop.permute.xlu0 %221 }
 0x115   :  { %261 = vrot.lane.b32.xlu1 %v1273_v34, %s1366_s5  ;;  %v224_v38 = vmul.f32 %v222_v36, %v217_v37 }
 0x116   :  { %v1275_v41 = vpop.eup %1274 }
 0x117   :  { %v256_v42 = vmul.f32 0.5, %v1275_v41 }
 0x119   :  { %v257_v43 = vadd.f32 0.5, %v256_v42 }
 0x11b   :  { %v259_v51 = vmul.f32 0.0, %v257_v43 }
 0x11d   :  { %226 = vrot.lane.b32.xlu1 %v224_v38, %s1368_s24 }
 0x125   :  { %250 = vperm.xlu1 %1264, %v1231_v39  }
 0x187   :  { %v262_v44 = vpop.permute.xlu1 %261 }
 0x188   :  { %v264_v45 = vmul.f32 %v262_v44, %v257_v43  ;;  %v1566_v44 = vld [vmem:[%s1935_s1 + $0x30] sm:$0xff] }
 0x18a   :  { %266 = vrot.lane.b32.xlu2 %v264_v45, %s1368_s24 }
 0x18f   :  { %v227_v47 = vpop.permute.xlu1 %226 }
 0x190   :  { %v1509_v49 = vadd.f32 %v227_v47, %v219_v46 }
 0x192   :  { %1276 = vtanh.f32 %v1509_v49  ;;  %210 = vperm.xlu2 %1263, %v207_v48  }
 0x197   :  { %v1524_v62 = vpop.permute.xlu1 %250 }
 0x198   :  { %v1277_v50 = vpop.eup %1276  ;;  %v253_v63 = vsub.f32 1.0, %v1524_v62 }
 0x199   :  { %232 = vrot.lane.b32.xlu0 %v1277_v50, %s1369_s29 }
 0x19a   :  { %v1527_v2 = vmul.f32 0.0, %v253_v63 }
 0x1e4   :  { %v267_v52 = vpop.permute.xlu2 %266 }
 0x1e5   :  { %v1513_v53 = vadd.f32 %v267_v52, %v259_v51 }
 0x1e7   :  { %1278 = vtanh.f32 %v1513_v53 }
 0x1ec   :  { %v211_v55 = vpop.permute.xlu2 %210 }
 0x1ed   :  { %v1279_v54 = vpop.eup %1278  ;;  %v213_v56 = vsub.f32 1.0, %v211_v55  ;;  %v236_v35 = vmul.f32 %v1509_v49, %v211_v55 }
 0x1ee   :  { %272 = vrot.lane.b32.xlu2 %v1279_v54, %s1369_s29 }
 0x1ef   :  { %v237_v59 = vmul.f32 0.0, %v213_v56  ;;  %v276_v56 = vmul.f32 %v1513_v53, %v1524_v62 }
 0x20b   :  { %v233_v57 = vpop.permute.xlu0 %232 }
 0x20c   :  { %v235_v58 = vmul.f32 %v233_v57, %v217_v37  ;;  %v238_v37 = vadd.f32 %v237_v59, %v236_v35  ;;  %v278_v57 = vadd.f32 %v1527_v2, %v276_v56 }
 0x20e   :  { %v1517_v60 = vmul.f32 %v235_v58, %v211_v55 }
 0x210   :  { %v1520_v61 = vadd.f32 %v1517_v60, %v237_v59 }
 0x212   :  { %288 = vrot.lane.b32.xlu0 %v1520_v61, %s1370_s30 }
 0x248   :  { %v273_v0 = vpop.permute.xlu2 %272 }
 0x249   :  { %v275_v1 = vmul.f32 %v273_v0, %v257_v43 }
 0x24b   :  { %v1530_v4 = vmul.f32 %v275_v1, %v1524_v62 }
 0x24d   :  { %v1534_v5 = vadd.f32 %v1530_v4, %v1527_v2 }
 0x24f   :  { %292 = vrot.lane.b32.xlu1 %v1534_v5, %s1366_s5 }
 0x284   :  { %v289_v10 = vpop.permute.xlu0 %288 }
 0x2c1   :  { %v293_v11 = vpop.permute.xlu1 %292 }
 0x2c2   :  { %v295_v13 = vsel %vm40_vm0, %v289_v10, %v293_v11 }
 0x2c3   :  { %1232 = vmatmul.msk.f32.vlgmr.msrb.gmra.mxu3 %vm174_vm2, %v295_v13  ;;  %v28_v13 = vld [vmem:[%s1930_s0 + $0x10] sm:$0xff] }
 0x2c4   :  { %813 = vmatpush.msrb.mxu3 %v1423_v3  ;;  %1217 = vmatmul.msk.f32.gmra.mxu0 %vm40_vm0, %v28_v13 }
 0x2c5   :  { %1225 = vmatmul.msk.f32.gmra.mxu1 %vm40_vm0, %v28_v13  ;;  %v1649_v13 = vld [vmem:[%s1935_s1 + $0x28] sm:$0xff] }
 0x2c6   :  { %814 = vmatpush.msrb.mxu3 %v1435_v6 }
 0x2c8   :  { %815 = vmatpush.msrb.mxu3 %v1445_v8 }
 0x2ca   :  { %816 = vmatpush.msrb.mxu3 %v1451_v9 }
 0x346   :  { %v316_v18 = vpop.f32.mrf.mxu3 }
 0x347   :  { %v321_v19 = vadd.f32 %v320_v16, %v316_v18  ;;  %325 = vrot.lane.b32.xlu2 %v316_v18, %s1365_s4  ;;  %v29_v16 = vld [vmem:[%s1930_s0 + $0x18] sm:$0xff]  ;;  %v88_v18 = vpop.f32.mrf.mxu0 }
 0x348   :  { %1226 = vmatmul.msk.f32.gmra.mxu1 %vm40_vm0, %v29_v16  ;;  %1218 = vmatmul.msk.f32.gmra.mxu0 %vm40_vm0, %v29_v16 }
 0x349   :  { %1280 = vtanh.f32 %v321_v19  ;;  %v337_v25 = vmul.f32 0.5, %v321_v19  ;;  %v89_v19 = vadd.f32 %v1481_v12, %v88_v18 }
 0x34b   :  { %109 = vst.msk [vmem:[#allocation2 + $0x10] sm:$0xff] %vm106_vm1, %v89_v19 }
 0x34f   :  { %v1281_v20 = vpop.eup %1280 }
 0x350   :  { %344 = vrot.lane.b32.xlu0 %v1281_v20, %s1366_s5  ;;  %v31_v20 = vld [vmem:[%s1930_s0 + $0x28] sm:$0xff] }
 0x3a1   :  { %v326_v22 = vpop.permute.xlu2 %325 }
 0x3a2   :  { %v328_v23 = vadd.f32 %v326_v22, %v323_v21 }
 0x3a4   :  { %1282 = vtanh.f32 %v328_v23  ;;  %v379_v32 = vmul.f32 0.5, %v328_v23 }
 0x3a5   :  { %1284 = vtanh.f32 %v337_v25 }
 0x3a6   :  { %1286 = vtanh.f32 %v379_v32 }
 0x3aa   :  { %v1283_v24 = vpop.eup %1282 }
 0x3ab   :  { %386 = vrot.lane.b32.xlu1 %v1283_v24, %s1366_s5  ;;  %v1285_v27 = vpop.eup %1284  ;;  %v138_v24 = vpop.f32.mrf.mxu1 }
 0x3ac   :  { %v339_v28 = vmul.f32 0.5, %v1285_v27  ;;  %v1287_v33 = vpop.eup %1286  ;;  %v139_v25 = vadd.f32 %v1489_v17, %v138_v24 }
 0x3ad   :  { %v381_v34 = vmul.f32 0.5, %v1287_v33 }
 0x3ae   :  { %v340_v29 = vadd.f32 0.5, %v339_v28  ;;  %162 = vst.msk [vmem:[#allocation3] sm:$0xff] %vm106_vm1, %v139_v25 }
 0x3af   :  { %v382_v36 = vadd.f32 0.5, %v381_v34 }
 0x3b0   :  { %v342_v40 = vmul.f32 %v340_v29, %v238_v37 }
 0x3b1   :  { %v384_v58 = vmul.f32 %v382_v36, %v278_v57 }
 0x3b3   :  { %333 = vperm.xlu1 %1264, %v1557_v26   ;;  %v141_v27 = vpop.f32.mrf.mxu1 }
 0x3b4   :  { %v142_v28 = vadd.f32 %v1489_v17, %v141_v27 }
 0x3b6   :  { %163 = vst.msk [vmem:[#allocation3 + $0x8] sm:$0xff] %vm106_vm1, %v142_v28 }
 0x3c2   :  { %v345_v30 = vpop.permute.xlu0 %344 }
 0x3c3   :  { %v347_v31 = vmul.f32 %v345_v30, %v340_v29 }
 0x3c5   :  { %349 = vrot.lane.b32.xlu2 %v347_v31, %s1368_s24  ;;  %v446_v31 = vld [vmem:[#allocation2 + $0x10] sm:$0xff] }
 0x41d   :  { %v387_v38 = vpop.permute.xlu1 %386 }
 0x41e   :  { %v389_v39 = vmul.f32 %v387_v38, %v382_v36 }
 0x41f   :  { %v350_v41 = vpop.permute.xlu2 %349 }
 0x420   :  { %v352_v42 = vadd.f32 %v350_v41, %v342_v40  ;;  %391 = vrot.lane.b32.xlu0 %v389_v39, %s1368_s24 }
 0x422   :  { %1288 = vtanh.f32 %v352_v42 }
 0x425   :  { %v334_v43 = vpop.permute.xlu1 %333 }
 0x426   :  { %v336_v45 = vsub.f32 1.0, %v334_v43  ;;  %v359_v47 = vmul.f32 %v352_v42, %v334_v43 }
 0x428   :  { %v1289_v46 = vpop.eup %1288  ;;  %v360_v48 = vmul.f32 %v336_v45, %v238_v37  ;;  %375 = vperm.xlu0 %1265, %v1566_v44   ;;  %v363_v52 = vmul.f32 %v336_v45, %v1520_v61 }
 0x429   :  { %355 = vrot.lane.b32.xlu2 %v1289_v46, %s1369_s29 }
 0x42a   :  { %v1570_v49 = vadd.f32 %v360_v48, %v359_v47  ;;  %v1640_v47 = vld [vmem:[%s1935_s1 + $0x10] sm:$0xff] }
 0x483   :  { %v356_v50 = vpop.permute.xlu2 %355 }
 0x484   :  { %v358_v51 = vmul.f32 %v356_v50, %v340_v29  ;;  %v144_v29 = vpop.f32.mrf.mxu1 }
 0x485   :  { %v145_v30 = vadd.f32 %v1489_v17, %v144_v29 }
 0x486   :  { %v1573_v54 = vmul.f32 %v358_v51, %v334_v43 }
 0x487   :  { %164 = vst.msk [vmem:[#allocation3 + $0x10] sm:$0xff] %vm106_vm1, %v145_v30 }
 0x488   :  { %v1576_v55 = vadd.f32 %v363_v52, %v1573_v54 }
 0x48a   :  { %414 = vrot.lane.b32.xlu2 %v1576_v55, %s1370_s30 }
 0x48c   :  { %v147_v34 = vpop.f32.mrf.mxu1 }
 0x48d   :  { %v148_v35 = vadd.f32 %v1489_v17, %v147_v34 }
 0x48f   :  { %165 = vst.msk [vmem:[#allocation3 + $0x18] sm:$0xff] %vm106_vm1, %v148_v35 }
 0x492   :  { %v392_v59 = vpop.permute.xlu0 %391 }
 0x493   :  { %v394_v63 = vadd.f32 %v392_v59, %v384_v58 }
 0x495   :  { %1290 = vtanh.f32 %v394_v63 }
 0x49a   :  { %v376_v0 = vpop.permute.xlu0 %375 }
 0x49b   :  { %v1291_v1 = vpop.eup %1290  ;;  %v378_v61 = vsub.f32 1.0, %v376_v0  ;;  %v401_v7 = vmul.f32 %v394_v63, %v376_v0 }
 0x49c   :  { %397 = vrot.lane.b32.xlu1 %v1291_v1, %s1369_s29 }
 0x49d   :  { %v402_v10 = vmul.f32 %v378_v61, %v278_v57  ;;  %v405_v2 = vmul.f32 %v378_v61, %v1534_v5  ;;  %v30_v5 = vld [vmem:[%s1930_s0 + $0x20] sm:$0xff] }
 0x49e   :  { %1227 = vmatmul.msk.f32.gmra.mxu1 %vm40_vm0, %v30_v5  ;;  %1219 = vmatmul.msk.f32.gmra.mxu0 %vm40_vm0, %v30_v5 }
 0x49f   :  { %v1584_v11 = vadd.f32 %v402_v10, %v401_v7 }
 0x4a6   :  { %1228 = vmatmul.msk.f32.gmra.mxu1 %vm40_vm0, %v31_v20  ;;  %1220 = vmatmul.msk.f32.gmra.mxu0 %vm40_vm0, %v31_v20 }
 0x4e4   :  { %v415_v21 = vpop.permute.xlu2 %414 }
 0x50e   :  { %v398_v53 = vpop.permute.xlu1 %397 }
 0x50f   :  { %v400_v62 = vmul.f32 %v398_v53, %v382_v36 }
 0x511   :  { %v1592_v14 = vmul.f32 %v400_v62, %v376_v0 }
 0x513   :  { %v1595_v15 = vadd.f32 %v405_v2, %v1592_v14 }
 0x515   :  { %418 = vrot.lane.b32.xlu1 %v1595_v15, %s1366_s5 }
 0x51b   :  { %v150_v37 = vpop.f32.mrf.mxu1 }
 0x51c   :  { %v151_v38 = vadd.f32 %v1489_v17, %v150_v37 }
 0x51e   :  { %166 = vst.msk [vmem:[#allocation3 + $0x20] sm:$0xff] %vm106_vm1, %v151_v38 }
 0x523   :  { %v153_v39 = vpop.f32.mrf.mxu1 }
 0x524   :  { %v154_v40 = vadd.f32 %v1489_v17, %v153_v39 }
 0x526   :  { %167 = vst.msk [vmem:[#allocation3 + $0x28] sm:$0xff] %vm106_vm1, %v154_v40 }
 0x52d   :  { %v449_v41 = vld [vmem:[#allocation3 + $0x28] sm:$0xff] }
 0x587   :  { %v419_v22 = vpop.permute.xlu1 %418 }
 0x588   :  { %v421_v23 = vsel %vm40_vm0, %v415_v21, %v419_v22 }
 0x589   :  { %1235 = vmatmul.msk.f32.vlgmr.msra.gmra.mxu2 %vm174_vm2, %v421_v23 }
 0x58a   :  { %937 = vmatpush.msra.mxu2 %v1423_v3 }
 0x58c   :  { %938 = vmatpush.msra.mxu2 %v1435_v6 }
 0x58e   :  { %939 = vmatpush.msra.mxu2 %v1445_v8 }
 0x590   :  { %940 = vmatpush.msra.mxu2 %v1451_v9 }
 0x60c   :  { %v442_v32 = vpop.f32.mrf.mxu2 }
 0x60d   :  { %v447_v33 = vadd.f32 %v446_v31, %v442_v32  ;;  %451 = vrot.lane.b32.xlu2 %v442_v32, %s1365_s4 }
 0x60f   :  { %1292 = vtanh.f32 %v447_v33  ;;  %v463_v46 = vmul.f32 0.5, %v447_v33 }
 0x615   :  { %v1293_v36 = vpop.eup %1292 }
 0x616   :  { %470 = vrot.lane.b32.xlu0 %v1293_v36, %s1366_s5  ;;  %v91_v36 = vpop.f32.mrf.mxu0 }
 0x617   :  { %v92_v37 = vadd.f32 %v1481_v12, %v91_v36 }
 0x619   :  { %110 = vst.msk [vmem:[#allocation2 + $0x18] sm:$0xff] %vm106_vm1, %v92_v37 }
 0x667   :  { %v452_v42 = vpop.permute.xlu2 %451 }
 0x668   :  { %v454_v43 = vadd.f32 %v452_v42, %v449_v41 }
 0x66a   :  { %1294 = vtanh.f32 %v454_v43  ;;  %v505_v56 = vmul.f32 0.5, %v454_v43 }
 0x66b   :  { %1296 = vtanh.f32 %v463_v46 }
 0x66c   :  { %1298 = vtanh.f32 %v505_v56 }
 0x670   :  { %v1295_v45 = vpop.eup %1294 }
 0x671   :  { %512 = vrot.lane.b32.xlu1 %v1295_v45, %s1366_s5  ;;  %v1297_v48 = vpop.eup %1296 }
 0x672   :  { %v465_v17 = vmul.f32 0.5, %v1297_v48  ;;  %v1299_v57 = vpop.eup %1298 }
 0x673   :  { %v507_v58 = vmul.f32 0.5, %v1299_v57 }
 0x674   :  { %v466_v50 = vadd.f32 0.5, %v465_v17 }
 0x675   :  { %v508_v59 = vadd.f32 0.5, %v507_v58 }
 0x676   :  { %v468_v1 = vmul.f32 %v466_v50, %v1570_v49 }
 0x679   :  { %459 = vperm.xlu1 %1264, %v1640_v47  }
 0x688   :  { %v471_v51 = vpop.permute.xlu0 %470 }
 0x689   :  { %v473_v52 = vmul.f32 %v471_v51, %v466_v50  ;;  %v1692_v51 = vld [vmem:[%s1935_s1 + $0x18] sm:$0xff] }
 0x68b   :  { %475 = vrot.lane.b32.xlu2 %v473_v52, %s1368_s24 }
 0x6e3   :  { %v513_v63 = vpop.permute.xlu1 %512 }
 0x6e4   :  { %v515_v0 = vmul.f32 %v513_v63, %v508_v59 }
 0x6e5   :  { %v476_v61 = vpop.permute.xlu2 %475 }
 0x6e6   :  { %v478_v7 = vadd.f32 %v476_v61, %v468_v1  ;;  %517 = vrot.lane.b32.xlu0 %v515_v0, %s1368_s24 }
 0x6e8   :  { %1300 = vtanh.f32 %v478_v7 }
 0x6eb   :  { %v460_v10 = vpop.permute.xlu1 %459 }
 0x6ec   :  { %v462_v53 = vsub.f32 1.0, %v460_v10  ;;  %v485_v2 = vmul.f32 %v478_v7, %v460_v10 }
 0x6ee   :  { %v1301_v62 = vpop.eup %1300  ;;  %v486_v16 = vmul.f32 %v462_v53, %v1570_v49  ;;  %501 = vperm.xlu0 %1265, %v1649_v13   ;;  %v489_v20 = vmul.f32 %v462_v53, %v1576_v55  ;;  %v510_v49 = vmul.f32 %v508_v59, %v1584_v11  ;;  %v1240_v53 = vld [vmem:[%s1935_s1 + $0x20] sm:$0xff] }
 0x6ef   :  { %481 = vrot.lane.b32.xlu2 %v1301_v62, %s1369_s29 }
 0x6f0   :  { %v1654_v5 = vadd.f32 %v486_v16, %v485_v2 }
 0x749   :  { %v482_v18 = vpop.permute.xlu2 %481 }
 0x74a   :  { %v484_v19 = vmul.f32 %v482_v18, %v466_v50 }
 0x74c   :  { %v1657_v21 = vmul.f32 %v484_v19, %v460_v10 }
 0x74e   :  { %v1660_v22 = vadd.f32 %v489_v20, %v1657_v21 }
 0x750   :  { %540 = vrot.lane.b32.xlu2 %v1660_v22, %s1370_s30 }
 0x758   :  { %v518_v23 = vpop.permute.xlu0 %517 }
 0x759   :  { %v520_v24 = vadd.f32 %v518_v23, %v510_v49 }
 0x75b   :  { %1302 = vtanh.f32 %v520_v24 }
 0x760   :  { %v502_v25 = vpop.permute.xlu0 %501 }
 0x761   :  { %v1303_v27 = vpop.eup %1302  ;;  %v504_v28 = vsub.f32 1.0, %v502_v25  ;;  %v527_v29 = vmul.f32 %v520_v24, %v502_v25 }
 0x762   :  { %523 = vrot.lane.b32.xlu1 %v1303_v27, %s1369_s29 }
 0x763   :  { %v528_v55 = vmul.f32 %v504_v28, %v1584_v11  ;;  %v531_v33 = vmul.f32 %v504_v28, %v1595_v15  ;;  %v572_v15 = vld [vmem:[#allocation2 + $0x18] sm:$0xff] }
 0x765   :  { %v1667_v30 = vadd.f32 %v528_v55, %v527_v29 }
 0x7aa   :  { %v541_v11 = vpop.permute.xlu2 %540 }
 0x7d4   :  { %v524_v31 = vpop.permute.xlu1 %523 }
 0x7d5   :  { %v526_v32 = vmul.f32 %v524_v31, %v508_v59 }
 0x7d7   :  { %v1670_v34 = vmul.f32 %v526_v32, %v502_v25 }
 0x7d9   :  { %v1673_v35 = vadd.f32 %v531_v33, %v1670_v34 }
 0x7db   :  { %544 = vrot.lane.b32.xlu0 %v1673_v35, %s1366_s5 }
 0x84d   :  { %v545_v38 = vpop.permute.xlu0 %544 }
 0x84e   :  { %v547_v39 = vsel %vm40_vm0, %v541_v11, %v545_v38 }
 0x84f   :  { %1238 = vmatmul.msk.f32.vlgmr.msra.gmra.mxu3 %vm174_vm2, %v547_v39 }
 0x850   :  { %1061 = vmatpush.msra.mxu3 %v1423_v3 }
 0x852   :  { %1062 = vmatpush.msra.mxu3 %v1435_v6 }
 0x854   :  { %1063 = vmatpush.msra.mxu3 %v1445_v8  ;;  %v575_v8 = vld [vmem:[#allocation3 + $0x20] sm:$0xff] }
 0x856   :  { %1064 = vmatpush.msra.mxu3 %v1451_v9 }
 0x8d2   :  { %v568_v40 = vpop.f32.mrf.mxu3 }
 0x8d3   :  { %v573_v41 = vadd.f32 %v572_v15, %v568_v40  ;;  %577 = vrot.lane.b32.xlu1 %v568_v40, %s1365_s4 }
 0x8d5   :  { %1304 = vtanh.f32 %v573_v41  ;;  %v589_v43 = vmul.f32 0.5, %v573_v41 }
 0x8d7   :  { %1306 = vtanh.f32 %v589_v43 }
 0x8db   :  { %v1305_v42 = vpop.eup %1304 }
 0x8dc   :  { %596 = vrot.lane.b32.xlu2 %v1305_v42, %s1366_s5 }
 0x8dd   :  { %v1307_v45 = vpop.eup %1306 }
 0x8de   :  { %v591_v46 = vmul.f32 0.5, %v1307_v45 }
 0x8e0   :  { %v592_v3 = vadd.f32 0.5, %v591_v46 }
 0x8e2   :  { %v594_v52 = vmul.f32 %v592_v3, %v1654_v5 }
 0x936   :  { %v597_v48 = vpop.permute.xlu2 %596 }
 0x937   :  { %v599_v6 = vmul.f32 %v597_v48, %v592_v3 }
 0x939   :  { %601 = vrot.lane.b32.xlu1 %v599_v6, %s1368_s24 }
 0x945   :  { %v578_v9 = vpop.permute.xlu1 %577 }
 0x946   :  { %v580_v17 = vadd.f32 %v578_v9, %v575_v8 }
 0x948   :  { %1308 = vtanh.f32 %v580_v17  ;;  %v631_v58 = vmul.f32 0.5, %v580_v17 }
 0x94e   :  { %v1309_v50 = vpop.eup %1308 }
 0x94f   :  { %638 = vrot.lane.b32.xlu0 %v1309_v50, %s1366_s5 }
 0x957   :  { %585 = vperm.xlu0 %1265, %v1692_v51  }
 0x9ab   :  { %v602_v56 = vpop.permute.xlu1 %601 }
 0x9ac   :  { %v604_v57 = vadd.f32 %v602_v56, %v594_v52 }
 0x9ae   :  { %1310 = vtanh.f32 %v604_v57 }
 0x9af   :  { %1312 = vtanh.f32 %v631_v58 }
 0x9b4   :  { %v1311_v59 = vpop.eup %1310 }
 0x9b5   :  { %607 = vrot.lane.b32.xlu1 %v1311_v59, %s1369_s29  ;;  %v1313_v63 = vpop.eup %1312 }
 0x9b6   :  { %v633_v0 = vmul.f32 0.5, %v1313_v63 }
 0x9b8   :  { %v634_v1 = vadd.f32 0.5, %v633_v0 }
 0x9ba   :  { %v636_v19 = vmul.f32 %v634_v1, %v1667_v30 }
 0x9c1   :  { %v639_v61 = vpop.permute.xlu0 %638 }
 0x9c2   :  { %v641_v7 = vmul.f32 %v639_v61, %v634_v1 }
 0x9c4   :  { %643 = vrot.lane.b32.xlu2 %v641_v7, %s1368_s24 }
 0x9c9   :  { %v586_v10 = vpop.permute.xlu0 %585 }
 0x9ca   :  { %v588_v62 = vsub.f32 1.0, %v586_v10  ;;  %v611_v2 = vmul.f32 %v604_v57, %v586_v10 }
 0x9cc   :  { %v612_v16 = vmul.f32 %v588_v62, %v1654_v5  ;;  %627 = vperm.xlu2 %1263, %v1240_v53   ;;  %v615_v5 = vmul.f32 %v588_v62, %v1660_v22  ;;  %v94_v22 = vpop.f32.mrf.mxu0 }
 0x9cd   :  { %v95_v39 = vadd.f32 %v1481_v12, %v94_v22 }
 0x9ce   :  { %v1702_v18 = vadd.f32 %v612_v16, %v611_v2 }
 0x9cf   :  { %111 = vst.msk [vmem:[#allocation2 + $0x20] sm:$0xff] %vm106_vm1, %v95_v39 }
 0xa1e   :  { %v644_v20 = vpop.permute.xlu2 %643 }
 0xa1f   :  { %v646_v49 = vadd.f32 %v644_v20, %v636_v19 }
 0xa21   :  { %1314 = vtanh.f32 %v646_v49 }
 0xa26   :  { %v628_v23 = vpop.permute.xlu2 %627 }
 0xa27   :  { %v1315_v24 = vpop.eup %1314  ;;  %v630_v25 = vsub.f32 1.0, %v628_v23  ;;  %v608_v27 = vpop.permute.xlu1 %607  ;;  %v653_v29 = vmul.f32 %v646_v49, %v628_v23 }
 0xa28   :  { %v610_v28 = vmul.f32 %v608_v27, %v592_v3  ;;  %649 = vrot.lane.b32.xlu0 %v1315_v24, %s1369_s29  ;;  %v701_v3 = vld [vmem:[#allocation3 + $0x18] sm:$0xff] }
 0xa29   :  { %v654_v55 = vmul.f32 %v630_v25, %v1667_v30  ;;  %v657_v11 = vmul.f32 %v630_v25, %v1673_v35  ;;  %v698_v35 = vld [vmem:[#allocation2 + $0x20] sm:$0xff] }
 0xa2a   :  { %v1708_v31 = vmul.f32 %v610_v28, %v586_v10 }
 0xa2b   :  { %v1710_v32 = vadd.f32 %v654_v55, %v653_v29 }
 0xa2c   :  { %v1713_v33 = vadd.f32 %v615_v5, %v1708_v31 }
 0xa2e   :  { %666 = vrot.lane.b32.xlu1 %v1713_v33, %s1370_s30 }
 0xa9a   :  { %v650_v36 = vpop.permute.xlu0 %649 }
 0xa9b   :  { %v652_v37 = vmul.f32 %v650_v36, %v634_v1 }
 0xa9d   :  { %v1718_v38 = vmul.f32 %v652_v37, %v628_v23 }
 0xa9f   :  { %v1721_v30 = vadd.f32 %v657_v11, %v1718_v38 }
 0xaa0   :  { %v667_v15 = vpop.permute.xlu1 %666 }
 0xaa1   :  { %670 = vrot.lane.b32.xlu2 %v1721_v30, %s1366_s5 }
 0xafb   :  { %v671_v40 = vpop.permute.xlu2 %670 }
 0xafc   :  { %v673_v41 = vsel %vm40_vm0, %v667_v15, %v671_v40 }
 0xafd   :  { %1241 = vmatmul.msk.f32.vlgmr.msrb.gmra.mxu2 %vm174_vm2, %v673_v41  ;;  %v97_v41 = vpop.f32.mrf.mxu0 }
 0xb80   :  { %v694_v42 = vpop.f32.mrf.mxu2 }
 0xb81   :  { %v699_v43 = vadd.f32 %v698_v35, %v694_v42  ;;  %703 = vrot.lane.b32.xlu0 %v694_v42, %s1365_s4 }
 0xb83   :  { %1316 = vtanh.f32 %v699_v43  ;;  %v714_v46 = vmul.f32 0.5, %v699_v43 }
 0xb85   :  { %1318 = vtanh.f32 %v714_v46 }
 0xb89   :  { %v1317_v45 = vpop.eup %1316 }
 0xb8a   :  { %721 = vrot.lane.b32.xlu1 %v1317_v45, %s1366_s5 }
 0xb8b   :  { %v1319_v6 = vpop.eup %1318 }
 0xb8c   :  { %v716_v9 = vmul.f32 0.5, %v1319_v6 }
 0xb8e   :  { %v717_v17 = vadd.f32 0.5, %v716_v9 }
 0xb90   :  { %v719_v10 = vmul.f32 %v717_v17, %v1702_v18 }
 0xbf3   :  { %v704_v48 = vpop.permute.xlu0 %703 }
 0xbf4   :  { %v706_v8 = vadd.f32 %v704_v48, %v701_v3  ;;  %v825_v48 = vld [vmem:[#allocation3 + $0x10] sm:$0xff] }
 0xbf6   :  { %1320 = vtanh.f32 %v706_v8  ;;  %v755_v57 = vmul.f32 0.5, %v706_v8 }
 0xbf8   :  { %1322 = vtanh.f32 %v755_v57 }
 0xbfc   :  { %v1321_v50 = vpop.eup %1320  ;;  %v722_v52 = vpop.permute.xlu1 %721 }
 0xbfd   :  { %v724_v56 = vmul.f32 %v722_v52, %v717_v17  ;;  %762 = vrot.lane.b32.xlu2 %v1321_v50, %s1366_s5 }
 0xbfe   :  { %v1323_v58 = vpop.eup %1322 }
 0xbff   :  { %726 = vrot.lane.b32.xlu0 %v724_v56, %s1368_s24  ;;  %v757_v59 = vmul.f32 0.5, %v1323_v58 }
 0xc01   :  { %v758_v63 = vadd.f32 0.5, %v757_v59 }
 0xc03   :  { %v760_v49 = vmul.f32 %v758_v63, %v1710_v32 }
 0xc05   :  { %710 = vperm.xlu2 %1263, %v1240_v53  }
 0xc57   :  { %v763_v0 = vpop.permute.xlu2 %762 }
 0xc58   :  { %v765_v1 = vmul.f32 %v763_v0, %v758_v63 }
 0xc5a   :  { %767 = vrot.lane.b32.xlu1 %v765_v1, %s1368_s24 }
 0xc5f   :  { %v711_v61 = vpop.permute.xlu2 %710 }
 0xc60   :  { %v713_v7 = vsub.f32 1.0, %v711_v61 }
 0xc62   :  { %751 = vperm.xlu1 %1264, %v1692_v51   ;;  %v737_v53 = vmul.f32 %v713_v7, %v1702_v18  ;;  %v740_v36 = vmul.f32 %v713_v7, %v1713_v33  ;;  %v98_v33 = vadd.f32 %v1481_v12, %v97_v41 }
 0xc64   :  { %112 = vst.msk [vmem:[#allocation2 + $0x28] sm:$0xff] %vm106_vm1, %v98_v33 }
 0xc71   :  { %v727_v62 = vpop.permute.xlu0 %726 }
 0xc72   :  { %v729_v2 = vadd.f32 %v727_v62, %v719_v10 }
 0xc74   :  { %1324 = vtanh.f32 %v729_v2  ;;  %v736_v16 = vmul.f32 %v729_v2, %v711_v61 }
 0xc76   :  { %v1737_v19 = vadd.f32 %v737_v53, %v736_v16 }
 0xc7a   :  { %v1325_v20 = vpop.eup %1324 }
 0xc7b   :  { %732 = vrot.lane.b32.xlu0 %v1325_v20, %s1369_s29 }
 0xccc   :  { %v768_v23 = vpop.permute.xlu1 %767 }
 0xccd   :  { %v770_v24 = vadd.f32 %v768_v23, %v760_v49 }
 0xccf   :  { %1326 = vtanh.f32 %v770_v24 }
 0xcd4   :  { %v752_v51 = vpop.permute.xlu1 %751 }
 0xcd5   :  { %v1327_v25 = vpop.eup %1326  ;;  %v754_v27 = vsub.f32 1.0, %v752_v51  ;;  %v777_v28 = vmul.f32 %v770_v24, %v752_v51 }
 0xcd6   :  { %773 = vrot.lane.b32.xlu2 %v1327_v25, %s1369_s29 }
 0xcd7   :  { %v778_v29 = vmul.f32 %v754_v27, %v1710_v32  ;;  %v781_v15 = vmul.f32 %v754_v27, %v1721_v30  ;;  %v822_v30 = vld [vmem:[#allocation2 + $0x28] sm:$0xff] }
 0xcd9   :  { %v1743_v55 = vadd.f32 %v778_v29, %v777_v28 }
 0xced   :  { %v733_v18 = vpop.permute.xlu0 %732 }
 0xcee   :  { %v735_v5 = vmul.f32 %v733_v18, %v717_v17 }
 0xcf0   :  { %v1746_v37 = vmul.f32 %v735_v5, %v711_v61 }
 0xcf2   :  { %v741_v11 = vadd.f32 %v740_v36, %v1746_v37 }
 0xcf4   :  { %790 = vrot.lane.b32.xlu0 %v741_v11, %s1370_s30 }
 0xd30   :  { %v774_v22 = vpop.permute.xlu2 %773 }
 0xd31   :  { %v776_v39 = vmul.f32 %v774_v22, %v758_v63 }
 0xd33   :  { %v1751_v40 = vmul.f32 %v776_v39, %v752_v51 }
 0xd35   :  { %v1754_v32 = vadd.f32 %v781_v15, %v1751_v40 }
 0xd37   :  { %794 = vrot.lane.b32.xlu1 %v1754_v32, %s1366_s5 }
 0xd66   :  { %v791_v35 = vpop.permute.xlu0 %790 }
 0xda9   :  { %v795_v42 = vpop.permute.xlu1 %794 }
 0xdaa   :  { %v797_v43 = vsel %vm40_vm0, %v791_v35, %v795_v42 }
 0xdab   :  { %1244 = vmatmul.msk.f32.vlgmr.msrb.gmra.mxu3 %vm174_vm2, %v797_v43 }
 0xe2e   :  { %v818_v45 = vpop.f32.mrf.mxu3 }
 0xe2f   :  { %v823_v46 = vadd.f32 %v822_v30, %v818_v45  ;;  %827 = vrot.lane.b32.xlu2 %v818_v45, %s1365_s4  ;;  %v946_v45 = vld [vmem:[#allocation2 + $0x30] sm:$0xff] }
 0xe31   :  { %1328 = vtanh.f32 %v823_v46  ;;  %v838_v9 = vmul.f32 0.5, %v823_v46 }
 0xe37   :  { %v1329_v3 = vpop.eup %1328 }
 0xe38   :  { %845 = vrot.lane.b32.xlu0 %v1329_v3, %s1366_s5 }
 0xe89   :  { %v828_v6 = vpop.permute.xlu2 %827 }
 0xe8a   :  { %v830_v12 = vadd.f32 %v828_v6, %v825_v48 }
 0xe8c   :  { %1330 = vtanh.f32 %v830_v12  ;;  %v879_v58 = vmul.f32 0.5, %v830_v12 }
 0xe8d   :  { %1332 = vtanh.f32 %v838_v9 }
 0xe8e   :  { %1334 = vtanh.f32 %v879_v58 }
 0xe92   :  { %v1331_v8 = vpop.eup %1330 }
 0xe93   :  { %886 = vrot.lane.b32.xlu1 %v1331_v8, %s1366_s5  ;;  %v1333_v17 = vpop.eup %1332 }
 0xe94   :  { %v840_v50 = vmul.f32 0.5, %v1333_v17  ;;  %v1335_v59 = vpop.eup %1334  ;;  %v949_v17 = vld [vmem:[#allocation3 + $0x8] sm:$0xff] }
 0xe95   :  { %v881_v63 = vmul.f32 0.5, %v1335_v59 }
 0xe96   :  { %v841_v52 = vadd.f32 0.5, %v840_v50 }
 0xe97   :  { %v882_v0 = vadd.f32 0.5, %v881_v63 }
 0xe98   :  { %v843_v7 = vmul.f32 %v841_v52, %v1737_v19 }
 0xe99   :  { %v884_v28 = vmul.f32 %v882_v0, %v1743_v55 }
 0xe9b   :  { %834 = vperm.xlu1 %1264, %v1649_v13  }
 0xeaa   :  { %v846_v56 = vpop.permute.xlu0 %845 }
 0xeab   :  { %v848_v57 = vmul.f32 %v846_v56, %v841_v52 }
 0xead   :  { %850 = vrot.lane.b32.xlu2 %v848_v57, %s1368_s24 }
 0xf05   :  { %v887_v1 = vpop.permute.xlu1 %886 }
 0xf06   :  { %v889_v61 = vmul.f32 %v887_v1, %v882_v0 }
 0xf07   :  { %v851_v10 = vpop.permute.xlu2 %850 }
 0xf08   :  { %v853_v62 = vadd.f32 %v851_v10, %v843_v7  ;;  %891 = vrot.lane.b32.xlu0 %v889_v61, %s1368_s24 }
 0xf0a   :  { %1336 = vtanh.f32 %v853_v62 }
 0xf0d   :  { %v835_v13 = vpop.permute.xlu1 %834 }
 0xf0e   :  { %v837_v2 = vsub.f32 1.0, %v835_v13  ;;  %v860_v53 = vmul.f32 %v853_v62, %v835_v13 }
 0xf10   :  { %v1337_v16 = vpop.eup %1336  ;;  %v861_v20 = vmul.f32 %v837_v2, %v1737_v19  ;;  %875 = vperm.xlu0 %1265, %v1640_v47   ;;  %v864_v51 = vmul.f32 %v837_v2, %v741_v11 }
 0xf11   :  { %856 = vrot.lane.b32.xlu2 %v1337_v16, %s1369_s29 }
 0xf12   :  { %v1772_v49 = vadd.f32 %v861_v20, %v860_v53 }
 0xf6b   :  { %v857_v23 = vpop.permute.xlu2 %856 }
 0xf6c   :  { %v859_v24 = vmul.f32 %v857_v23, %v841_v52 }
 0xf6e   :  { %v1774_v25 = vmul.f32 %v859_v24, %v835_v13 }
 0xf70   :  { %v1777_v27 = vadd.f32 %v864_v51, %v1774_v25 }
 0xf72   :  { %914 = vrot.lane.b32.xlu2 %v1777_v27, %s1370_s30 }
 0xf7a   :  { %v892_v19 = vpop.permute.xlu0 %891 }
 0xf7b   :  { %v894_v29 = vadd.f32 %v892_v19, %v884_v28 }
 0xf7d   :  { %1338 = vtanh.f32 %v894_v29 }
 0xf82   :  { %v876_v47 = vpop.permute.xlu0 %875 }
 0xf83   :  { %v1339_v18 = vpop.eup %1338  ;;  %v878_v5 = vsub.f32 1.0, %v876_v47  ;;  %v901_v36 = vmul.f32 %v894_v29, %v876_v47 }
 0xf84   :  { %897 = vrot.lane.b32.xlu1 %v1339_v18, %s1369_s29 }
 0xf85   :  { %v902_v11 = vmul.f32 %v878_v5, %v1743_v55  ;;  %v905_v41 = vmul.f32 %v878_v5, %v1754_v32 }
 0xf87   :  { %v1784_v22 = vadd.f32 %v902_v11, %v901_v36 }
 0xfcc   :  { %v915_v42 = vpop.permute.xlu2 %914 }
 0xff6   :  { %v898_v39 = vpop.permute.xlu1 %897 }
 0xff7   :  { %v900_v15 = vmul.f32 %v898_v39, %v882_v0 }
 0xff9   :  { %v1787_v33 = vmul.f32 %v900_v15, %v876_v47 }
 0xffb   :  { %v1790_v35 = vadd.f32 %v905_v41, %v1787_v33 }
 0xffd   :  { %918 = vrot.lane.b32.xlu0 %v1790_v35, %s1366_s5 }
0x106f   :  { %v919_v43 = vpop.permute.xlu0 %918 }
0x1070   :  { %v921_v30 = vsel %vm40_vm0, %v915_v42, %v919_v43 }
0x1071   :  { %1247 = vmatmul.msk.f32.vlgmr.msra.gmra.mxu2 %vm174_vm2, %v921_v30 }
0x10f4   :  { %v942_v55 = vpop.f32.mrf.mxu2 }
0x10f5   :  { %v947_v46 = vadd.f32 %v946_v45, %v942_v55  ;;  %951 = vrot.lane.b32.xlu1 %v942_v55, %s1365_s4  ;;  %v1070_v45 = vld [vmem:[#allocation2 + $0x38] sm:$0xff] }
0x10f7   :  { %1340 = vtanh.f32 %v947_v46  ;;  %v962_v3 = vmul.f32 0.5, %v947_v46 }
0x10f9   :  { %1342 = vtanh.f32 %v962_v3  ;;  %v1072_v3 = vld [vmem:[#allocation3] sm:$0xff] }
0x10fd   :  { %v1341_v32 = vpop.eup %1340 }
0x10fe   :  { %969 = vrot.lane.b32.xlu2 %v1341_v32, %s1366_s5 }
0x10ff   :  { %v1343_v48 = vpop.eup %1342 }
0x1100   :  { %v964_v6 = vmul.f32 0.5, %v1343_v48 }
0x1102   :  { %v965_v12 = vadd.f32 0.5, %v964_v6 }
0x1104   :  { %v967_v57 = vmul.f32 %v965_v12, %v1772_v49 }
0x1158   :  { %v970_v8 = vpop.permute.xlu2 %969 }
0x1159   :  { %v972_v9 = vmul.f32 %v970_v8, %v965_v12 }
0x115b   :  { %974 = vrot.lane.b32.xlu1 %v972_v9, %s1368_s24 }
0x1167   :  { %v952_v50 = vpop.permute.xlu1 %951 }
0x1168   :  { %v954_v52 = vadd.f32 %v952_v50, %v949_v17 }
0x116a   :  { %1344 = vtanh.f32 %v954_v52  ;;  %v1003_v63 = vmul.f32 0.5, %v954_v52 }
0x1170   :  { %v1345_v56 = vpop.eup %1344 }
0x1171   :  { %1010 = vrot.lane.b32.xlu0 %v1345_v56, %s1366_s5 }
0x1179   :  { %958 = vperm.xlu0 %1265, %v1566_v44  }
0x11cd   :  { %v975_v58 = vpop.permute.xlu1 %974 }
0x11ce   :  { %v977_v59 = vadd.f32 %v975_v58, %v967_v57 }
0x11d0   :  { %1346 = vtanh.f32 %v977_v59 }
0x11d1   :  { %1348 = vtanh.f32 %v1003_v63 }
0x11d6   :  { %v1347_v0 = vpop.eup %1346 }
0x11d7   :  { %980 = vrot.lane.b32.xlu1 %v1347_v0, %s1369_s29  ;;  %v1349_v1 = vpop.eup %1348 }
0x11d8   :  { %v1005_v61 = vmul.f32 0.5, %v1349_v1 }
0x11da   :  { %v1006_v7 = vadd.f32 0.5, %v1005_v61 }
0x11dc   :  { %v1008_v20 = vmul.f32 %v1006_v7, %v1784_v22 }
0x11e3   :  { %v1011_v10 = vpop.permute.xlu0 %1010 }
0x11e4   :  { %v1013_v62 = vmul.f32 %v1011_v10, %v1006_v7 }
0x11e6   :  { %1015 = vrot.lane.b32.xlu2 %v1013_v62, %s1368_s24 }
0x11eb   :  { %v959_v13 = vpop.permute.xlu0 %958 }
0x11ec   :  { %v961_v2 = vsub.f32 1.0, %v959_v13  ;;  %v984_v44 = vmul.f32 %v977_v59, %v959_v13 }
0x11ee   :  { %v985_v16 = vmul.f32 %v961_v2, %v1772_v49  ;;  %999 = vperm.xlu2 %1263, %v1557_v26   ;;  %v988_v49 = vmul.f32 %v961_v2, %v1777_v27 }
0x11f0   :  { %v986_v53 = vadd.f32 %v985_v16, %v984_v44 }
0x1240   :  { %v1016_v23 = vpop.permute.xlu2 %1015 }
0x1241   :  { %v1018_v24 = vadd.f32 %v1016_v23, %v1008_v20 }
0x1243   :  { %1350 = vtanh.f32 %v1018_v24 }
0x1248   :  { %v1000_v51 = vpop.permute.xlu2 %999 }
0x1249   :  { %v1351_v28 = vpop.eup %1350  ;;  %v1002_v19 = vsub.f32 1.0, %v1000_v51  ;;  %v981_v29 = vpop.permute.xlu1 %980  ;;  %v1025_v18 = vmul.f32 %v1018_v24, %v1000_v51 }
0x124a   :  { %v983_v47 = vmul.f32 %v981_v29, %v965_v12  ;;  %1021 = vrot.lane.b32.xlu0 %v1351_v28, %s1369_s29 }
0x124b   :  { %v1026_v5 = vmul.f32 %v1002_v19, %v1784_v22  ;;  %v1029_v41 = vmul.f32 %v1002_v19, %v1790_v35 }
0x124c   :  { %v1810_v36 = vmul.f32 %v983_v47, %v959_v13 }
0x124d   :  { %v1027_v26 = vadd.f32 %v1026_v5, %v1025_v18 }
0x124e   :  { %v989_v11 = vadd.f32 %v988_v49, %v1810_v36 }
0x1250   :  { %1038 = vrot.lane.b32.xlu1 %v989_v11, %s1370_s30 }
0x12bc   :  { %v1022_v39 = vpop.permute.xlu0 %1021 }
0x12bd   :  { %v1024_v15 = vmul.f32 %v1022_v39, %v1006_v7  ;;  %v1113_v7 = vld [vmem:[%s1935_s1] sm:$0xff] }
0x12bf   :  { %v1028_v42 = vmul.f32 %v1024_v15, %v1000_v51 }
0x12c1   :  { %v1030_v43 = vadd.f32 %v1029_v41, %v1028_v42 }
0x12c2   :  { %v1039_v30 = vpop.permute.xlu1 %1038 }
0x12c3   :  { %1042 = vrot.lane.b32.xlu2 %v1030_v43, %s1366_s5 }
0x131d   :  { %v1043_v55 = vpop.permute.xlu2 %1042 }
0x131e   :  { %v1045_v22 = vsel %vm40_vm0, %v1039_v30, %v1043_v55 }
0x131f   :  { %1250 = vmatmul.msk.f32.vlgmr.msra.gmra.mxu3 %vm174_vm2, %v1045_v22 }
0x13a2   :  { %v1066_v27 = vpop.f32.mrf.mxu3 }
0x13a3   :  { %v1071_v46 = vadd.f32 %v1070_v45, %v1066_v27  ;;  %1074 = vrot.lane.b32.xlu0 %v1066_v27, %s1365_s4 }
0x13a5   :  { %1352 = vtanh.f32 %v1071_v46  ;;  %v1084_v35 = vmul.f32 0.5, %v1071_v46 }
0x13a7   :  { %1354 = vtanh.f32 %v1084_v35 }
0x13ab   :  { %v1353_v32 = vpop.eup %1352 }
0x13ac   :  { %1091 = vrot.lane.b32.xlu2 %v1353_v32, %s1366_s5 }
0x13ad   :  { %v1355_v12 = vpop.eup %1354 }
0x13ae   :  { %v1086_v9 = vmul.f32 0.5, %v1355_v12 }
0x13b0   :  { %v1821_v50 = vadd.f32 0.5, %v1086_v9 }
0x13b2   :  { %v1089_v1 = vmul.f32 %v1821_v50, %v986_v53 }
0x1406   :  { %v1092_v17 = vpop.permute.xlu2 %1091 }
0x1407   :  { %v1094_v52 = vmul.f32 %v1092_v17, %v1821_v50 }
0x1415   :  { %v1075_v48 = vpop.permute.xlu0 %1074 }
0x1416   :  { %v1077_v6 = vadd.f32 %v1075_v48, %v1072_v3 }
0x1418   :  { %1356 = vtanh.f32 %v1077_v6  ;;  %v1119_v56 = vmul.f32 0.5, %v1077_v6 }
0x141a   :  { %1358 = vtanh.f32 %v1119_v56 }
0x141e   :  { %v1357_v8 = vpop.eup %1356 }
0x141f   :  { %1126 = vrot.lane.b32.xlu1 %v1357_v8, %s1366_s5 }
0x1420   :  { %v1359_v57 = vpop.eup %1358 }
0x1421   :  { %v1121_v58 = vmul.f32 0.5, %v1359_v57 }
0x1423   :  { %v1122_v59 = vadd.f32 0.5, %v1121_v58 }
0x1425   :  { %v1124_v13 = vmul.f32 %v1122_v59, %v1027_v26 }
0x1427   :  { %1096 = vrot.lane.b32.xlu1 %v1094_v52, %s1368_s24 }
0x1491   :  { %v1127_v63 = vpop.permute.xlu1 %1126 }
0x1492   :  { %v1129_v0 = vmul.f32 %v1127_v63, %v1122_v59 }
0x1494   :  { %1131 = vrot.lane.b32.xlu0 %v1129_v0, %s1368_s24 }
0x1499   :  { %v1097_v61 = vpop.permute.xlu1 %1096 }
0x149a   :  { %v1099_v10 = vadd.f32 %v1097_v61, %v1089_v1 }
0x149c   :  { %1360 = vtanh.f32 %v1099_v10  ;;  %1116 = vperm.xlu0 %1265, %v1113_v7  }
0x14a2   :  { %v1361_v62 = vpop.eup %1360 }
0x14a3   :  { %1102 = vrot.lane.b32.xlu1 %v1361_v62, %s1369_s29 }
0x14a4   :  { %282 = vrot.lane.b32.xlu0 %v1530_v4, %s1370_s30 }
0x14ab   :  { %408 = vrot.lane.b32.xlu1 %v1592_v14, %s1370_s30 }
0x14ac   :  { %660 = vrot.lane.b32.xlu0 %v1718_v38, %s1370_s30 }
0x14b3   :  { %784 = vrot.lane.b32.xlu1 %v1751_v40, %s1370_s30  ;;  %v1251_v40 = vld [vmem:[%s1935_s1 + $0x38] sm:$0xff] }
0x14b4   :  { %1032 = vrot.lane.b32.xlu0 %v1028_v42, %s1370_s30 }
0x14bc   :  { %366 = vrot.lane.b32.xlu0 %v1573_v54, %s1370_s30 }
0x14c4   :  { %743 = vrot.lane.b32.xlu0 %v1746_v37, %s1370_s30 }
0x1506   :  { %v1132_v2 = vpop.permute.xlu0 %1131 }
0x1507   :  { %v1134_v4 = vadd.f32 %v1132_v2, %v1124_v13 }
0x1509   :  { %1362 = vtanh.f32 %v1134_v4 }
0x150e   :  { %v1117_v44 = vpop.permute.xlu0 %1116 }
0x150f   :  { %v1363_v14 = vpop.eup %1362 }
0x1510   :  { %1137 = vrot.lane.b32.xlu2 %v1363_v14, %s1369_s29 }
0x1515   :  { %v1103_v38 = vpop.permute.xlu1 %1102 }
0x1516   :  { %v283_v16 = vpop.permute.xlu0 %282  ;;  %v1105_v29 = vmul.f32 %v1103_v38, %v1821_v50 }
0x1517   :  { %286 = vst.msk [vmem:[#allocation5 + $0x38] sm:$0xff] %vm40_vm0, %v283_v16 }
0x1518   :  { %1081 = vperm.xlu2 %1263, %v1251_v40  }
0x151d   :  { %v409_v54 = vpop.permute.xlu1 %408 }
0x151e   :  { %412 = vst.msk [vmem:[#allocation5 + $0x30] sm:$0xff] %vm40_vm0, %v409_v54  ;;  %v661_v37 = vpop.permute.xlu0 %660 }
0x151f   :  { %664 = vst.msk [vmem:[#allocation5 + $0x20] sm:$0xff] %vm40_vm0, %v661_v37 }
0x1520   :  { %534 = vrot.lane.b32.xlu2 %v1670_v34, %s1370_s30 }
0x1525   :  { %v785_v53 = vpop.permute.xlu1 %784  ;;  %v1161_v48 = vld [vmem:[#allocation5 + $0x30] sm:$0xff] }
0x1526   :  { %788 = vst.msk [vmem:[#allocation5 + $0x18] sm:$0xff] %vm40_vm0, %v785_v53  ;;  %v1033_v20 = vpop.permute.xlu0 %1032  ;;  %v1159_v51 = vld [vmem:[#allocation5 + $0x20] sm:$0xff] }
0x1527   :  { %1036 = vst.msk [vmem:[#allocation5 + $0x8] sm:$0xff] %vm40_vm0, %v1033_v20 }
0x1528   :  { %908 = vrot.lane.b32.xlu2 %v1787_v33, %s1370_s30  ;;  %v1162_v33 = vld [vmem:[#allocation5 + $0x38] sm:$0xff] }
0x152d   :  { %v1158_v49 = vld [vmem:[#allocation5 + $0x18] sm:$0xff] }
0x152e   :  { %v367_v23 = vpop.permute.xlu0 %366  ;;  %v1156_v34 = vld [vmem:[#allocation5 + $0x8] sm:$0xff] }
0x152f   :  { %370 = vst.msk [vmem:[#allocation4 + $0x8] sm:$0xff] %vm40_vm0, %v367_v23 }
0x1530   :  { %242 = vrot.lane.b32.xlu2 %v1517_v60, %s1370_s30 }
0x1536   :  { %v744_v24 = vpop.permute.xlu0 %743 }
0x1537   :  { %747 = vst.msk [vmem:[#allocation4 + $0x20] sm:$0xff] %vm40_vm0, %v744_v24 }
0x1538   :  { %618 = vrot.lane.b32.xlu2 %v1708_v31, %s1370_s30 }
0x153e   :  { %v1151_v42 = vld [vmem:[#allocation4 + $0x20] sm:$0xff] }
0x1540   :  { %991 = vrot.lane.b32.xlu2 %v1810_v36, %s1370_s30 }
0x1548   :  { %1173 = vrot.lane.b32.xlu2 %v1156_v34, %s1368_s24 }
0x1550   :  { %1179 = vrot.lane.b32.xlu2 %v1159_v51, %s1368_s24 }
0x1558   :  { %1185 = vrot.lane.b32.xlu2 %v1162_v33, %s1368_s24 }
0x156a   :  { %v1138_v28 = vpop.permute.xlu2 %1137 }
0x156b   :  { %v1140_v60 = vmul.f32 %v1138_v28, %v1122_v59 }
0x156d   :  { %v1141_v19 = vmul.f32 %v1140_v60, %v1117_v44 }
0x156f   :  { %1143 = vrot.lane.b32.xlu1 %v1141_v19, %s1370_s30 }
0x1572   :  { %v1082_v31 = vpop.permute.xlu2 %1081 }
0x1573   :  { %v1106_v47 = vmul.f32 %v1105_v29, %v1082_v31 }
0x1575   :  { %1108 = vrot.lane.b32.xlu0 %v1106_v47, %s1370_s30 }
0x1577   :  { %492 = vrot.lane.b32.xlu1 %v1657_v21, %s1370_s30 }
0x157a   :  { %v535_v18 = vpop.permute.xlu2 %534 }
0x157b   :  { %538 = vst.msk [vmem:[#allocation5 + $0x28] sm:$0xff] %vm40_vm0, %v535_v18 }
0x157f   :  { %867 = vrot.lane.b32.xlu1 %v1774_v25, %s1370_s30  ;;  %v1148_v25 = vld [vmem:[#allocation4 + $0x8] sm:$0xff] }
0x1582   :  { %v909_v5 = vpop.permute.xlu2 %908  ;;  %v1160_v21 = vld [vmem:[#allocation5 + $0x28] sm:$0xff] }
0x1583   :  { %912 = vst.msk [vmem:[#allocation5 + $0x10] sm:$0xff] %vm40_vm0, %v909_v5 }
0x1587   :  { %1177 = vrot.lane.b32.xlu1 %v1158_v49, %s1368_s24 }
0x158a   :  { %v243_v36 = vpop.permute.xlu2 %242  ;;  %v1157_v26 = vld [vmem:[#allocation5 + $0x10] sm:$0xff] }
0x158b   :  { %245 = vst.msk [vmem:[#allocation4] sm:$0xff] %vm40_vm0, %v243_v36  ;;  %1175 = vrot.lane.b32.xlu0 %v1157_v26, %s1368_s24 }
0x1592   :  { %v619_v11 = vpop.permute.xlu2 %618  ;;  %v1147_v58 = vld [vmem:[#allocation4] sm:$0xff] }
0x1593   :  { %622 = vst.msk [vmem:[#allocation4 + $0x18] sm:$0xff] %vm40_vm0, %v619_v11  ;;  %1181 = vrot.lane.b32.xlu0 %v1160_v21, %s1368_s24 }
0x159a   :  { %v992_v39 = vpop.permute.xlu2 %991  ;;  %v1150_v6 = vld [vmem:[#allocation4 + $0x18] sm:$0xff] }
0x159b   :  { %995 = vst.msk [vmem:[#allocation4 + $0x30] sm:$0xff] %vm40_vm0, %v992_v39 }
0x15a2   :  { %v1174_v15 = vpop.permute.xlu2 %1173  ;;  %v1153_v0 = vld [vmem:[#allocation4 + $0x30] sm:$0xff] }
0x15a3   :  { %v1196_v41 = vsel %vm40_vm0, %v1148_v25, %v1174_v15 }
0x15a4   :  { %1204 = vst.msk [vmem:[%s1936_s7 + $0x8] sm:$0xff] %vm174_vm2, %v1196_v41 }
0x15aa   :  { %v1180_v43 = vpop.permute.xlu2 %1179 }
0x15ab   :  { %v1199_v30 = vsel %vm40_vm0, %v1151_v42, %v1180_v43 }
0x15ac   :  { %1207 = vst.msk [vmem:[%s1936_s7 + $0x20] sm:$0xff] %vm174_vm2, %v1199_v30 }
0x15b2   :  { %v1186_v46 = vpop.permute.xlu2 %1185 }
0x15e1   :  { %v1144_v55 = vpop.permute.xlu1 %1143 }
0x15e2   :  { %1146 = vst.msk [vmem:[#allocation5] sm:$0xff] %vm40_vm0, %v1144_v55 }
0x15e7   :  { %v1109_v22 = vpop.permute.xlu0 %1108 }
0x15e8   :  { %1112 = vst.msk [vmem:[#allocation4 + $0x38] sm:$0xff] %vm40_vm0, %v1109_v22 }
0x15e9   :  { %v493_v27 = vpop.permute.xlu1 %492  ;;  %v1155_v45 = vld [vmem:[#allocation5] sm:$0xff] }
0x15ea   :  { %496 = vst.msk [vmem:[#allocation4 + $0x10] sm:$0xff] %vm40_vm0, %v493_v27  ;;  %1171 = vrot.lane.b32.xlu1 %v1155_v45, %s1368_s24 }
0x15ef   :  { %v1154_v32 = vld [vmem:[#allocation4 + $0x38] sm:$0xff] }
0x15f0   :  { %v1202_v35 = vsel %vm40_vm0, %v1154_v32, %v1186_v46 }
0x15f1   :  { %1210 = vst.msk [vmem:[%s1936_s7 + $0x38] sm:$0xff] %vm174_vm2, %v1202_v35  ;;  %v868_v3 = vpop.permute.xlu1 %867  ;;  %v1149_v17 = vld [vmem:[#allocation4 + $0x10] sm:$0xff] }
0x15f2   :  { %871 = vst.msk [vmem:[#allocation4 + $0x28] sm:$0xff] %vm40_vm0, %v868_v3  ;;  %1183 = vrot.lane.b32.xlu1 %v1161_v48, %s1368_s24 }
0x15f9   :  { %v1178_v12 = vpop.permute.xlu1 %1177  ;;  %v1152_v56 = vld [vmem:[#allocation4 + $0x28] sm:$0xff] }
0x15fa   :  { %v1198_v8 = vsel %vm40_vm0, %v1150_v6, %v1178_v12 }
0x15fb   :  { %1206 = vst.msk [vmem:[%s1936_s7 + $0x18] sm:$0xff] %vm174_vm2, %v1198_v8 }
0x15fd   :  { %v1176_v9 = vpop.permute.xlu0 %1175 }
0x15fe   :  { %v1197_v50 = vsel %vm40_vm0, %v1149_v17, %v1176_v9 }
0x15ff   :  { %1205 = vst.msk [vmem:[%s1936_s7 + $0x10] sm:$0xff] %vm174_vm2, %v1197_v50 }
0x1605   :  { %v1182_v52 = vpop.permute.xlu0 %1181 }
0x1606   :  { %v1200_v57 = vsel %vm40_vm0, %v1152_v56, %v1182_v52 }
0x1607   :  { %1208 = vst.msk [vmem:[%s1936_s7 + $0x28] sm:$0xff] %vm174_vm2, %v1200_v57 }
0x165c   :  { %v1172_v59 = vpop.permute.xlu1 %1171 }
0x165d   :  { %v1195_v63 = vsel %vm40_vm0, %v1147_v58, %v1172_v59 }
0x165e   :  { %1203 = vst.msk [vmem:[%s1936_s7] sm:$0xff] %vm174_vm2, %v1195_v63 }
0x1664   :  { %v1184_v1 = vpop.permute.xlu1 %1183 }
0x1665   :  { %v1201_v61 = vsel %vm40_vm0, %v1153_v0, %v1184_v1 }
0x1666   :  { %1209 = vst.msk [vmem:[%s1936_s7 + $0x30] sm:$0xff] %vm174_vm2, %v1201_v61 }

// kernel: feature_encoder_forward.3
= control target key start
LH: loop header
LB: loop body
LE: loop exit
PB: predicated region body
PF: predicated region fallthrough
CT: control target
= control target key end

     0   :  { %vm42_vm0 = vcmask 261120   ;;  %v1372_v15 = vmov 0.0   ;;  %vm108_vm1 = vcmask 523264   ;;  %v1375_v32 = vmov 0   ;;  %s1376_s9 = smov 16   ;;  %s1377_s14 = smov 32   ;;  %s1949_s2 = inlined_call_operand.vmem [shape: f32[32,64], index: 2, kind: input, shape index: {}]   ;;  %s1950_s3 = inlined_call_operand.vmem [shape: f32[32,64], index: 3, kind: input, shape index: {}]   ;;  %s1951_s0 = inlined_call_operand.vmem [shape: f32[8,8,32], index: 0, kind: input, shape index: {}]   ;;  %s1952_s6 = inlined_call_operand.vmem [shape: f32[32,128], index: 6, kind: input, shape index: {}]   ;;  %s1953_s4 = inlined_call_operand.vmem [shape: f32[1,64], index: 4, kind: input, shape index: {}]   ;;  %s1954_s5 = inlined_call_operand.vmem [shape: f32[1,64], index: 5, kind: input, shape index: {}]   ;;  %s1955_s1 = inlined_call_operand.vmem [shape: f32[8,8,1], index: 1, kind: input, shape index: {}]   ;;  %s1956_s7 = inlined_call_operand.vmem [shape: f32[8,8,32], index: 7, kind: output, shape index: {}]  }
   0x1   :  { %v37_v0 = vld [vmem:[%s1949_s2 + $0x18] sm:$0xff]  ;;  %v36_v1 = vld [vmem:[%s1949_s2 + $0x10] sm:$0xff]  ;;  %v35_v2 = vld [vmem:[%s1949_s2 + $0x8] sm:$0xff]  ;;  %1272 = vset.pattern.permute.xlu1 %v1375_v32  ;;  %1271 = vset.pattern.permute.xlu2 %v1375_v32  ;;  %s1378_s15 = smov 80   ;;  %vm248_vm2 = vcmask 130048  }
   0x2   :  { %1256 = vmatpush.msra.mxu2 %v37_v0  ;;  %79 = vmatpush.msra.mxu0 %v37_v0  ;;  %v120_v3 = vld [vmem:[%s1950_s3 + $0x18] sm:$0xff]  ;;  %v34_v4 = vld [vmem:[%s1949_s2] sm:$0xff]  ;;  %v119_v5 = vld [vmem:[%s1950_s3 + $0x10] sm:$0xff] }
   0x3   :  { %1260 = vmatpush.msra.mxu3 %v120_v3  ;;  %137 = vmatpush.msra.mxu1 %v120_v3  ;;  %v32_v6 = vld [vmem:[%s1951_s0 + $0x30] sm:$0xff]  ;;  %v26_v7 = vld [vmem:[%s1951_s0] sm:$0xff]  ;;  %v1446_v8 = vld [vmem:[%s1952_s6 + $0x18] sm:$0xff] }
   0x4   :  { %1257 = vmatpush.msra.mxu2 %v36_v1  ;;  %80 = vmatpush.msra.mxu0 %v36_v1  ;;  %v118_v9 = vld [vmem:[%s1950_s3 + $0x8] sm:$0xff]  ;;  %v1455_v10 = vld [vmem:[%s1952_s6 + $0x10] sm:$0xff]  ;;  %v117_v11 = vld [vmem:[%s1950_s3] sm:$0xff] }
   0x5   :  { %1261 = vmatpush.msra.mxu3 %v119_v5  ;;  %138 = vmatpush.msra.mxu1 %v119_v5  ;;  %v1465_v12 = vld [vmem:[%s1952_s6 + $0x8] sm:$0xff]  ;;  %v1471_v13 = vld [vmem:[%s1952_s6] sm:$0xff]  ;;  %v33_v14 = vld [vmem:[%s1951_s0 + $0x38] sm:$0xff] }
   0x6   :  { %1258 = vmatpush.msra.mxu2 %v35_v2  ;;  %81 = vmatpush.msra.mxu0 %v35_v2  ;;  %v1501_v16 = vld [vmem:[%s1953_s4] ss:$0 sm:$0xff]  ;;  %s1373_s4 = smov 64   ;;  %v1235_v43 = vld [vmem:[%s1955_s1 + $0x38] sm:$0xff] }
   0x7   :  { %1262 = vmatpush.msra.mxu3 %v118_v9  ;;  %139 = vmatpush.msra.mxu1 %v118_v9  ;;  %v1509_v21 = vld [vmem:[%s1954_s5] ss:$0 sm:$0xff]  ;;  %s1374_s5 = smov 96  }
   0x8   :  { %1259 = vmatpush.msra.mxu2 %v34_v4  ;;  %82 = vmatpush.msra.mxu0 %v34_v4  ;;  %v210_v52 = vld [vmem:[%s1955_s1] sm:$0xff] }
   0x9   :  { %1225 = vmatmul.msk.f32.vlgmr.msra.gmra.mxu2 %vm42_vm0, %v32_v6  ;;  %1219 = vmatmul.msk.f32.vlgmr.msra.gmra.mxu0 %vm42_vm0, %v26_v7 }
   0xa   :  { %193 = vmatpush.msrb.mxu2 %v1446_v8  ;;  %1263 = vmatpush.msra.mxu3 %v117_v11 }
   0xb   :  { %1233 = vmatmul.msk.f32.vlgmr.msra.gmra.mxu3 %vm42_vm0, %v32_v6  ;;  %140 = vmatpush.msra.mxu1 %v117_v11  ;;  %v27_v11 = vld [vmem:[%s1951_s0 + $0x8] sm:$0xff] }
   0xc   :  { %194 = vmatpush.msrb.mxu2 %v1455_v10  ;;  %315 = vmatpush.msrb.mxu3 %v1446_v8 }
   0xd   :  { %1227 = vmatmul.msk.f32.vlgmr.msra.gmra.mxu1 %vm42_vm0, %v26_v7  ;;  %1273 = vset.pattern.permute.xlu0 %v1375_v32 }
   0xe   :  { %195 = vmatpush.msrb.mxu2 %v1465_v12  ;;  %316 = vmatpush.msrb.mxu3 %v1455_v10 }
  0x10   :  { %196 = vmatpush.msrb.mxu2 %v1471_v13  ;;  %317 = vmatpush.msrb.mxu3 %v1465_v12 }
  0x11   :  { %1226 = vmatmul.msk.f32.gmra.mxu2 %vm42_vm0, %v33_v14  ;;  %1220 = vmatmul.msk.f32.gmra.mxu0 %vm42_vm0, %v27_v11 }
  0x12   :  { %441 = vmatpush.msra.mxu2 %v1446_v8  ;;  %318 = vmatpush.msrb.mxu3 %v1471_v13 }
  0x13   :  { %1234 = vmatmul.msk.f32.gmra.mxu3 %vm42_vm0, %v33_v14 }
  0x14   :  { %442 = vmatpush.msra.mxu2 %v1455_v10  ;;  %567 = vmatpush.msra.mxu3 %v1446_v8 }
  0x15   :  { %1228 = vmatmul.msk.f32.gmra.mxu1 %vm42_vm0, %v27_v11 }
  0x16   :  { %443 = vmatpush.msra.mxu2 %v1465_v12  ;;  %568 = vmatpush.msra.mxu3 %v1455_v10 }
  0x18   :  { %444 = vmatpush.msra.mxu2 %v1471_v13  ;;  %569 = vmatpush.msra.mxu3 %v1465_v12 }
  0x19   :  { %197 = vmatmul.f32.vlgmr.msrb.gmra.mxu2 %v1372_v15 }
  0x1a   :  { %693 = vmatpush.msrb.mxu2 %v1446_v8  ;;  %570 = vmatpush.msra.mxu3 %v1471_v13 }
  0x1c   :  { %694 = vmatpush.msrb.mxu2 %v1455_v10 }
  0x1e   :  { %695 = vmatpush.msrb.mxu2 %v1465_v12 }
  0x20   :  { %696 = vmatpush.msrb.mxu2 %v1471_v13 }
  0x86   :  { %v84_v17 = vpop.f32.mrf.mxu0 }
  0x87   :  { %v85_v18 = vadd.f32 %v1501_v16, %v84_v17 }
  0x89   :  { %109 = vst.msk [vmem:[#allocation2] sm:$0xff] %vm108_vm1, %v85_v18 }
  0x8c   :  { %v102_v19 = vpop.f32.mrf.mxu2 }
  0x8d   :  { %v103_v20 = vadd.f32 %v1501_v16, %v102_v19 }
  0x8e   :  { %v160_v22 = vpop.f32.mrf.mxu3  ;;  %v87_v18 = vpop.f32.mrf.mxu0 }
  0x8f   :  { %115 = vst.msk [vmem:[#allocation2 + $0x30] sm:$0xff] %vm108_vm1, %v103_v20  ;;  %v161_v23 = vadd.f32 %v1509_v21, %v160_v22  ;;  %v88_v19 = vadd.f32 %v1501_v16, %v87_v18 }
  0x90   :  { %v201_v28 = vld [vmem:[#allocation2] sm:$0xff] }
  0x91   :  { %172 = vst.msk [vmem:[#allocation3 + $0x30] sm:$0xff] %vm108_vm1, %v161_v23 }
  0x92   :  { %110 = vst.msk [vmem:[#allocation2 + $0x8] sm:$0xff] %vm108_vm1, %v88_v19 }
  0x94   :  { %v105_v24 = vpop.f32.mrf.mxu2 }
  0x95   :  { %v106_v25 = vadd.f32 %v1501_v16, %v105_v24 }
  0x96   :  { %v163_v26 = vpop.f32.mrf.mxu3 }
  0x97   :  { %116 = vst.msk [vmem:[#allocation2 + $0x38] sm:$0xff] %vm108_vm1, %v106_v25  ;;  %v164_v27 = vadd.f32 %v1509_v21, %v163_v26 }
  0x98   :  { %v327_v25 = vld [vmem:[#allocation3 + $0x30] sm:$0xff] }
  0x99   :  { %173 = vst.msk [vmem:[#allocation3 + $0x38] sm:$0xff] %vm108_vm1, %v164_v27  ;;  %v324_v20 = vld [vmem:[#allocation2 + $0x8] sm:$0xff] }
  0x9c   :  { %v198_v29 = vpop.f32.mrf.mxu2 }
  0x9d   :  { %v202_v30 = vadd.f32 %v201_v28, %v198_v29  ;;  %206 = vrot.lane.b32.xlu0 %v198_v29, %s1373_s4 }
  0x9f   :  { %1276 = vtanh.f32 %v202_v30  ;;  %v217_v33 = vmul.f32 0.5, %v202_v30  ;;  %v1577_v30 = vld [vmem:[%s1955_s1 + $0x8] sm:$0xff] }
  0xa0   :  { %v204_v34 = vld [vmem:[#allocation3 + $0x38] sm:$0xff] }
  0xa1   :  { %1278 = vtanh.f32 %v217_v33 }
  0xa5   :  { %v1277_v31 = vpop.eup %1276 }
  0xa6   :  { %224 = vrot.lane.b32.xlu0 %v1277_v31, %s1374_s5 }
  0xa7   :  { %v1279_v37 = vpop.eup %1278 }
  0xa8   :  { %v219_v39 = vmul.f32 0.5, %v1279_v37 }
  0xaa   :  { %v220_v41 = vadd.f32 0.5, %v219_v39 }
  0xac   :  { %v222_v50 = vmul.f32 0.0, %v220_v41 }
 0x10f   :  { %v207_v35 = vpop.permute.xlu0 %206 }
 0x110   :  { %v209_v36 = vadd.f32 %v207_v35, %v204_v34 }
 0x112   :  { %1280 = vtanh.f32 %v209_v36  ;;  %v258_v44 = vmul.f32 0.5, %v209_v36 }
 0x114   :  { %1282 = vtanh.f32 %v258_v44 }
 0x118   :  { %v1281_v38 = vpop.eup %1280  ;;  %v225_v40 = vpop.permute.xlu0 %224 }
 0x119   :  { %265 = vrot.lane.b32.xlu1 %v1281_v38, %s1374_s5  ;;  %v227_v42 = vmul.f32 %v225_v40, %v220_v41 }
 0x11a   :  { %v1283_v45 = vpop.eup %1282 }
 0x11b   :  { %v260_v46 = vmul.f32 0.5, %v1283_v45 }
 0x11d   :  { %v261_v47 = vadd.f32 0.5, %v260_v46 }
 0x11f   :  { %v263_v55 = vmul.f32 0.0, %v261_v47 }
 0x121   :  { %229 = vrot.lane.b32.xlu1 %v227_v42, %s1376_s9 }
 0x129   :  { %254 = vperm.xlu1 %1272, %v1235_v43  }
 0x18b   :  { %v266_v48 = vpop.permute.xlu1 %265 }
 0x18c   :  { %v268_v49 = vmul.f32 %v266_v48, %v261_v47  ;;  %v1586_v48 = vld [vmem:[%s1955_s1 + $0x30] sm:$0xff] }
 0x18e   :  { %270 = vrot.lane.b32.xlu2 %v268_v49, %s1376_s9 }
 0x193   :  { %v230_v51 = vpop.permute.xlu1 %229 }
 0x194   :  { %v1529_v53 = vadd.f32 %v230_v51, %v222_v50 }
 0x196   :  { %1284 = vtanh.f32 %v1529_v53  ;;  %213 = vperm.xlu2 %1271, %v210_v52  }
 0x19b   :  { %v1544_v2 = vpop.permute.xlu1 %254 }
 0x19c   :  { %v1285_v54 = vpop.eup %1284  ;;  %v257_v3 = vsub.f32 1.0, %v1544_v2 }
 0x19d   :  { %235 = vrot.lane.b32.xlu0 %v1285_v54, %s1377_s14 }
 0x19e   :  { %v1547_v6 = vmul.f32 0.0, %v257_v3 }
 0x1e8   :  { %v271_v56 = vpop.permute.xlu2 %270 }
 0x1e9   :  { %v1533_v57 = vadd.f32 %v271_v56, %v263_v55 }
 0x1eb   :  { %1286 = vtanh.f32 %v1533_v57 }
 0x1f0   :  { %v214_v59 = vpop.permute.xlu2 %213 }
 0x1f1   :  { %v1287_v58 = vpop.eup %1286  ;;  %v216_v60 = vsub.f32 1.0, %v214_v59  ;;  %v239_v39 = vmul.f32 %v1529_v53, %v214_v59 }
 0x1f2   :  { %276 = vrot.lane.b32.xlu2 %v1287_v58, %s1377_s14 }
 0x1f3   :  { %v240_v63 = vmul.f32 0.0, %v216_v60  ;;  %v280_v60 = vmul.f32 %v1533_v57, %v1544_v2 }
 0x20f   :  { %v236_v61 = vpop.permute.xlu0 %235 }
 0x210   :  { %v238_v62 = vmul.f32 %v236_v61, %v220_v41  ;;  %v241_v41 = vadd.f32 %v240_v63, %v239_v39  ;;  %v282_v61 = vadd.f32 %v1547_v6, %v280_v60 }
 0x212   :  { %v1537_v0 = vmul.f32 %v238_v62, %v214_v59 }
 0x214   :  { %v1540_v1 = vadd.f32 %v1537_v0, %v240_v63 }
 0x216   :  { %292 = vrot.lane.b32.xlu0 %v1540_v1, %s1378_s15 }
 0x24c   :  { %v277_v4 = vpop.permute.xlu2 %276 }
 0x24d   :  { %v279_v5 = vmul.f32 %v277_v4, %v261_v47 }
 0x24f   :  { %v1550_v7 = vmul.f32 %v279_v5, %v1544_v2 }
 0x251   :  { %v1554_v9 = vadd.f32 %v1550_v7, %v1547_v6 }
 0x253   :  { %296 = vrot.lane.b32.xlu1 %v1554_v9, %s1374_s5 }
 0x288   :  { %v293_v14 = vpop.permute.xlu0 %292 }
 0x2c5   :  { %v297_v15 = vpop.permute.xlu1 %296 }
 0x2c6   :  { %v299_v17 = vsel %vm248_vm2, %v293_v14, %v297_v15 }
 0x2c7   :  { %1236 = vmatmul.msk.f32.vlgmr.msrb.gmra.mxu3 %vm42_vm0, %v299_v17  ;;  %v28_v17 = vld [vmem:[%s1951_s0 + $0x10] sm:$0xff] }
 0x2c8   :  { %817 = vmatpush.msrb.mxu3 %v1446_v8  ;;  %1221 = vmatmul.msk.f32.gmra.mxu0 %vm42_vm0, %v28_v17 }
 0x2c9   :  { %1229 = vmatmul.msk.f32.gmra.mxu1 %vm42_vm0, %v28_v17  ;;  %v1669_v17 = vld [vmem:[%s1955_s1 + $0x28] sm:$0xff] }
 0x2ca   :  { %818 = vmatpush.msrb.mxu3 %v1455_v10 }
 0x2cc   :  { %819 = vmatpush.msrb.mxu3 %v1465_v12 }
 0x2ce   :  { %820 = vmatpush.msrb.mxu3 %v1471_v13 }
 0x34a   :  { %v320_v22 = vpop.f32.mrf.mxu3 }
 0x34b   :  { %v325_v23 = vadd.f32 %v324_v20, %v320_v22  ;;  %329 = vrot.lane.b32.xlu2 %v320_v22, %s1373_s4  ;;  %v29_v20 = vld [vmem:[%s1951_s0 + $0x18] sm:$0xff]  ;;  %v90_v22 = vpop.f32.mrf.mxu0 }
 0x34c   :  { %1230 = vmatmul.msk.f32.gmra.mxu1 %vm42_vm0, %v29_v20  ;;  %1222 = vmatmul.msk.f32.gmra.mxu0 %vm42_vm0, %v29_v20 }
 0x34d   :  { %1288 = vtanh.f32 %v325_v23  ;;  %v341_v29 = vmul.f32 0.5, %v325_v23  ;;  %v91_v23 = vadd.f32 %v1501_v16, %v90_v22 }
 0x34f   :  { %111 = vst.msk [vmem:[#allocation2 + $0x10] sm:$0xff] %vm108_vm1, %v91_v23 }
 0x353   :  { %v1289_v24 = vpop.eup %1288 }
 0x354   :  { %348 = vrot.lane.b32.xlu0 %v1289_v24, %s1374_s5  ;;  %v31_v24 = vld [vmem:[%s1951_s0 + $0x28] sm:$0xff] }
 0x3a5   :  { %v330_v26 = vpop.permute.xlu2 %329 }
 0x3a6   :  { %v332_v27 = vadd.f32 %v330_v26, %v327_v25 }
 0x3a8   :  { %1290 = vtanh.f32 %v332_v27  ;;  %v383_v36 = vmul.f32 0.5, %v332_v27 }
 0x3a9   :  { %1292 = vtanh.f32 %v341_v29 }
 0x3aa   :  { %1294 = vtanh.f32 %v383_v36 }
 0x3ae   :  { %v1291_v28 = vpop.eup %1290 }
 0x3af   :  { %390 = vrot.lane.b32.xlu1 %v1291_v28, %s1374_s5  ;;  %v1293_v31 = vpop.eup %1292  ;;  %v142_v28 = vpop.f32.mrf.mxu1 }
 0x3b0   :  { %v343_v32 = vmul.f32 0.5, %v1293_v31  ;;  %v1295_v37 = vpop.eup %1294  ;;  %v143_v29 = vadd.f32 %v1509_v21, %v142_v28 }
 0x3b1   :  { %v385_v38 = vmul.f32 0.5, %v1295_v37 }
 0x3b2   :  { %v344_v33 = vadd.f32 0.5, %v343_v32  ;;  %166 = vst.msk [vmem:[#allocation3] sm:$0xff] %vm108_vm1, %v143_v29 }
 0x3b3   :  { %v386_v40 = vadd.f32 0.5, %v385_v38 }
 0x3b4   :  { %v346_v44 = vmul.f32 %v344_v33, %v241_v41 }
 0x3b5   :  { %v388_v62 = vmul.f32 %v386_v40, %v282_v61 }
 0x3b7   :  { %337 = vperm.xlu1 %1272, %v1577_v30   ;;  %v145_v31 = vpop.f32.mrf.mxu1 }
 0x3b8   :  { %v146_v32 = vadd.f32 %v1509_v21, %v145_v31 }
 0x3ba   :  { %167 = vst.msk [vmem:[#allocation3 + $0x8] sm:$0xff] %vm108_vm1, %v146_v32 }
 0x3c6   :  { %v349_v34 = vpop.permute.xlu0 %348 }
 0x3c7   :  { %v351_v35 = vmul.f32 %v349_v34, %v344_v33 }
 0x3c9   :  { %353 = vrot.lane.b32.xlu2 %v351_v35, %s1376_s9  ;;  %v450_v35 = vld [vmem:[#allocation2 + $0x10] sm:$0xff] }
 0x421   :  { %v391_v42 = vpop.permute.xlu1 %390 }
 0x422   :  { %v393_v43 = vmul.f32 %v391_v42, %v386_v40 }
 0x423   :  { %v354_v45 = vpop.permute.xlu2 %353 }
 0x424   :  { %v356_v46 = vadd.f32 %v354_v45, %v346_v44  ;;  %395 = vrot.lane.b32.xlu0 %v393_v43, %s1376_s9 }
 0x426   :  { %1296 = vtanh.f32 %v356_v46 }
 0x429   :  { %v338_v47 = vpop.permute.xlu1 %337 }
 0x42a   :  { %v340_v49 = vsub.f32 1.0, %v338_v47  ;;  %v363_v51 = vmul.f32 %v356_v46, %v338_v47 }
 0x42c   :  { %v1297_v50 = vpop.eup %1296  ;;  %v364_v52 = vmul.f32 %v340_v49, %v241_v41  ;;  %379 = vperm.xlu0 %1273, %v1586_v48   ;;  %v367_v56 = vmul.f32 %v340_v49, %v1540_v1 }
 0x42d   :  { %359 = vrot.lane.b32.xlu2 %v1297_v50, %s1377_s14 }
 0x42e   :  { %v1590_v53 = vadd.f32 %v364_v52, %v363_v51  ;;  %v1660_v51 = vld [vmem:[%s1955_s1 + $0x10] sm:$0xff] }
 0x487   :  { %v360_v54 = vpop.permute.xlu2 %359 }
 0x488   :  { %v362_v55 = vmul.f32 %v360_v54, %v344_v33  ;;  %v148_v33 = vpop.f32.mrf.mxu1 }
 0x489   :  { %v149_v34 = vadd.f32 %v1509_v21, %v148_v33 }
 0x48a   :  { %v1593_v58 = vmul.f32 %v362_v55, %v338_v47 }
 0x48b   :  { %168 = vst.msk [vmem:[#allocation3 + $0x10] sm:$0xff] %vm108_vm1, %v149_v34 }
 0x48c   :  { %v1596_v59 = vadd.f32 %v367_v56, %v1593_v58 }
 0x48e   :  { %418 = vrot.lane.b32.xlu2 %v1596_v59, %s1378_s15 }
 0x490   :  { %v151_v38 = vpop.f32.mrf.mxu1 }
 0x491   :  { %v152_v39 = vadd.f32 %v1509_v21, %v151_v38 }
 0x493   :  { %169 = vst.msk [vmem:[#allocation3 + $0x18] sm:$0xff] %vm108_vm1, %v152_v39 }
 0x496   :  { %v396_v63 = vpop.permute.xlu0 %395 }
 0x497   :  { %v398_v3 = vadd.f32 %v396_v63, %v388_v62 }
 0x499   :  { %1298 = vtanh.f32 %v398_v3 }
 0x49e   :  { %v380_v4 = vpop.permute.xlu0 %379 }
 0x49f   :  { %v1299_v5 = vpop.eup %1298  ;;  %v382_v1 = vsub.f32 1.0, %v380_v4  ;;  %v405_v11 = vmul.f32 %v398_v3, %v380_v4 }
 0x4a0   :  { %401 = vrot.lane.b32.xlu1 %v1299_v5, %s1377_s14 }
 0x4a1   :  { %v406_v14 = vmul.f32 %v382_v1, %v282_v61  ;;  %v409_v6 = vmul.f32 %v382_v1, %v1554_v9  ;;  %v30_v9 = vld [vmem:[%s1951_s0 + $0x20] sm:$0xff] }
 0x4a2   :  { %1231 = vmatmul.msk.f32.gmra.mxu1 %vm42_vm0, %v30_v9  ;;  %1223 = vmatmul.msk.f32.gmra.mxu0 %vm42_vm0, %v30_v9 }
 0x4a3   :  { %v1604_v15 = vadd.f32 %v406_v14, %v405_v11 }
 0x4aa   :  { %1232 = vmatmul.msk.f32.gmra.mxu1 %vm42_vm0, %v31_v24  ;;  %1224 = vmatmul.msk.f32.gmra.mxu0 %vm42_vm0, %v31_v24 }
 0x4e8   :  { %v419_v25 = vpop.permute.xlu2 %418 }
 0x512   :  { %v402_v57 = vpop.permute.xlu1 %401 }
 0x513   :  { %v404_v2 = vmul.f32 %v402_v57, %v386_v40 }
 0x515   :  { %v1612_v18 = vmul.f32 %v404_v2, %v380_v4 }
 0x517   :  { %v1615_v19 = vadd.f32 %v409_v6, %v1612_v18 }
 0x519   :  { %422 = vrot.lane.b32.xlu1 %v1615_v19, %s1374_s5 }
 0x51f   :  { %v154_v41 = vpop.f32.mrf.mxu1 }
 0x520   :  { %v155_v42 = vadd.f32 %v1509_v21, %v154_v41 }
 0x522   :  { %170 = vst.msk [vmem:[#allocation3 + $0x20] sm:$0xff] %vm108_vm1, %v155_v42 }
 0x527   :  { %v157_v43 = vpop.f32.mrf.mxu1 }
 0x528   :  { %v158_v44 = vadd.f32 %v1509_v21, %v157_v43 }
 0x52a   :  { %171 = vst.msk [vmem:[#allocation3 + $0x28] sm:$0xff] %vm108_vm1, %v158_v44 }
 0x531   :  { %v453_v45 = vld [vmem:[#allocation3 + $0x28] sm:$0xff] }
 0x58b   :  { %v423_v26 = vpop.permute.xlu1 %422 }
 0x58c   :  { %v425_v27 = vsel %vm248_vm2, %v419_v25, %v423_v26 }
 0x58d   :  { %1239 = vmatmul.msk.f32.vlgmr.msra.gmra.mxu2 %vm42_vm0, %v425_v27 }
 0x58e   :  { %941 = vmatpush.msra.mxu2 %v1446_v8 }
 0x590   :  { %942 = vmatpush.msra.mxu2 %v1455_v10 }
 0x592   :  { %943 = vmatpush.msra.mxu2 %v1465_v12 }
 0x594   :  { %944 = vmatpush.msra.mxu2 %v1471_v13 }
 0x610   :  { %v446_v36 = vpop.f32.mrf.mxu2 }
 0x611   :  { %v451_v37 = vadd.f32 %v450_v35, %v446_v36  ;;  %455 = vrot.lane.b32.xlu2 %v446_v36, %s1373_s4 }
 0x613   :  { %1300 = vtanh.f32 %v451_v37  ;;  %v467_v50 = vmul.f32 0.5, %v451_v37 }
 0x619   :  { %v1301_v40 = vpop.eup %1300 }
 0x61a   :  { %474 = vrot.lane.b32.xlu0 %v1301_v40, %s1374_s5  ;;  %v93_v40 = vpop.f32.mrf.mxu0 }
 0x61b   :  { %v94_v41 = vadd.f32 %v1501_v16, %v93_v40 }
 0x61d   :  { %112 = vst.msk [vmem:[#allocation2 + $0x18] sm:$0xff] %vm108_vm1, %v94_v41 }
 0x66b   :  { %v456_v46 = vpop.permute.xlu2 %455 }
 0x66c   :  { %v458_v47 = vadd.f32 %v456_v46, %v453_v45 }
 0x66e   :  { %1302 = vtanh.f32 %v458_v47  ;;  %v509_v60 = vmul.f32 0.5, %v458_v47 }
 0x66f   :  { %1304 = vtanh.f32 %v467_v50 }
 0x670   :  { %1306 = vtanh.f32 %v509_v60 }
 0x674   :  { %v1303_v49 = vpop.eup %1302 }
 0x675   :  { %516 = vrot.lane.b32.xlu1 %v1303_v49, %s1374_s5  ;;  %v1305_v52 = vpop.eup %1304 }
 0x676   :  { %v469_v21 = vmul.f32 0.5, %v1305_v52  ;;  %v1307_v61 = vpop.eup %1306 }
 0x677   :  { %v511_v62 = vmul.f32 0.5, %v1307_v61 }
 0x678   :  { %v470_v54 = vadd.f32 0.5, %v469_v21 }
 0x679   :  { %v512_v63 = vadd.f32 0.5, %v511_v62 }
 0x67a   :  { %v472_v5 = vmul.f32 %v470_v54, %v1590_v53 }
 0x67d   :  { %463 = vperm.xlu1 %1272, %v1660_v51  }
 0x68c   :  { %v475_v55 = vpop.permute.xlu0 %474 }
 0x68d   :  { %v477_v56 = vmul.f32 %v475_v55, %v470_v54  ;;  %v1712_v55 = vld [vmem:[%s1955_s1 + $0x18] sm:$0xff] }
 0x68f   :  { %479 = vrot.lane.b32.xlu2 %v477_v56, %s1376_s9 }
 0x6e7   :  { %v517_v3 = vpop.permute.xlu1 %516 }
 0x6e8   :  { %v519_v4 = vmul.f32 %v517_v3, %v512_v63 }
 0x6e9   :  { %v480_v1 = vpop.permute.xlu2 %479 }
 0x6ea   :  { %v482_v11 = vadd.f32 %v480_v1, %v472_v5  ;;  %521 = vrot.lane.b32.xlu0 %v519_v4, %s1376_s9 }
 0x6ec   :  { %1308 = vtanh.f32 %v482_v11 }
 0x6ef   :  { %v464_v14 = vpop.permute.xlu1 %463 }
 0x6f0   :  { %v466_v57 = vsub.f32 1.0, %v464_v14  ;;  %v489_v6 = vmul.f32 %v482_v11, %v464_v14 }
 0x6f2   :  { %v1309_v2 = vpop.eup %1308  ;;  %v490_v20 = vmul.f32 %v466_v57, %v1590_v53  ;;  %505 = vperm.xlu0 %1273, %v1669_v17   ;;  %v493_v24 = vmul.f32 %v466_v57, %v1596_v59  ;;  %v514_v53 = vmul.f32 %v512_v63, %v1604_v15  ;;  %v1244_v57 = vld [vmem:[%s1955_s1 + $0x20] sm:$0xff] }
 0x6f3   :  { %485 = vrot.lane.b32.xlu2 %v1309_v2, %s1377_s14 }
 0x6f4   :  { %v1674_v9 = vadd.f32 %v490_v20, %v489_v6 }
 0x74d   :  { %v486_v22 = vpop.permute.xlu2 %485 }
 0x74e   :  { %v488_v23 = vmul.f32 %v486_v22, %v470_v54 }
 0x750   :  { %v1677_v25 = vmul.f32 %v488_v23, %v464_v14 }
 0x752   :  { %v1680_v26 = vadd.f32 %v493_v24, %v1677_v25 }
 0x754   :  { %544 = vrot.lane.b32.xlu2 %v1680_v26, %s1378_s15 }
 0x75c   :  { %v522_v27 = vpop.permute.xlu0 %521 }
 0x75d   :  { %v524_v28 = vadd.f32 %v522_v27, %v514_v53 }
 0x75f   :  { %1310 = vtanh.f32 %v524_v28 }
 0x764   :  { %v506_v29 = vpop.permute.xlu0 %505 }
 0x765   :  { %v1311_v31 = vpop.eup %1310  ;;  %v508_v32 = vsub.f32 1.0, %v506_v29  ;;  %v531_v33 = vmul.f32 %v524_v28, %v506_v29 }
 0x766   :  { %527 = vrot.lane.b32.xlu1 %v1311_v31, %s1377_s14 }
 0x767   :  { %v532_v59 = vmul.f32 %v508_v32, %v1604_v15  ;;  %v535_v37 = vmul.f32 %v508_v32, %v1615_v19  ;;  %v576_v19 = vld [vmem:[#allocation2 + $0x18] sm:$0xff] }
 0x769   :  { %v1687_v34 = vadd.f32 %v532_v59, %v531_v33 }
 0x7ae   :  { %v545_v15 = vpop.permute.xlu2 %544 }
 0x7d8   :  { %v528_v35 = vpop.permute.xlu1 %527 }
 0x7d9   :  { %v530_v36 = vmul.f32 %v528_v35, %v512_v63 }
 0x7db   :  { %v1690_v38 = vmul.f32 %v530_v36, %v506_v29 }
 0x7dd   :  { %v1693_v39 = vadd.f32 %v535_v37, %v1690_v38 }
 0x7df   :  { %548 = vrot.lane.b32.xlu0 %v1693_v39, %s1374_s5 }
 0x851   :  { %v549_v42 = vpop.permute.xlu0 %548 }
 0x852   :  { %v551_v43 = vsel %vm248_vm2, %v545_v15, %v549_v42 }
 0x853   :  { %1242 = vmatmul.msk.f32.vlgmr.msra.gmra.mxu3 %vm42_vm0, %v551_v43 }
 0x854   :  { %1065 = vmatpush.msra.mxu3 %v1446_v8 }
 0x856   :  { %1066 = vmatpush.msra.mxu3 %v1455_v10 }
 0x858   :  { %1067 = vmatpush.msra.mxu3 %v1465_v12  ;;  %v579_v12 = vld [vmem:[#allocation3 + $0x20] sm:$0xff] }
 0x85a   :  { %1068 = vmatpush.msra.mxu3 %v1471_v13 }
 0x8d6   :  { %v572_v44 = vpop.f32.mrf.mxu3 }
 0x8d7   :  { %v577_v45 = vadd.f32 %v576_v19, %v572_v44  ;;  %581 = vrot.lane.b32.xlu1 %v572_v44, %s1373_s4 }
 0x8d9   :  { %1312 = vtanh.f32 %v577_v45  ;;  %v593_v47 = vmul.f32 0.5, %v577_v45 }
 0x8db   :  { %1314 = vtanh.f32 %v593_v47 }
 0x8df   :  { %v1313_v46 = vpop.eup %1312 }
 0x8e0   :  { %600 = vrot.lane.b32.xlu2 %v1313_v46, %s1374_s5 }
 0x8e1   :  { %v1315_v49 = vpop.eup %1314 }
 0x8e2   :  { %v595_v50 = vmul.f32 0.5, %v1315_v49 }
 0x8e4   :  { %v596_v8 = vadd.f32 0.5, %v595_v50 }
 0x8e6   :  { %v598_v56 = vmul.f32 %v596_v8, %v1674_v9 }
 0x93a   :  { %v601_v52 = vpop.permute.xlu2 %600 }
 0x93b   :  { %v603_v10 = vmul.f32 %v601_v52, %v596_v8 }
 0x93d   :  { %605 = vrot.lane.b32.xlu1 %v603_v10, %s1376_s9 }
 0x949   :  { %v582_v13 = vpop.permute.xlu1 %581 }
 0x94a   :  { %v584_v21 = vadd.f32 %v582_v13, %v579_v12 }
 0x94c   :  { %1316 = vtanh.f32 %v584_v21  ;;  %v635_v62 = vmul.f32 0.5, %v584_v21 }
 0x952   :  { %v1317_v54 = vpop.eup %1316 }
 0x953   :  { %642 = vrot.lane.b32.xlu0 %v1317_v54, %s1374_s5 }
 0x95b   :  { %589 = vperm.xlu0 %1273, %v1712_v55  }
 0x9af   :  { %v606_v60 = vpop.permute.xlu1 %605 }
 0x9b0   :  { %v608_v61 = vadd.f32 %v606_v60, %v598_v56 }
 0x9b2   :  { %1318 = vtanh.f32 %v608_v61 }
 0x9b3   :  { %1320 = vtanh.f32 %v635_v62 }
 0x9b8   :  { %v1319_v63 = vpop.eup %1318 }
 0x9b9   :  { %611 = vrot.lane.b32.xlu1 %v1319_v63, %s1377_s14  ;;  %v1321_v3 = vpop.eup %1320 }
 0x9ba   :  { %v637_v4 = vmul.f32 0.5, %v1321_v3 }
 0x9bc   :  { %v638_v5 = vadd.f32 0.5, %v637_v4 }
 0x9be   :  { %v640_v23 = vmul.f32 %v638_v5, %v1687_v34 }
 0x9c5   :  { %v643_v1 = vpop.permute.xlu0 %642 }
 0x9c6   :  { %v645_v11 = vmul.f32 %v643_v1, %v638_v5 }
 0x9c8   :  { %647 = vrot.lane.b32.xlu2 %v645_v11, %s1376_s9 }
 0x9cd   :  { %v590_v14 = vpop.permute.xlu0 %589 }
 0x9ce   :  { %v592_v2 = vsub.f32 1.0, %v590_v14  ;;  %v615_v6 = vmul.f32 %v608_v61, %v590_v14 }
 0x9d0   :  { %v616_v20 = vmul.f32 %v592_v2, %v1674_v9  ;;  %631 = vperm.xlu2 %1271, %v1244_v57   ;;  %v619_v9 = vmul.f32 %v592_v2, %v1680_v26  ;;  %v96_v26 = vpop.f32.mrf.mxu0 }
 0x9d1   :  { %v97_v43 = vadd.f32 %v1501_v16, %v96_v26 }
 0x9d2   :  { %v1722_v22 = vadd.f32 %v616_v20, %v615_v6 }
 0x9d3   :  { %113 = vst.msk [vmem:[#allocation2 + $0x20] sm:$0xff] %vm108_vm1, %v97_v43 }
 0xa22   :  { %v648_v24 = vpop.permute.xlu2 %647 }
 0xa23   :  { %v650_v53 = vadd.f32 %v648_v24, %v640_v23 }
 0xa25   :  { %1322 = vtanh.f32 %v650_v53 }
 0xa2a   :  { %v632_v27 = vpop.permute.xlu2 %631 }
 0xa2b   :  { %v1323_v28 = vpop.eup %1322  ;;  %v634_v29 = vsub.f32 1.0, %v632_v27  ;;  %v612_v31 = vpop.permute.xlu1 %611  ;;  %v657_v33 = vmul.f32 %v650_v53, %v632_v27 }
 0xa2c   :  { %v614_v32 = vmul.f32 %v612_v31, %v596_v8  ;;  %653 = vrot.lane.b32.xlu0 %v1323_v28, %s1377_s14  ;;  %v705_v8 = vld [vmem:[#allocation3 + $0x18] sm:$0xff] }
 0xa2d   :  { %v658_v59 = vmul.f32 %v634_v29, %v1687_v34  ;;  %v661_v15 = vmul.f32 %v634_v29, %v1693_v39  ;;  %v702_v39 = vld [vmem:[#allocation2 + $0x20] sm:$0xff] }
 0xa2e   :  { %v1728_v35 = vmul.f32 %v614_v32, %v590_v14 }
 0xa2f   :  { %v1730_v36 = vadd.f32 %v658_v59, %v657_v33 }
 0xa30   :  { %v1733_v37 = vadd.f32 %v619_v9, %v1728_v35 }
 0xa32   :  { %670 = vrot.lane.b32.xlu1 %v1733_v37, %s1378_s15 }
 0xa9e   :  { %v654_v40 = vpop.permute.xlu0 %653 }
 0xa9f   :  { %v656_v41 = vmul.f32 %v654_v40, %v638_v5 }
 0xaa1   :  { %v1738_v42 = vmul.f32 %v656_v41, %v632_v27 }
 0xaa3   :  { %v1741_v34 = vadd.f32 %v661_v15, %v1738_v42 }
 0xaa4   :  { %v671_v19 = vpop.permute.xlu1 %670 }
 0xaa5   :  { %674 = vrot.lane.b32.xlu2 %v1741_v34, %s1374_s5 }
 0xaff   :  { %v675_v44 = vpop.permute.xlu2 %674 }
 0xb00   :  { %v677_v45 = vsel %vm248_vm2, %v671_v19, %v675_v44 }
 0xb01   :  { %1245 = vmatmul.msk.f32.vlgmr.msrb.gmra.mxu2 %vm42_vm0, %v677_v45  ;;  %v99_v45 = vpop.f32.mrf.mxu0 }
 0xb84   :  { %v698_v46 = vpop.f32.mrf.mxu2 }
 0xb85   :  { %v703_v47 = vadd.f32 %v702_v39, %v698_v46  ;;  %707 = vrot.lane.b32.xlu0 %v698_v46, %s1373_s4 }
 0xb87   :  { %1324 = vtanh.f32 %v703_v47  ;;  %v718_v50 = vmul.f32 0.5, %v703_v47 }
 0xb89   :  { %1326 = vtanh.f32 %v718_v50 }
 0xb8d   :  { %v1325_v49 = vpop.eup %1324 }
 0xb8e   :  { %725 = vrot.lane.b32.xlu1 %v1325_v49, %s1374_s5 }
 0xb8f   :  { %v1327_v10 = vpop.eup %1326 }
 0xb90   :  { %v720_v13 = vmul.f32 0.5, %v1327_v10 }
 0xb92   :  { %v721_v21 = vadd.f32 0.5, %v720_v13 }
 0xb94   :  { %v723_v14 = vmul.f32 %v721_v21, %v1722_v22 }
 0xbf7   :  { %v708_v52 = vpop.permute.xlu0 %707 }
 0xbf8   :  { %v710_v12 = vadd.f32 %v708_v52, %v705_v8  ;;  %v829_v52 = vld [vmem:[#allocation3 + $0x10] sm:$0xff] }
 0xbfa   :  { %1328 = vtanh.f32 %v710_v12  ;;  %v759_v61 = vmul.f32 0.5, %v710_v12 }
 0xbfc   :  { %1330 = vtanh.f32 %v759_v61 }
 0xc00   :  { %v1329_v54 = vpop.eup %1328  ;;  %v726_v56 = vpop.permute.xlu1 %725 }
 0xc01   :  { %v728_v60 = vmul.f32 %v726_v56, %v721_v21  ;;  %766 = vrot.lane.b32.xlu2 %v1329_v54, %s1374_s5 }
 0xc02   :  { %v1331_v62 = vpop.eup %1330 }
 0xc03   :  { %730 = vrot.lane.b32.xlu0 %v728_v60, %s1376_s9  ;;  %v761_v63 = vmul.f32 0.5, %v1331_v62 }
 0xc05   :  { %v762_v3 = vadd.f32 0.5, %v761_v63 }
 0xc07   :  { %v764_v53 = vmul.f32 %v762_v3, %v1730_v36 }
 0xc09   :  { %714 = vperm.xlu2 %1271, %v1244_v57  }
 0xc5b   :  { %v767_v4 = vpop.permute.xlu2 %766 }
 0xc5c   :  { %v769_v5 = vmul.f32 %v767_v4, %v762_v3 }
 0xc5e   :  { %771 = vrot.lane.b32.xlu1 %v769_v5, %s1376_s9 }
 0xc63   :  { %v715_v1 = vpop.permute.xlu2 %714 }
 0xc64   :  { %v717_v11 = vsub.f32 1.0, %v715_v1 }
 0xc66   :  { %755 = vperm.xlu1 %1272, %v1712_v55   ;;  %v741_v57 = vmul.f32 %v717_v11, %v1722_v22  ;;  %v744_v40 = vmul.f32 %v717_v11, %v1733_v37  ;;  %v100_v37 = vadd.f32 %v1501_v16, %v99_v45 }
 0xc68   :  { %114 = vst.msk [vmem:[#allocation2 + $0x28] sm:$0xff] %vm108_vm1, %v100_v37 }
 0xc75   :  { %v731_v2 = vpop.permute.xlu0 %730 }
 0xc76   :  { %v733_v6 = vadd.f32 %v731_v2, %v723_v14 }
 0xc78   :  { %1332 = vtanh.f32 %v733_v6  ;;  %v740_v20 = vmul.f32 %v733_v6, %v715_v1 }
 0xc7a   :  { %v1757_v23 = vadd.f32 %v741_v57, %v740_v20 }
 0xc7e   :  { %v1333_v24 = vpop.eup %1332 }
 0xc7f   :  { %736 = vrot.lane.b32.xlu0 %v1333_v24, %s1377_s14 }
 0xcd0   :  { %v772_v27 = vpop.permute.xlu1 %771 }
 0xcd1   :  { %v774_v28 = vadd.f32 %v772_v27, %v764_v53 }
 0xcd3   :  { %1334 = vtanh.f32 %v774_v28 }
 0xcd8   :  { %v756_v55 = vpop.permute.xlu1 %755 }
 0xcd9   :  { %v1335_v29 = vpop.eup %1334  ;;  %v758_v31 = vsub.f32 1.0, %v756_v55  ;;  %v781_v32 = vmul.f32 %v774_v28, %v756_v55 }
 0xcda   :  { %777 = vrot.lane.b32.xlu2 %v1335_v29, %s1377_s14 }
 0xcdb   :  { %v782_v33 = vmul.f32 %v758_v31, %v1730_v36  ;;  %v785_v19 = vmul.f32 %v758_v31, %v1741_v34  ;;  %v826_v34 = vld [vmem:[#allocation2 + $0x28] sm:$0xff] }
 0xcdd   :  { %v1763_v59 = vadd.f32 %v782_v33, %v781_v32 }
 0xcf1   :  { %v737_v22 = vpop.permute.xlu0 %736 }
 0xcf2   :  { %v739_v9 = vmul.f32 %v737_v22, %v721_v21 }
 0xcf4   :  { %v1766_v41 = vmul.f32 %v739_v9, %v715_v1 }
 0xcf6   :  { %v745_v15 = vadd.f32 %v744_v40, %v1766_v41 }
 0xcf8   :  { %794 = vrot.lane.b32.xlu0 %v745_v15, %s1378_s15 }
 0xd34   :  { %v778_v26 = vpop.permute.xlu2 %777 }
 0xd35   :  { %v780_v43 = vmul.f32 %v778_v26, %v762_v3 }
 0xd37   :  { %v1771_v44 = vmul.f32 %v780_v43, %v756_v55 }
 0xd39   :  { %v1774_v36 = vadd.f32 %v785_v19, %v1771_v44 }
 0xd3b   :  { %798 = vrot.lane.b32.xlu1 %v1774_v36, %s1374_s5 }
 0xd6a   :  { %v795_v39 = vpop.permute.xlu0 %794 }
 0xdad   :  { %v799_v46 = vpop.permute.xlu1 %798 }
 0xdae   :  { %v801_v47 = vsel %vm248_vm2, %v795_v39, %v799_v46 }
 0xdaf   :  { %1248 = vmatmul.msk.f32.vlgmr.msrb.gmra.mxu3 %vm42_vm0, %v801_v47 }
 0xe32   :  { %v822_v49 = vpop.f32.mrf.mxu3 }
 0xe33   :  { %v827_v50 = vadd.f32 %v826_v34, %v822_v49  ;;  %831 = vrot.lane.b32.xlu2 %v822_v49, %s1373_s4  ;;  %v950_v49 = vld [vmem:[#allocation2 + $0x30] sm:$0xff] }
 0xe35   :  { %1336 = vtanh.f32 %v827_v50  ;;  %v842_v13 = vmul.f32 0.5, %v827_v50 }
 0xe3b   :  { %v1337_v8 = vpop.eup %1336 }
 0xe3c   :  { %849 = vrot.lane.b32.xlu0 %v1337_v8, %s1374_s5 }
 0xe8d   :  { %v832_v10 = vpop.permute.xlu2 %831 }
 0xe8e   :  { %v834_v16 = vadd.f32 %v832_v10, %v829_v52 }
 0xe90   :  { %1338 = vtanh.f32 %v834_v16  ;;  %v883_v62 = vmul.f32 0.5, %v834_v16 }
 0xe91   :  { %1340 = vtanh.f32 %v842_v13 }
 0xe92   :  { %1342 = vtanh.f32 %v883_v62 }
 0xe96   :  { %v1339_v12 = vpop.eup %1338 }
 0xe97   :  { %890 = vrot.lane.b32.xlu1 %v1339_v12, %s1374_s5  ;;  %v1341_v21 = vpop.eup %1340 }
 0xe98   :  { %v844_v54 = vmul.f32 0.5, %v1341_v21  ;;  %v1343_v63 = vpop.eup %1342  ;;  %v953_v21 = vld [vmem:[#allocation3 + $0x8] sm:$0xff] }
 0xe99   :  { %v885_v3 = vmul.f32 0.5, %v1343_v63 }
 0xe9a   :  { %v845_v56 = vadd.f32 0.5, %v844_v54 }
 0xe9b   :  { %v886_v4 = vadd.f32 0.5, %v885_v3 }
 0xe9c   :  { %v847_v11 = vmul.f32 %v845_v56, %v1757_v23 }
 0xe9d   :  { %v888_v32 = vmul.f32 %v886_v4, %v1763_v59 }
 0xe9f   :  { %838 = vperm.xlu1 %1272, %v1669_v17  }
 0xeae   :  { %v850_v60 = vpop.permute.xlu0 %849 }
 0xeaf   :  { %v852_v61 = vmul.f32 %v850_v60, %v845_v56 }
 0xeb1   :  { %854 = vrot.lane.b32.xlu2 %v852_v61, %s1376_s9 }
 0xf09   :  { %v891_v5 = vpop.permute.xlu1 %890 }
 0xf0a   :  { %v893_v1 = vmul.f32 %v891_v5, %v886_v4 }
 0xf0b   :  { %v855_v14 = vpop.permute.xlu2 %854 }
 0xf0c   :  { %v857_v2 = vadd.f32 %v855_v14, %v847_v11  ;;  %895 = vrot.lane.b32.xlu0 %v893_v1, %s1376_s9 }
 0xf0e   :  { %1344 = vtanh.f32 %v857_v2 }
 0xf11   :  { %v839_v17 = vpop.permute.xlu1 %838 }
 0xf12   :  { %v841_v6 = vsub.f32 1.0, %v839_v17  ;;  %v864_v57 = vmul.f32 %v857_v2, %v839_v17 }
 0xf14   :  { %v1345_v20 = vpop.eup %1344  ;;  %v865_v24 = vmul.f32 %v841_v6, %v1757_v23  ;;  %879 = vperm.xlu0 %1273, %v1660_v51   ;;  %v868_v55 = vmul.f32 %v841_v6, %v745_v15 }
 0xf15   :  { %860 = vrot.lane.b32.xlu2 %v1345_v20, %s1377_s14 }
 0xf16   :  { %v1792_v53 = vadd.f32 %v865_v24, %v864_v57 }
 0xf6f   :  { %v861_v27 = vpop.permute.xlu2 %860 }
 0xf70   :  { %v863_v28 = vmul.f32 %v861_v27, %v845_v56 }
 0xf72   :  { %v1794_v29 = vmul.f32 %v863_v28, %v839_v17 }
 0xf74   :  { %v1797_v31 = vadd.f32 %v868_v55, %v1794_v29 }
 0xf76   :  { %918 = vrot.lane.b32.xlu2 %v1797_v31, %s1378_s15 }
 0xf7e   :  { %v896_v23 = vpop.permute.xlu0 %895 }
 0xf7f   :  { %v898_v33 = vadd.f32 %v896_v23, %v888_v32 }
 0xf81   :  { %1346 = vtanh.f32 %v898_v33 }
 0xf86   :  { %v880_v51 = vpop.permute.xlu0 %879 }
 0xf87   :  { %v1347_v22 = vpop.eup %1346  ;;  %v882_v9 = vsub.f32 1.0, %v880_v51  ;;  %v905_v40 = vmul.f32 %v898_v33, %v880_v51 }
 0xf88   :  { %901 = vrot.lane.b32.xlu1 %v1347_v22, %s1377_s14 }
 0xf89   :  { %v906_v15 = vmul.f32 %v882_v9, %v1763_v59  ;;  %v909_v45 = vmul.f32 %v882_v9, %v1774_v36 }
 0xf8b   :  { %v1804_v26 = vadd.f32 %v906_v15, %v905_v40 }
 0xfd0   :  { %v919_v46 = vpop.permute.xlu2 %918 }
 0xffa   :  { %v902_v43 = vpop.permute.xlu1 %901 }
 0xffb   :  { %v904_v19 = vmul.f32 %v902_v43, %v886_v4 }
 0xffd   :  { %v1807_v37 = vmul.f32 %v904_v19, %v880_v51 }
 0xfff   :  { %v1810_v39 = vadd.f32 %v909_v45, %v1807_v37 }
0x1001   :  { %922 = vrot.lane.b32.xlu0 %v1810_v39, %s1374_s5 }
0x1073   :  { %v923_v47 = vpop.permute.xlu0 %922 }
0x1074   :  { %v925_v34 = vsel %vm248_vm2, %v919_v46, %v923_v47 }
0x1075   :  { %1251 = vmatmul.msk.f32.vlgmr.msra.gmra.mxu2 %vm42_vm0, %v925_v34 }
0x10f8   :  { %v946_v59 = vpop.f32.mrf.mxu2 }
0x10f9   :  { %v951_v50 = vadd.f32 %v950_v49, %v946_v59  ;;  %955 = vrot.lane.b32.xlu1 %v946_v59, %s1373_s4  ;;  %v1074_v49 = vld [vmem:[#allocation2 + $0x38] sm:$0xff] }
0x10fb   :  { %1348 = vtanh.f32 %v951_v50  ;;  %v966_v8 = vmul.f32 0.5, %v951_v50 }
0x10fd   :  { %1350 = vtanh.f32 %v966_v8  ;;  %v1076_v8 = vld [vmem:[#allocation3] sm:$0xff] }
0x1101   :  { %v1349_v36 = vpop.eup %1348 }
0x1102   :  { %973 = vrot.lane.b32.xlu2 %v1349_v36, %s1374_s5 }
0x1103   :  { %v1351_v52 = vpop.eup %1350 }
0x1104   :  { %v968_v10 = vmul.f32 0.5, %v1351_v52 }
0x1106   :  { %v969_v16 = vadd.f32 0.5, %v968_v10 }
0x1108   :  { %v971_v61 = vmul.f32 %v969_v16, %v1792_v53 }
0x115c   :  { %v974_v12 = vpop.permute.xlu2 %973 }
0x115d   :  { %v976_v13 = vmul.f32 %v974_v12, %v969_v16 }
0x115f   :  { %978 = vrot.lane.b32.xlu1 %v976_v13, %s1376_s9 }
0x116b   :  { %v956_v54 = vpop.permute.xlu1 %955 }
0x116c   :  { %v958_v56 = vadd.f32 %v956_v54, %v953_v21 }
0x116e   :  { %1352 = vtanh.f32 %v958_v56  ;;  %v1007_v3 = vmul.f32 0.5, %v958_v56 }
0x1174   :  { %v1353_v60 = vpop.eup %1352 }
0x1175   :  { %1014 = vrot.lane.b32.xlu0 %v1353_v60, %s1374_s5 }
0x117d   :  { %962 = vperm.xlu0 %1273, %v1586_v48  }
0x11d1   :  { %v979_v62 = vpop.permute.xlu1 %978 }
0x11d2   :  { %v981_v63 = vadd.f32 %v979_v62, %v971_v61 }
0x11d4   :  { %1354 = vtanh.f32 %v981_v63 }
0x11d5   :  { %1356 = vtanh.f32 %v1007_v3 }
0x11da   :  { %v1355_v4 = vpop.eup %1354 }
0x11db   :  { %984 = vrot.lane.b32.xlu1 %v1355_v4, %s1377_s14  ;;  %v1357_v5 = vpop.eup %1356 }
0x11dc   :  { %v1009_v1 = vmul.f32 0.5, %v1357_v5 }
0x11de   :  { %v1010_v11 = vadd.f32 0.5, %v1009_v1 }
0x11e0   :  { %v1012_v24 = vmul.f32 %v1010_v11, %v1804_v26 }
0x11e7   :  { %v1015_v14 = vpop.permute.xlu0 %1014 }
0x11e8   :  { %v1017_v2 = vmul.f32 %v1015_v14, %v1010_v11 }
0x11ea   :  { %1019 = vrot.lane.b32.xlu2 %v1017_v2, %s1376_s9 }
0x11ef   :  { %v963_v17 = vpop.permute.xlu0 %962 }
0x11f0   :  { %v965_v6 = vsub.f32 1.0, %v963_v17  ;;  %v988_v48 = vmul.f32 %v981_v63, %v963_v17 }
0x11f2   :  { %v989_v20 = vmul.f32 %v965_v6, %v1792_v53  ;;  %1003 = vperm.xlu2 %1271, %v1577_v30   ;;  %v992_v53 = vmul.f32 %v965_v6, %v1797_v31 }
0x11f4   :  { %v990_v57 = vadd.f32 %v989_v20, %v988_v48 }
0x1244   :  { %v1020_v27 = vpop.permute.xlu2 %1019 }
0x1245   :  { %v1022_v28 = vadd.f32 %v1020_v27, %v1012_v24 }
0x1247   :  { %1358 = vtanh.f32 %v1022_v28 }
0x124c   :  { %v1004_v55 = vpop.permute.xlu2 %1003 }
0x124d   :  { %v1359_v32 = vpop.eup %1358  ;;  %v1006_v23 = vsub.f32 1.0, %v1004_v55  ;;  %v985_v33 = vpop.permute.xlu1 %984  ;;  %v1029_v22 = vmul.f32 %v1022_v28, %v1004_v55 }
0x124e   :  { %v987_v51 = vmul.f32 %v985_v33, %v969_v16  ;;  %1025 = vrot.lane.b32.xlu0 %v1359_v32, %s1377_s14 }
0x124f   :  { %v1030_v9 = vmul.f32 %v1006_v23, %v1804_v26  ;;  %v1033_v45 = vmul.f32 %v1006_v23, %v1810_v39 }
0x1250   :  { %v1830_v40 = vmul.f32 %v987_v51, %v963_v17 }
0x1251   :  { %v1031_v30 = vadd.f32 %v1030_v9, %v1029_v22 }
0x1252   :  { %v993_v15 = vadd.f32 %v992_v53, %v1830_v40 }
0x1254   :  { %1042 = vrot.lane.b32.xlu1 %v993_v15, %s1378_s15 }
0x12c0   :  { %v1026_v43 = vpop.permute.xlu0 %1025 }
0x12c1   :  { %v1028_v19 = vmul.f32 %v1026_v43, %v1010_v11  ;;  %v1117_v11 = vld [vmem:[%s1955_s1] sm:$0xff] }
0x12c3   :  { %v1032_v46 = vmul.f32 %v1028_v19, %v1004_v55 }
0x12c5   :  { %v1034_v47 = vadd.f32 %v1033_v45, %v1032_v46 }
0x12c6   :  { %v1043_v34 = vpop.permute.xlu1 %1042 }
0x12c7   :  { %1046 = vrot.lane.b32.xlu2 %v1034_v47, %s1374_s5 }
0x1321   :  { %v1047_v59 = vpop.permute.xlu2 %1046 }
0x1322   :  { %v1049_v26 = vsel %vm248_vm2, %v1043_v34, %v1047_v59 }
0x1323   :  { %1254 = vmatmul.msk.f32.vlgmr.msra.gmra.mxu3 %vm42_vm0, %v1049_v26 }
0x13a6   :  { %v1070_v31 = vpop.f32.mrf.mxu3 }
0x13a7   :  { %v1075_v50 = vadd.f32 %v1074_v49, %v1070_v31  ;;  %1078 = vrot.lane.b32.xlu0 %v1070_v31, %s1373_s4 }
0x13a9   :  { %1360 = vtanh.f32 %v1075_v50  ;;  %v1088_v39 = vmul.f32 0.5, %v1075_v50 }
0x13ab   :  { %1362 = vtanh.f32 %v1088_v39 }
0x13af   :  { %v1361_v36 = vpop.eup %1360 }
0x13b0   :  { %1095 = vrot.lane.b32.xlu2 %v1361_v36, %s1374_s5 }
0x13b1   :  { %v1363_v16 = vpop.eup %1362 }
0x13b2   :  { %v1090_v13 = vmul.f32 0.5, %v1363_v16 }
0x13b4   :  { %v1841_v54 = vadd.f32 0.5, %v1090_v13 }
0x13b6   :  { %v1093_v5 = vmul.f32 %v1841_v54, %v990_v57 }
0x140a   :  { %v1096_v21 = vpop.permute.xlu2 %1095 }
0x140b   :  { %v1098_v56 = vmul.f32 %v1096_v21, %v1841_v54 }
0x1419   :  { %v1079_v52 = vpop.permute.xlu0 %1078 }
0x141a   :  { %v1081_v10 = vadd.f32 %v1079_v52, %v1076_v8 }
0x141c   :  { %1364 = vtanh.f32 %v1081_v10  ;;  %v1123_v60 = vmul.f32 0.5, %v1081_v10 }
0x141e   :  { %1366 = vtanh.f32 %v1123_v60 }
0x1422   :  { %v1365_v12 = vpop.eup %1364 }
0x1423   :  { %1130 = vrot.lane.b32.xlu1 %v1365_v12, %s1374_s5 }
0x1424   :  { %v1367_v61 = vpop.eup %1366 }
0x1425   :  { %v1125_v62 = vmul.f32 0.5, %v1367_v61 }
0x1427   :  { %v1126_v63 = vadd.f32 0.5, %v1125_v62 }
0x1429   :  { %v1128_v17 = vmul.f32 %v1126_v63, %v1031_v30 }
0x142b   :  { %1100 = vrot.lane.b32.xlu1 %v1098_v56, %s1376_s9 }
0x1495   :  { %v1131_v3 = vpop.permute.xlu1 %1130 }
0x1496   :  { %v1133_v4 = vmul.f32 %v1131_v3, %v1126_v63 }
0x1498   :  { %1135 = vrot.lane.b32.xlu0 %v1133_v4, %s1376_s9 }
0x149d   :  { %v1101_v1 = vpop.permute.xlu1 %1100 }
0x149e   :  { %v1103_v14 = vadd.f32 %v1101_v1, %v1093_v5 }
0x14a0   :  { %1368 = vtanh.f32 %v1103_v14  ;;  %1120 = vperm.xlu0 %1273, %v1117_v11  }
0x14a6   :  { %v1369_v2 = vpop.eup %1368 }
0x14a7   :  { %1106 = vrot.lane.b32.xlu1 %v1369_v2, %s1377_s14 }
0x14a8   :  { %286 = vrot.lane.b32.xlu0 %v1550_v7, %s1378_s15 }
0x14af   :  { %412 = vrot.lane.b32.xlu1 %v1612_v18, %s1378_s15 }
0x14b0   :  { %664 = vrot.lane.b32.xlu0 %v1738_v42, %s1378_s15 }
0x14b7   :  { %788 = vrot.lane.b32.xlu1 %v1771_v44, %s1378_s15  ;;  %v1255_v44 = vld [vmem:[%s1955_s1 + $0x38] sm:$0xff] }
0x14b8   :  { %1036 = vrot.lane.b32.xlu0 %v1032_v46, %s1378_s15 }
0x14c0   :  { %370 = vrot.lane.b32.xlu0 %v1593_v58, %s1378_s15 }
0x14c8   :  { %747 = vrot.lane.b32.xlu0 %v1766_v41, %s1378_s15 }
0x150a   :  { %v1136_v6 = vpop.permute.xlu0 %1135 }
0x150b   :  { %v1138_v7 = vadd.f32 %v1136_v6, %v1128_v17 }
0x150d   :  { %1370 = vtanh.f32 %v1138_v7 }
0x1512   :  { %v1121_v48 = vpop.permute.xlu0 %1120 }
0x1513   :  { %v1371_v18 = vpop.eup %1370 }
0x1514   :  { %1141 = vrot.lane.b32.xlu2 %v1371_v18, %s1377_s14 }
0x1519   :  { %v1107_v42 = vpop.permute.xlu1 %1106 }
0x151a   :  { %v287_v20 = vpop.permute.xlu0 %286  ;;  %v1109_v33 = vmul.f32 %v1107_v42, %v1841_v54 }
0x151b   :  { %290 = vst.msk [vmem:[#allocation5 + $0x38] sm:$0xff] %vm248_vm2, %v287_v20 }
0x151c   :  { %1085 = vperm.xlu2 %1271, %v1255_v44  }
0x1521   :  { %v413_v58 = vpop.permute.xlu1 %412 }
0x1522   :  { %416 = vst.msk [vmem:[#allocation5 + $0x30] sm:$0xff] %vm248_vm2, %v413_v58  ;;  %v665_v41 = vpop.permute.xlu0 %664 }
0x1523   :  { %668 = vst.msk [vmem:[#allocation5 + $0x20] sm:$0xff] %vm248_vm2, %v665_v41 }
0x1524   :  { %538 = vrot.lane.b32.xlu2 %v1690_v38, %s1378_s15 }
0x1529   :  { %v789_v57 = vpop.permute.xlu1 %788  ;;  %v1165_v52 = vld [vmem:[#allocation5 + $0x30] sm:$0xff] }
0x152a   :  { %792 = vst.msk [vmem:[#allocation5 + $0x18] sm:$0xff] %vm248_vm2, %v789_v57  ;;  %v1037_v24 = vpop.permute.xlu0 %1036  ;;  %v1163_v55 = vld [vmem:[#allocation5 + $0x20] sm:$0xff] }
0x152b   :  { %1040 = vst.msk [vmem:[#allocation5 + $0x8] sm:$0xff] %vm248_vm2, %v1037_v24 }
0x152c   :  { %912 = vrot.lane.b32.xlu2 %v1807_v37, %s1378_s15  ;;  %v1166_v37 = vld [vmem:[#allocation5 + $0x38] sm:$0xff] }
0x1531   :  { %v1162_v53 = vld [vmem:[#allocation5 + $0x18] sm:$0xff] }
0x1532   :  { %v371_v27 = vpop.permute.xlu0 %370  ;;  %v1160_v38 = vld [vmem:[#allocation5 + $0x8] sm:$0xff] }
0x1533   :  { %374 = vst.msk [vmem:[#allocation4 + $0x8] sm:$0xff] %vm248_vm2, %v371_v27 }
0x1534   :  { %245 = vrot.lane.b32.xlu2 %v1537_v0, %s1378_s15 }
0x153a   :  { %v748_v28 = vpop.permute.xlu0 %747 }
0x153b   :  { %751 = vst.msk [vmem:[#allocation4 + $0x20] sm:$0xff] %vm248_vm2, %v748_v28 }
0x153c   :  { %622 = vrot.lane.b32.xlu2 %v1728_v35, %s1378_s15 }
0x1542   :  { %v1155_v46 = vld [vmem:[#allocation4 + $0x20] sm:$0xff] }
0x1544   :  { %995 = vrot.lane.b32.xlu2 %v1830_v40, %s1378_s15 }
0x154c   :  { %1177 = vrot.lane.b32.xlu2 %v1160_v38, %s1376_s9 }
0x1554   :  { %1183 = vrot.lane.b32.xlu2 %v1163_v55, %s1376_s9 }
0x155c   :  { %1189 = vrot.lane.b32.xlu2 %v1166_v37, %s1376_s9 }
0x156e   :  { %v1142_v32 = vpop.permute.xlu2 %1141 }
0x156f   :  { %v1144_v0 = vmul.f32 %v1142_v32, %v1126_v63 }
0x1571   :  { %v1145_v23 = vmul.f32 %v1144_v0, %v1121_v48 }
0x1573   :  { %1147 = vrot.lane.b32.xlu1 %v1145_v23, %s1378_s15 }
0x1576   :  { %v1086_v35 = vpop.permute.xlu2 %1085 }
0x1577   :  { %v1110_v51 = vmul.f32 %v1109_v33, %v1086_v35 }
0x1579   :  { %1112 = vrot.lane.b32.xlu0 %v1110_v51, %s1378_s15 }
0x157b   :  { %496 = vrot.lane.b32.xlu1 %v1677_v25, %s1378_s15 }
0x157e   :  { %v539_v22 = vpop.permute.xlu2 %538 }
0x157f   :  { %542 = vst.msk [vmem:[#allocation5 + $0x28] sm:$0xff] %vm248_vm2, %v539_v22 }
0x1583   :  { %871 = vrot.lane.b32.xlu1 %v1794_v29, %s1378_s15  ;;  %v1152_v29 = vld [vmem:[#allocation4 + $0x8] sm:$0xff] }
0x1586   :  { %v913_v9 = vpop.permute.xlu2 %912  ;;  %v1164_v25 = vld [vmem:[#allocation5 + $0x28] sm:$0xff] }
0x1587   :  { %916 = vst.msk [vmem:[#allocation5 + $0x10] sm:$0xff] %vm248_vm2, %v913_v9 }
0x158b   :  { %1181 = vrot.lane.b32.xlu1 %v1162_v53, %s1376_s9 }
0x158e   :  { %v246_v40 = vpop.permute.xlu2 %245  ;;  %v1161_v30 = vld [vmem:[#allocation5 + $0x10] sm:$0xff] }
0x158f   :  { %249 = vst.msk [vmem:[#allocation4] sm:$0xff] %vm248_vm2, %v246_v40  ;;  %1179 = vrot.lane.b32.xlu0 %v1161_v30, %s1376_s9 }
0x1596   :  { %v623_v15 = vpop.permute.xlu2 %622  ;;  %v1151_v62 = vld [vmem:[#allocation4] sm:$0xff] }
0x1597   :  { %626 = vst.msk [vmem:[#allocation4 + $0x18] sm:$0xff] %vm248_vm2, %v623_v15  ;;  %1185 = vrot.lane.b32.xlu0 %v1164_v25, %s1376_s9 }
0x159e   :  { %v996_v43 = vpop.permute.xlu2 %995  ;;  %v1154_v10 = vld [vmem:[#allocation4 + $0x18] sm:$0xff] }
0x159f   :  { %999 = vst.msk [vmem:[#allocation4 + $0x30] sm:$0xff] %vm248_vm2, %v996_v43 }
0x15a6   :  { %v1178_v19 = vpop.permute.xlu2 %1177  ;;  %v1157_v4 = vld [vmem:[#allocation4 + $0x30] sm:$0xff] }
0x15a7   :  { %v1200_v45 = vsel %vm248_vm2, %v1152_v29, %v1178_v19 }
0x15a8   :  { %1208 = vst.msk [vmem:[%s1956_s7 + $0x8] sm:$0xff] %vm42_vm0, %v1200_v45 }
0x15ae   :  { %v1184_v47 = vpop.permute.xlu2 %1183 }
0x15af   :  { %v1203_v34 = vsel %vm248_vm2, %v1155_v46, %v1184_v47 }
0x15b0   :  { %1211 = vst.msk [vmem:[%s1956_s7 + $0x20] sm:$0xff] %vm42_vm0, %v1203_v34 }
0x15b6   :  { %v1190_v50 = vpop.permute.xlu2 %1189 }
0x15e5   :  { %v1148_v59 = vpop.permute.xlu1 %1147 }
0x15e6   :  { %1150 = vst.msk [vmem:[#allocation5] sm:$0xff] %vm248_vm2, %v1148_v59 }
0x15eb   :  { %v1113_v26 = vpop.permute.xlu0 %1112 }
0x15ec   :  { %1116 = vst.msk [vmem:[#allocation4 + $0x38] sm:$0xff] %vm248_vm2, %v1113_v26 }
0x15ed   :  { %v497_v31 = vpop.permute.xlu1 %496  ;;  %v1159_v49 = vld [vmem:[#allocation5] sm:$0xff] }
0x15ee   :  { %500 = vst.msk [vmem:[#allocation4 + $0x10] sm:$0xff] %vm248_vm2, %v497_v31  ;;  %1175 = vrot.lane.b32.xlu1 %v1159_v49, %s1376_s9 }
0x15f3   :  { %v1158_v36 = vld [vmem:[#allocation4 + $0x38] sm:$0xff] }
0x15f4   :  { %v1206_v39 = vsel %vm248_vm2, %v1158_v36, %v1190_v50 }
0x15f5   :  { %1214 = vst.msk [vmem:[%s1956_s7 + $0x38] sm:$0xff] %vm42_vm0, %v1206_v39  ;;  %v872_v8 = vpop.permute.xlu1 %871  ;;  %v1153_v21 = vld [vmem:[#allocation4 + $0x10] sm:$0xff] }
0x15f6   :  { %875 = vst.msk [vmem:[#allocation4 + $0x28] sm:$0xff] %vm248_vm2, %v872_v8  ;;  %1187 = vrot.lane.b32.xlu1 %v1165_v52, %s1376_s9 }
0x15fd   :  { %v1182_v16 = vpop.permute.xlu1 %1181  ;;  %v1156_v60 = vld [vmem:[#allocation4 + $0x28] sm:$0xff] }
0x15fe   :  { %v1202_v12 = vsel %vm248_vm2, %v1154_v10, %v1182_v16 }
0x15ff   :  { %1210 = vst.msk [vmem:[%s1956_s7 + $0x18] sm:$0xff] %vm42_vm0, %v1202_v12 }
0x1601   :  { %v1180_v13 = vpop.permute.xlu0 %1179 }
0x1602   :  { %v1201_v54 = vsel %vm248_vm2, %v1153_v21, %v1180_v13 }
0x1603   :  { %1209 = vst.msk [vmem:[%s1956_s7 + $0x10] sm:$0xff] %vm42_vm0, %v1201_v54 }
0x1609   :  { %v1186_v56 = vpop.permute.xlu0 %1185 }
0x160a   :  { %v1204_v61 = vsel %vm248_vm2, %v1156_v60, %v1186_v56 }
0x160b   :  { %1212 = vst.msk [vmem:[%s1956_s7 + $0x28] sm:$0xff] %vm42_vm0, %v1204_v61 }
0x1660   :  { %v1176_v63 = vpop.permute.xlu1 %1175 }
0x1661   :  { %v1199_v3 = vsel %vm248_vm2, %v1151_v62, %v1176_v63 }
0x1662   :  { %1207 = vst.msk [vmem:[%s1956_s7] sm:$0xff] %vm42_vm0, %v1199_v3 }
0x1668   :  { %v1188_v5 = vpop.permute.xlu1 %1187 }
0x1669   :  { %v1205_v1 = vsel %vm248_vm2, %v1157_v4, %v1188_v5 }
0x166a   :  { %1213 = vst.msk [vmem:[%s1956_s7 + $0x30] sm:$0xff] %vm42_vm0, %v1205_v1 }

</bundles_post_ra>
